<compile_context>
chip_gen: v6e
topology: v6e:2x2x1
jax: 0.10.0
libtpu: 0.0.40
codegen_flags: <defaults>
</compile_context>

<pallas_src>
import functools

import numpy as np
import jax
import jax.numpy as jnp
from jax.experimental import pallas as pl
from jax.experimental.pallas import tpu as pltpu

# MXU operand dtype.  Accumulation is always f32 via preferred_element_type; elementwise
# math (bias, ReLU, max-pool) stays f32 so v5e's VPU never sees bf16 arithmetic.
_MXU_DTYPE = jnp.bfloat16

_VMEM_LIMIT = 32 * 1024 * 1024  # conservative scoped-VMEM budget, portable to v7x (64 MiB phys)


def _round_up(x, m):
    return ((x + m - 1) // m) * m


def _pick_batch_tile(B, max_tile, min_steps=1):
    """Largest divisor of B that is <= max_tile, preferring >= min_steps grid steps."""
    max_tile = max(1, max_tile)
    divisors = [t for t in range(1, B + 1) if B % t == 0 and t <= max_tile]
    good = [t for t in divisors if B // t >= min_steps]
    return max(good) if good else max(divisors)


# ---------------------------------------------------------------------------
# Fused feature extractor:
#   [(Conv3x3(pad=1) + folded-BN + ReLU) * P  ->  MaxPool2x2] * (N/P)
# One grid step = TB images; all intermediates stay in VMEM.
# ---------------------------------------------------------------------------
def _make_features_kernel(block_layers, H0, W0, TB):
    """block_layers: tuple of blocks; each block is a tuple of (cin, cout) per conv layer."""
    n_conv = sum(len(blk) for blk in block_layers)
    Cf = block_layers[-1][-1][1]

    def kernel(*refs):
        x_ref = refs[0]
        wb = refs[1:1 + 2 * n_conv]                  # (w0, b0, w1, b1, ...), BN pre-folded
        o_ref = refs[1 + 2 * n_conv]
        pad_ref, slab_ref, pool_ref = refs[2 + 2 * n_conv:]
        cmax = pad_ref.shape[-1]

        H, W = H0, W0
        y = None            # current pooled activation, (TB*H*W, C) f32, rows = (b, h, w)
        li = 0
        for blk in block_layers:
            cin0 = blk[0][0]
            # Zero ONLY the 1-pixel halo ring (all lanes): the interior is fully overwritten
            # below, and rows/cols outside the ring are never read by the 3x3 windows.
            zrow = jnp.zeros((TB, 1, W + 2, cmax), pad_ref.dtype)
            zcol = jnp.zeros((TB, H, 1, cmax), pad_ref.dtype)
            pad_ref[:, 0:1, 0:W + 2, :] = zrow
            pad_ref[:, H + 1:H + 2, 0:W + 2, :] = zrow
            pad_ref[:, 1:H + 1, 0:1, :] = zcol
            pad_ref[:, 1:H + 1, W + 1:W + 2, :] = zcol
            if y is None:
                pad_ref[:, 1:H + 1, 1:W + 1, 0:cin0] = x_ref[...]
            else:
                pad_ref[:, 1:H + 1, 1:W + 1, 0:cin0] = y.reshape(TB, H, W, cin0)

            for idx, (cin, cout) in enumerate(blk):
                w = wb[2 * li][...]                  # (9*cin, cout) bf16, rows = (dy, dx, cin)
                bias = wb[2 * li + 1][...]           # (1, cout) f32
                li += 1
                M = TB * H * W
                # Build the (M, 9*cin) im2col slab once (9 shifted VMEM windows packed along
                # lanes), then a SINGLE K=9*cin GEMM against the pre-folded weight.
                for k in range(9):
                    dy, dx = divmod(k, 3)
                    win = pad_ref[:, dy:dy + H, dx:dx + W, 0:cin]        # (TB, H, W, cin)
                    slab_ref[0:M, k * cin:(k + 1) * cin] = win.reshape(M, cin)
                cols = slab_ref[0:M, 0:9 * cin].astype(_MXU_DTYPE)
                acc = jnp.dot(cols, w, preferred_element_type=jnp.float32)
                y = jnp.maximum(acc + bias, 0.0)                         # Conv + BN(folded) + ReLU
                if idx + 1 < len(blk):
                    # Feed the next conv of this block (same H, W): rewrite the pad interior.
                    pad_ref[:, 1:H + 1, 1:W + 1, 0:cout] = y.reshape(TB, H, W, cout)

            # 2x2 MaxPool fused into the block epilogue (no HBM round trip).
            c = blk[-1][1]
            H2, W2 = H // 2, W // 2
            y5 = y.reshape(TB, H2, 2, W, c)
            vp = jnp.maximum(y5[:, :, 0], y5[:, :, 1])                   # row-pair max -> (TB, H2, W, c)
            pool_ref[0:TB * H2 * W, 0:c] = vp.reshape(TB * H2 * W, c)
            even = pool_ref[pl.ds(0, TB * H2 * W2, 2), 0:c]              # column-pair max via
            odd = pool_ref[pl.ds(1, TB * H2 * W2, 2), 0:c]               # stride-2 sublane reads
            y = jnp.maximum(even, odd)                                   # (TB*H2*W2, c), rows = (b, h2, w2)
            # TODO(synk): Dropout2d(p=0.3) after each pool is identity in eval/inference mode.
            H, W = H2, W2

        o_ref[...] = y.reshape(TB, H * W, Cf)

    return kernel


def features_forward(x_nhwc, conv_params, *, pool_every):
    """x_nhwc: (B, H, W, Cin).  Returns (B, Hf*Wf, Cf) pooled features, rows=(h,w), lanes=c."""
    B, H0, W0, Cin = x_nhwc.shape
    n_conv = len(conv_params)
    assert n_conv % pool_every == 0, "this kernel assumes len(filters) % pool_every == 0"
    chans = [(w.shape[0] // 9, w.shape[1]) for (w, _) in conv_params]
    block_layers = tuple(tuple(chans[i:i + pool_every]) for i in range(0, n_conv, pool_every))
    n_blocks = len(block_layers)
    Hf, Wf = H0 // (2 ** n_blocks), W0 // (2 ** n_blocks)
    Cf = chans[-1][1]
    c_max = max(max(ci, co) for ci, co in chans)

    # Batch tile: amortize per-grid-step overhead over several images while keeping >= 2 grid
    # steps (so both v7x TensorCores get work) and keeping scratch VMEM bounded.
    per_img_scratch = 4 * ((H0 + 2) * (W0 + 2) * c_max
                           + H0 * W0 * 9 * c_max
                           + (H0 * W0 // 2) * c_max)
    max_tb = max(1, min(8, (8 << 20) // max(per_img_scratch, 1)))
    TB = _pick_batch_tile(B, max_tb, min_steps=2)

    kernel = _make_features_kernel(block_layers, H0, W0, TB)

    in_specs = [pl.BlockSpec((TB, H0, W0, Cin), lambda b: (b, 0, 0, 0))]
    flat_wb = []
    for (w, bias) in conv_params:
        in_specs.append(pl.BlockSpec(w.shape, lambda b: (0, 0)))      # weights resident across grid
        in_specs.append(pl.BlockSpec(bias.shape, lambda b: (0, 0)))
        flat_wb += [w, bias]
    out_spec = pl.BlockSpec((TB, Hf * Wf, Cf), lambda b: (b, 0, 0))

    flops = 0
    hb, wb_ = H0, W0
    for blk in block_layers:
        for (ci, co) in blk:
            flops += 2 * B * hb * wb_ * 9 * ci * co
        hb, wb_ = hb // 2, wb_ // 2
    bytes_accessed = int(
        4 * x_nhwc.size
        + sum(int(w.size) * w.dtype.itemsize + 4 * int(b.size) for (w, b) in conv_params)
        + 4 * B * Hf * Wf * Cf)

    return pl.pallas_call(
        kernel,
        out_shape=jax.ShapeDtypeStruct((B, Hf * Wf, Cf), jnp.float32),
        grid_spec=pltpu.PrefetchScalarGridSpec(
            num_scalar_prefetch=0,
            grid=(B // TB,),
            in_specs=in_specs,
            out_specs=out_spec,
            scratch_shapes=[
                pltpu.VMEM((TB, H0 + 2, W0 + 2, c_max), jnp.float32),    # zero-halo padded activations
                pltpu.VMEM((TB * H0 * W0, 9 * c_max), jnp.float32),      # im2col slab (one GEMM/conv)
                pltpu.VMEM((TB * H0 * W0 // 2, c_max), jnp.float32),     # pool staging (no zero-init)
            ],
        ),
        compiler_params=pltpu.CompilerParams(
            dimension_semantics=("parallel",),        # shard image tiles across v7x TensorCores
            vmem_limit_bytes=_VMEM_LIMIT,
        ),
        cost_estimate=pl.CostEstimate(
            flops=flops, transcendentals=0, bytes_accessed=bytes_accessed),
    )(x_nhwc, *flat_wb)


# ---------------------------------------------------------------------------
# Fused classifier head: (Linear -> ReLU)*M -> Dropout(id) -> Linear, batch-gridded.
# Hidden/output dims are zero-padded to multiples of 128 at init (lane-dense GEMMs/stores).
# ---------------------------------------------------------------------------
def classifier_kernel(x_ref, *refs):
    o_ref = refs[-1]
    wb = refs[:-1]
    n = len(wb) // 2
    h = x_ref[...]                                   # (TBc, Din) f32
    for i in range(n):
        w = wb[2 * i][...]                           # bf16 (zero-padded)
        b = wb[2 * i + 1][...]                       # (1, Dout_pad) f32
        h = jnp.dot(h.astype(_MXU_DTYPE), w, preferred_element_type=jnp.float32) + b
        if i < n - 1:
            h = jnp.maximum(h, 0.0)
    # TODO(synk): Dropout(p=0.2) before the final Linear is identity in eval mode.
    o_ref[...] = h


def classifier_forward(feat, lin_params, out_params):
    """feat: (B, Din) NHWC-flattened features (FC1 weight rows pre-permuted to NCHW order)."""
    B, Din = feat.shape
    flat_wb = []
    for (w, b) in lin_params:
        flat_wb += [w, b]
    w_out, b_out = out_params
    flat_wb += [w_out, b_out]
    Dout = w_out.shape[1]                            # padded output width (multiple of 128)

    TBc = _pick_batch_tile(B, 256, min_steps=1)      # row-block the batch; weights stay resident
    in_specs = [pl.BlockSpec((TBc, Din), lambda i: (i, 0))]
    for arr in flat_wb:
        in_specs.append(pl.BlockSpec(arr.shape, lambda i: (0, 0)))
    out_spec = pl.BlockSpec((TBc, Dout), lambda i: (i, 0))

    return pl.pallas_call(
        classifier_kernel,
        out_shape=jax.ShapeDtypeStruct((B, Dout), jnp.float32),
        grid_spec=pltpu.PrefetchScalarGridSpec(
            num_scalar_prefetch=0,
            grid=(B // TBc,),
            in_specs=in_specs,
            out_specs=out_spec,
        ),
        compiler_params=pltpu.CompilerParams(
            dimension_semantics=("parallel",),
            vmem_limit_bytes=_VMEM_LIMIT,
        ),
    )(feat, *flat_wb)


# ---------------------------------------------------------------------------
# Parameters (BN folded into conv; flatten-order permutation folded into FC1;
# classifier dims zero-padded to 128; MXU operands stored in bf16).
# ---------------------------------------------------------------------------
def init_params(key, in_size, out_classes, filters, pool_every, hidden_dims):
    C, H, W = in_size
    eps = 1e-5
    params = {"conv": [], "lin": []}

    chans = [C] + list(filters)
    for i in range(1, len(chans)):
        cin, cout = chans[i - 1], chans[i]
        key, k1, k2, k3, k4, k5, k6 = jax.random.split(key, 7)
        w = jax.random.normal(k1, (3, 3, cin, cout), jnp.float32) / jnp.sqrt(9.0 * cin)
        b = 0.1 * jax.random.normal(k2, (cout,), jnp.float32)
        gamma = 1.0 + 0.1 * jax.random.normal(k3, (cout,), jnp.float32)
        beta = 0.1 * jax.random.normal(k4, (cout,), jnp.float32)
        rmean = 0.1 * jax.random.normal(k5, (cout,), jnp.float32)
        rvar = jnp.abs(jax.random.normal(k6, (cout,), jnp.float32)) + 0.5
        # Fold BatchNorm2d (eval) into the conv weight/bias once, at setup time:
        #   BN(conv(x) + b) = conv(x) * s + ((b - mean) * s + beta),  s = gamma / sqrt(var + eps)
        s = gamma / jnp.sqrt(rvar + eps)
        w_folded = (w * s[None, None, None, :]).reshape(9 * cin, cout)   # rows = (dy, dx, cin)
        b_folded = ((b - rmean) * s + beta).reshape(1, cout)
        params["conv"].append((w_folded.astype(_MXU_DTYPE), b_folded))

    n_pools = len(filters) // pool_every
    Hf, Wf, Cf = H // 2 ** n_pools, W // 2 ** n_pools, filters[-1]
    feat_dim = Cf * Hf * Wf
    # Kernels flatten pooled features in NHWC (h, w, c) order; PyTorch's features.view(B, -1)
    # flattens NCHW (c, h, w).  Fold that permutation into the first Linear weight's rows.
    perm = np.arange(feat_dim).reshape(Cf, Hf, Wf).transpose(1, 2, 0).reshape(-1)

    dims_true = [feat_dim] + list(hidden_dims)
    dims_pad = [feat_dim] + [_round_up(d, 128) for d in hidden_dims]
    need_perm = True
    for i in range(1, len(dims_true)):
        key, k1, k2 = jax.random.split(key, 3)
        w = jax.random.normal(k1, (dims_true[i - 1], dims_true[i]), jnp.float32) / jnp.sqrt(dims_true[i - 1])
        b = 0.1 * jax.random.normal(k2, (dims_true[i],), jnp.float32)
        if need_perm:
            w = w[perm, :]
            need_perm = False
        # Zero-pad to lane-dense widths; zeros propagate exactly through ReLU / next layer.
        w_pad = jnp.zeros((dims_pad[i - 1], dims_pad[i]), jnp.float32)
        w_pad = w_pad.at[:dims_true[i - 1], :dims_true[i]].set(w)
        b_pad = jnp.zeros((1, dims_pad[i]), jnp.float32).at[0, :dims_true[i]].set(b)
        params["lin"].append((w_pad.astype(_MXU_DTYPE), b_pad))

    out_pad = _round_up(out_classes, 128)
    key, k1, k2 = jax.random.split(key, 3)
    w = jax.random.normal(k1, (dims_true[-1], out_classes), jnp.float32) / jnp.sqrt(dims_true[-1])
    b = 0.1 * jax.random.normal(k2, (out_classes,), jnp.float32)
    if need_perm:
        w = w[perm, :]
    w_pad = jnp.zeros((dims_pad[-1], out_pad), jnp.float32)
    w_pad = w_pad.at[:dims_true[-1], :out_classes].set(w)
    b_pad = jnp.zeros((1, out_pad), jnp.float32).at[0, :out_classes].set(b)
    params["out"] = (w_pad.astype(_MXU_DTYPE), b_pad)
    return params


# ---------------------------------------------------------------------------
# Forward
# ---------------------------------------------------------------------------
def your_code_net_forward(x_nchw, params, *, pool_every, out_classes):
    # Single small layout fixup: NCHW (PyTorch) -> NHWC (channels on the lane axis).
    x = jnp.transpose(x_nchw, (0, 2, 3, 1)).astype(jnp.float32)
    feat3 = features_forward(x, params["conv"], pool_every=pool_every)   # (B, Hf*Wf, Cf)
    feat = feat3.reshape(feat3.shape[0], -1)    # NHWC flatten; FC1 rows pre-permuted to match
    logits = classifier_forward(feat, params["lin"], params["out"])      # (B, out_pad)
    return logits[:, :out_classes]              # drop the lane-padding columns


# ---------------------------------------------------------------------------
# main
# ---------------------------------------------------------------------------
if __name__ == "__main__":
    in_size = (4, 16, 16)      # (C, H, W)
    out_classes = 10
    filters = [8, 8]
    pool_every = 2
    hidden_dims = [32]
    batch = 2

    key = jax.random.PRNGKey(0)
    key, xkey = jax.random.split(key)
    x = jax.random.normal(xkey, (batch,) + in_size, jnp.float32)   # NCHW, like PyTorch
    params = init_params(key, in_size, out_classes, filters, pool_every, hidden_dims)

    fwd = jax.jit(functools.partial(your_code_net_forward,
                                    pool_every=pool_every, out_classes=out_classes))
    out = jax.block_until_ready(fwd(x, params))

    assert out.shape == (batch, out_classes), out.shape
    assert bool(jnp.all(jnp.isfinite(out)))
    print("KERNEL_OK")
</pallas_src>

<mosaic_0001>
module attributes {stable_mosaic.version = 11 : i64} {
  func.func @kernel(%arg0: i32, %arg1: memref<1x16x16x4xf32, #tpu.memory_space<vmem>>, %arg2: memref<36x8xbf16, #tpu.memory_space<vmem>>, %arg3: memref<1x8xf32, #tpu.memory_space<vmem>>, %arg4: memref<72x8xbf16, #tpu.memory_space<vmem>>, %arg5: memref<1x8xf32, #tpu.memory_space<vmem>>, %arg6: memref<1x64x8xf32, #tpu.memory_space<vmem>>, %arg7: memref<1x18x18x8xf32, #tpu.memory_space<vmem>>, %arg8: memref<256x72xf32, #tpu.memory_space<vmem>>, %arg9: memref<128x8xf32, #tpu.memory_space<vmem>>) attributes {dimension_semantics = [#tpu.dimension_semantics<parallel>], iteration_bounds = array<i64: 2>, scalar_prefetch = 0 : i64, scratch_operands = 3 : i64, tpu.core_type = #tpu.core_type<tc>, window_params = [{transform_indices = @transform_0, window_bounds = array<i64: 1, 16, 16, 4>}, {pipeline_mode = #tpu.pipeline_mode<synchronous>, transform_indices = @transform_1, window_bounds = array<i64: 36, 8>}, {pipeline_mode = #tpu.pipeline_mode<synchronous>, transform_indices = @transform_2, window_bounds = array<i64: 1, 8>}, {pipeline_mode = #tpu.pipeline_mode<synchronous>, transform_indices = @transform_3, window_bounds = array<i64: 72, 8>}, {pipeline_mode = #tpu.pipeline_mode<synchronous>, transform_indices = @transform_4, window_bounds = array<i64: 1, 8>}, {transform_indices = @transform_5, window_bounds = array<i64: 1, 64, 8>}]} {
    %cst = arith.constant 0.000000e+00 : f32
    %0 = vector.broadcast %cst : f32 to vector<1x1x18x8xf32>
    %cst_0 = arith.constant 0.000000e+00 : f32
    %1 = vector.broadcast %cst_0 : f32 to vector<1x16x1x8xf32>
    %c0 = arith.constant 0 : index
    %c0_1 = arith.constant 0 : index
    %c0_2 = arith.constant 0 : index
    %c0_3 = arith.constant 0 : index
    %2 = vector.load %arg7[%c0, %c0_1, %c0_2, %c0_3] : memref<1x18x18x8xf32, #tpu.memory_space<vmem>>, vector<1x1x18x8xf32>
    tpu.vector_store %arg7[%c0, %c0_1, %c0_2, %c0_3], %0 {strides = array<i32>} : memref<1x18x18x8xf32, #tpu.memory_space<vmem>>, vector<1x1x18x8xf32>,
    %c0_4 = arith.constant 0 : index
    %c17 = arith.constant 17 : index
    %c0_5 = arith.constant 0 : index
    %c0_6 = arith.constant 0 : index
    %3 = vector.load %arg7[%c0_4, %c17, %c0_5, %c0_6] : memref<1x18x18x8xf32, #tpu.memory_space<vmem>>, vector<1x1x18x8xf32>
    tpu.vector_store %arg7[%c0_4, %c17, %c0_5, %c0_6], %0 {strides = array<i32>} : memref<1x18x18x8xf32, #tpu.memory_space<vmem>>, vector<1x1x18x8xf32>,
    %c0_7 = arith.constant 0 : index
    %c1 = arith.constant 1 : index
    %c0_8 = arith.constant 0 : index
    %c0_9 = arith.constant 0 : index
    %4 = vector.load %arg7[%c0_7, %c1, %c0_8, %c0_9] : memref<1x18x18x8xf32, #tpu.memory_space<vmem>>, vector<1x16x1x8xf32>
    tpu.vector_store %arg7[%c0_7, %c1, %c0_8, %c0_9], %1 {strides = array<i32>} : memref<1x18x18x8xf32, #tpu.memory_space<vmem>>, vector<1x16x1x8xf32>,
    %c0_10 = arith.constant 0 : index
    %c1_11 = arith.constant 1 : index
    %c17_12 = arith.constant 17 : index
    %c0_13 = arith.constant 0 : index
    %5 = vector.load %arg7[%c0_10, %c1_11, %c17_12, %c0_13] : memref<1x18x18x8xf32, #tpu.memory_space<vmem>>, vector<1x16x1x8xf32>
    tpu.vector_store %arg7[%c0_10, %c1_11, %c17_12, %c0_13], %1 {strides = array<i32>} : memref<1x18x18x8xf32, #tpu.memory_space<vmem>>, vector<1x16x1x8xf32>,
    %c0_14 = arith.constant 0 : index
    %c0_15 = arith.constant 0 : index
    %c0_16 = arith.constant 0 : index
    %c0_17 = arith.constant 0 : index
    %6 = vector.load %arg1[%c0_14, %c0_15, %c0_16, %c0_17] : memref<1x16x16x4xf32, #tpu.memory_space<vmem>>, vector<1x16x16x4xf32>
    %c0_18 = arith.constant 0 : index
    %c1_19 = arith.constant 1 : index
    %c1_20 = arith.constant 1 : index
    %c0_21 = arith.constant 0 : index
    %7 = vector.load %arg7[%c0_18, %c1_19, %c1_20, %c0_21] : memref<1x18x18x8xf32, #tpu.memory_space<vmem>>, vector<1x16x16x4xf32>
    tpu.vector_store %arg7[%c0_18, %c1_19, %c1_20, %c0_21], %6 {strides = array<i32>} : memref<1x18x18x8xf32, #tpu.memory_space<vmem>>, vector<1x16x16x4xf32>,
    %c0_22 = arith.constant 0 : index
    %c0_23 = arith.constant 0 : index
    %8 = vector.load %arg2[%c0_22, %c0_23] : memref<36x8xbf16, #tpu.memory_space<vmem>>, vector<36x8xbf16>
    %c0_24 = arith.constant 0 : index
    %c0_25 = arith.constant 0 : index
    %9 = vector.load %arg3[%c0_24, %c0_25] : memref<1x8xf32, #tpu.memory_space<vmem>>, vector<1x8xf32>
    %c0_26 = arith.constant 0 : index
    %c0_27 = arith.constant 0 : index
    %c0_28 = arith.constant 0 : index
    %c0_29 = arith.constant 0 : index
    %10 = vector.load %arg7[%c0_26, %c0_27, %c0_28, %c0_29] : memref<1x18x18x8xf32, #tpu.memory_space<vmem>>, vector<1x16x16x4xf32>
    %11 = vector.shape_cast %10 : vector<1x16x16x4xf32> to vector<256x4xf32>
    %c0_30 = arith.constant 0 : index
    %c0_31 = arith.constant 0 : index
    %12 = vector.load %arg8[%c0_30, %c0_31] : memref<256x72xf32, #tpu.memory_space<vmem>>, vector<256x4xf32>
    tpu.vector_store %arg8[%c0_30, %c0_31], %11 {strides = array<i32>} : memref<256x72xf32, #tpu.memory_space<vmem>>, vector<256x4xf32>,
    %c0_32 = arith.constant 0 : index
    %c0_33 = arith.constant 0 : index
    %c1_34 = arith.constant 1 : index
    %c0_35 = arith.constant 0 : index
    %13 = vector.load %arg7[%c0_32, %c0_33, %c1_34, %c0_35] : memref<1x18x18x8xf32, #tpu.memory_space<vmem>>, vector<1x16x16x4xf32>
    %14 = vector.shape_cast %13 : vector<1x16x16x4xf32> to vector<256x4xf32>
    %c0_36 = arith.constant 0 : index
    %c4 = arith.constant 4 : index
    %15 = vector.load %arg8[%c0_36, %c4] : memref<256x72xf32, #tpu.memory_space<vmem>>, vector<256x4xf32>
    tpu.vector_store %arg8[%c0_36, %c4], %14 {strides = array<i32>} : memref<256x72xf32, #tpu.memory_space<vmem>>, vector<256x4xf32>,
    %c0_37 = arith.constant 0 : index
    %c0_38 = arith.constant 0 : index
    %c2 = arith.constant 2 : index
    %c0_39 = arith.constant 0 : index
    %16 = vector.load %arg7[%c0_37, %c0_38, %c2, %c0_39] : memref<1x18x18x8xf32, #tpu.memory_space<vmem>>, vector<1x16x16x4xf32>
    %17 = vector.shape_cast %16 : vector<1x16x16x4xf32> to vector<256x4xf32>
    %c0_40 = arith.constant 0 : index
    %c8 = arith.constant 8 : index
    %18 = vector.load %arg8[%c0_40, %c8] : memref<256x72xf32, #tpu.memory_space<vmem>>, vector<256x4xf32>
    tpu.vector_store %arg8[%c0_40, %c8], %17 {strides = array<i32>} : memref<256x72xf32, #tpu.memory_space<vmem>>, vector<256x4xf32>,
    %c0_41 = arith.constant 0 : index
    %c1_42 = arith.constant 1 : index
    %c0_43 = arith.constant 0 : index
    %c0_44 = arith.constant 0 : index
    %19 = vector.load %arg7[%c0_41, %c1_42, %c0_43, %c0_44] : memref<1x18x18x8xf32, #tpu.memory_space<vmem>>, vector<1x16x16x4xf32>
    %20 = vector.shape_cast %19 : vector<1x16x16x4xf32> to vector<256x4xf32>
    %c0_45 = arith.constant 0 : index
    %c12 = arith.constant 12 : index
    %21 = vector.load %arg8[%c0_45, %c12] : memref<256x72xf32, #tpu.memory_space<vmem>>, vector<256x4xf32>
    tpu.vector_store %arg8[%c0_45, %c12], %20 {strides = array<i32>} : memref<256x72xf32, #tpu.memory_space<vmem>>, vector<256x4xf32>,
    %c0_46 = arith.constant 0 : index
    %c1_47 = arith.constant 1 : index
    %c1_48 = arith.constant 1 : index
    %c0_49 = arith.constant 0 : index
    %22 = vector.load %arg7[%c0_46, %c1_47, %c1_48, %c0_49] : memref<1x18x18x8xf32, #tpu.memory_space<vmem>>, vector<1x16x16x4xf32>
    %23 = vector.shape_cast %22 : vector<1x16x16x4xf32> to vector<256x4xf32>
    %c0_50 = arith.constant 0 : index
    %c16 = arith.constant 16 : index
    %24 = vector.load %arg8[%c0_50, %c16] : memref<256x72xf32, #tpu.memory_space<vmem>>, vector<256x4xf32>
    tpu.vector_store %arg8[%c0_50, %c16], %23 {strides = array<i32>} : memref<256x72xf32, #tpu.memory_space<vmem>>, vector<256x4xf32>,
    %c0_51 = arith.constant 0 : index
    %c1_52 = arith.constant 1 : index
    %c2_53 = arith.constant 2 : index
    %c0_54 = arith.constant 0 : index
    %25 = vector.load %arg7[%c0_51, %c1_52, %c2_53, %c0_54] : memref<1x18x18x8xf32, #tpu.memory_space<vmem>>, vector<1x16x16x4xf32>
    %26 = vector.shape_cast %25 : vector<1x16x16x4xf32> to vector<256x4xf32>
    %c0_55 = arith.constant 0 : index
    %c20 = arith.constant 20 : index
    %27 = vector.load %arg8[%c0_55, %c20] : memref<256x72xf32, #tpu.memory_space<vmem>>, vector<256x4xf32>
    tpu.vector_store %arg8[%c0_55, %c20], %26 {strides = array<i32>} : memref<256x72xf32, #tpu.memory_space<vmem>>, vector<256x4xf32>,
    %c0_56 = arith.constant 0 : index
    %c2_57 = arith.constant 2 : index
    %c0_58 = arith.constant 0 : index
    %c0_59 = arith.constant 0 : index
    %28 = vector.load %arg7[%c0_56, %c2_57, %c0_58, %c0_59] : memref<1x18x18x8xf32, #tpu.memory_space<vmem>>, vector<1x16x16x4xf32>
    %29 = vector.shape_cast %28 : vector<1x16x16x4xf32> to vector<256x4xf32>
    %c0_60 = arith.constant 0 : index
    %c24 = arith.constant 24 : index
    %30 = vector.load %arg8[%c0_60, %c24] : memref<256x72xf32, #tpu.memory_space<vmem>>, vector<256x4xf32>
    tpu.vector_store %arg8[%c0_60, %c24], %29 {strides = array<i32>} : memref<256x72xf32, #tpu.memory_space<vmem>>, vector<256x4xf32>,
    %c0_61 = arith.constant 0 : index
    %c2_62 = arith.constant 2 : index
    %c1_63 = arith.constant 1 : index
    %c0_64 = arith.constant 0 : index
    %31 = vector.load %arg7[%c0_61, %c2_62, %c1_63, %c0_64] : memref<1x18x18x8xf32, #tpu.memory_space<vmem>>, vector<1x16x16x4xf32>
    %32 = vector.shape_cast %31 : vector<1x16x16x4xf32> to vector<256x4xf32>
    %c0_65 = arith.constant 0 : index
    %c28 = arith.constant 28 : index
    %33 = vector.load %arg8[%c0_65, %c28] : memref<256x72xf32, #tpu.memory_space<vmem>>, vector<256x4xf32>
    tpu.vector_store %arg8[%c0_65, %c28], %32 {strides = array<i32>} : memref<256x72xf32, #tpu.memory_space<vmem>>, vector<256x4xf32>,
    %c0_66 = arith.constant 0 : index
    %c2_67 = arith.constant 2 : index
    %c2_68 = arith.constant 2 : index
    %c0_69 = arith.constant 0 : index
    %34 = vector.load %arg7[%c0_66, %c2_67, %c2_68, %c0_69] : memref<1x18x18x8xf32, #tpu.memory_space<vmem>>, vector<1x16x16x4xf32>
    %35 = vector.shape_cast %34 : vector<1x16x16x4xf32> to vector<256x4xf32>
    %c0_70 = arith.constant 0 : index
    %c32 = arith.constant 32 : index
    %36 = vector.load %arg8[%c0_70, %c32] : memref<256x72xf32, #tpu.memory_space<vmem>>, vector<256x4xf32>
    tpu.vector_store %arg8[%c0_70, %c32], %35 {strides = array<i32>} : memref<256x72xf32, #tpu.memory_space<vmem>>, vector<256x4xf32>,
    %c0_71 = arith.constant 0 : index
    %c0_72 = arith.constant 0 : index
    %37 = vector.load %arg8[%c0_71, %c0_72] : memref<256x72xf32, #tpu.memory_space<vmem>>, vector<256x36xf32>
    %38 = arith.truncf %37 : vector<256x36xf32> to vector<256x36xbf16>
    %cst_73 = arith.constant dense<0.000000e+00> : vector<256x8xf32>
    %39 = tpu.matmul %38, %8, %cst_73 {dimension_numbers = #tpu.dot_dimension_numbers<[1], [0], [0], [1], [0, 0, 1, 1], [], []>} : vector<256x36xbf16>, vector<36x8xbf16>, vector<256x8xf32> -> vector<256x8xf32>
    %40 = vector.broadcast %9 : vector<1x8xf32> to vector<256x8xf32>
    %41 = arith.addf %39, %40 : vector<256x8xf32>
    %cst_74 = arith.constant 0.000000e+00 : f32
    %42 = vector.broadcast %cst_74 : f32 to vector<256x8xf32>
    %43 = arith.maximumf %41, %42 : vector<256x8xf32>
    %44 = vector.shape_cast %43 : vector<256x8xf32> to vector<1x16x16x8xf32>
    %c0_75 = arith.constant 0 : index
    %c1_76 = arith.constant 1 : index
    %c1_77 = arith.constant 1 : index
    %c0_78 = arith.constant 0 : index
    %45 = vector.load %arg7[%c0_75, %c1_76, %c1_77, %c0_78] : memref<1x18x18x8xf32, #tpu.memory_space<vmem>>, vector<1x16x16x8xf32>
    tpu.vector_store %arg7[%c0_75, %c1_76, %c1_77, %c0_78], %44 {strides = array<i32>} : memref<1x18x18x8xf32, #tpu.memory_space<vmem>>, vector<1x16x16x8xf32>,
    %c0_79 = arith.constant 0 : index
    %c0_80 = arith.constant 0 : index
    %46 = vector.load %arg4[%c0_79, %c0_80] : memref<72x8xbf16, #tpu.memory_space<vmem>>, vector<72x8xbf16>
    %c0_81 = arith.constant 0 : index
    %c0_82 = arith.constant 0 : index
    %47 = vector.load %arg5[%c0_81, %c0_82] : memref<1x8xf32, #tpu.memory_space<vmem>>, vector<1x8xf32>
    %c0_83 = arith.constant 0 : index
    %c0_84 = arith.constant 0 : index
    %c0_85 = arith.constant 0 : index
    %c0_86 = arith.constant 0 : index
    %48 = vector.load %arg7[%c0_83, %c0_84, %c0_85, %c0_86] : memref<1x18x18x8xf32, #tpu.memory_space<vmem>>, vector<1x16x16x8xf32>
    %49 = vector.shape_cast %48 : vector<1x16x16x8xf32> to vector<256x8xf32>
    %c0_87 = arith.constant 0 : index
    %c0_88 = arith.constant 0 : index
    %50 = vector.load %arg8[%c0_87, %c0_88] : memref<256x72xf32, #tpu.memory_space<vmem>>, vector<256x8xf32>
    tpu.vector_store %arg8[%c0_87, %c0_88], %49 {strides = array<i32>} : memref<256x72xf32, #tpu.memory_space<vmem>>, vector<256x8xf32>,
    %c0_89 = arith.constant 0 : index
    %c0_90 = arith.constant 0 : index
    %c1_91 = arith.constant 1 : index
    %c0_92 = arith.constant 0 : index
    %51 = vector.load %arg7[%c0_89, %c0_90, %c1_91, %c0_92] : memref<1x18x18x8xf32, #tpu.memory_space<vmem>>, vector<1x16x16x8xf32>
    %52 = vector.shape_cast %51 : vector<1x16x16x8xf32> to vector<256x8xf32>
    %c0_93 = arith.constant 0 : index
    %c8_94 = arith.constant 8 : index
    %53 = vector.load %arg8[%c0_93, %c8_94] : memref<256x72xf32, #tpu.memory_space<vmem>>, vector<256x8xf32>
    tpu.vector_store %arg8[%c0_93, %c8_94], %52 {strides = array<i32>} : memref<256x72xf32, #tpu.memory_space<vmem>>, vector<256x8xf32>,
    %c0_95 = arith.constant 0 : index
    %c0_96 = arith.constant 0 : index
    %c2_97 = arith.constant 2 : index
    %c0_98 = arith.constant 0 : index
    %54 = vector.load %arg7[%c0_95, %c0_96, %c2_97, %c0_98] : memref<1x18x18x8xf32, #tpu.memory_space<vmem>>, vector<1x16x16x8xf32>
    %55 = vector.shape_cast %54 : vector<1x16x16x8xf32> to vector<256x8xf32>
    %c0_99 = arith.constant 0 : index
    %c16_100 = arith.constant 16 : index
    %56 = vector.load %arg8[%c0_99, %c16_100] : memref<256x72xf32, #tpu.memory_space<vmem>>, vector<256x8xf32>
    tpu.vector_store %arg8[%c0_99, %c16_100], %55 {strides = array<i32>} : memref<256x72xf32, #tpu.memory_space<vmem>>, vector<256x8xf32>,
    %c0_101 = arith.constant 0 : index
    %c1_102 = arith.constant 1 : index
    %c0_103 = arith.constant 0 : index
    %c0_104 = arith.constant 0 : index
    %57 = vector.load %arg7[%c0_101, %c1_102, %c0_103, %c0_104] : memref<1x18x18x8xf32, #tpu.memory_space<vmem>>, vector<1x16x16x8xf32>
    %58 = vector.shape_cast %57 : vector<1x16x16x8xf32> to vector<256x8xf32>
    %c0_105 = arith.constant 0 : index
    %c24_106 = arith.constant 24 : index
    %59 = vector.load %arg8[%c0_105, %c24_106] : memref<256x72xf32, #tpu.memory_space<vmem>>, vector<256x8xf32>
    tpu.vector_store %arg8[%c0_105, %c24_106], %58 {strides = array<i32>} : memref<256x72xf32, #tpu.memory_space<vmem>>, vector<256x8xf32>,
    %c0_107 = arith.constant 0 : index
    %c1_108 = arith.constant 1 : index
    %c1_109 = arith.constant 1 : index
    %c0_110 = arith.constant 0 : index
    %60 = vector.load %arg7[%c0_107, %c1_108, %c1_109, %c0_110] : memref<1x18x18x8xf32, #tpu.memory_space<vmem>>, vector<1x16x16x8xf32>
    %61 = vector.shape_cast %60 : vector<1x16x16x8xf32> to vector<256x8xf32>
    %c0_111 = arith.constant 0 : index
    %c32_112 = arith.constant 32 : index
    %62 = vector.load %arg8[%c0_111, %c32_112] : memref<256x72xf32, #tpu.memory_space<vmem>>, vector<256x8xf32>
    tpu.vector_store %arg8[%c0_111, %c32_112], %61 {strides = array<i32>} : memref<256x72xf32, #tpu.memory_space<vmem>>, vector<256x8xf32>,
    %c0_113 = arith.constant 0 : index
    %c1_114 = arith.constant 1 : index
    %c2_115 = arith.constant 2 : index
    %c0_116 = arith.constant 0 : index
    %63 = vector.load %arg7[%c0_113, %c1_114, %c2_115, %c0_116] : memref<1x18x18x8xf32, #tpu.memory_space<vmem>>, vector<1x16x16x8xf32>
    %64 = vector.shape_cast %63 : vector<1x16x16x8xf32> to vector<256x8xf32>
    %c0_117 = arith.constant 0 : index
    %c40 = arith.constant 40 : index
    %65 = vector.load %arg8[%c0_117, %c40] : memref<256x72xf32, #tpu.memory_space<vmem>>, vector<256x8xf32>
    tpu.vector_store %arg8[%c0_117, %c40], %64 {strides = array<i32>} : memref<256x72xf32, #tpu.memory_space<vmem>>, vector<256x8xf32>,
    %c0_118 = arith.constant 0 : index
    %c2_119 = arith.constant 2 : index
    %c0_120 = arith.constant 0 : index
    %c0_121 = arith.constant 0 : index
    %66 = vector.load %arg7[%c0_118, %c2_119, %c0_120, %c0_121] : memref<1x18x18x8xf32, #tpu.memory_space<vmem>>, vector<1x16x16x8xf32>
    %67 = vector.shape_cast %66 : vector<1x16x16x8xf32> to vector<256x8xf32>
    %c0_122 = arith.constant 0 : index
    %c48 = arith.constant 48 : index
    %68 = vector.load %arg8[%c0_122, %c48] : memref<256x72xf32, #tpu.memory_space<vmem>>, vector<256x8xf32>
    tpu.vector_store %arg8[%c0_122, %c48], %67 {strides = array<i32>} : memref<256x72xf32, #tpu.memory_space<vmem>>, vector<256x8xf32>,
    %c0_123 = arith.constant 0 : index
    %c2_124 = arith.constant 2 : index
    %c1_125 = arith.constant 1 : index
    %c0_126 = arith.constant 0 : index
    %69 = vector.load %arg7[%c0_123, %c2_124, %c1_125, %c0_126] : memref<1x18x18x8xf32, #tpu.memory_space<vmem>>, vector<1x16x16x8xf32>
    %70 = vector.shape_cast %69 : vector<1x16x16x8xf32> to vector<256x8xf32>
    %c0_127 = arith.constant 0 : index
    %c56 = arith.constant 56 : index
    %71 = vector.load %arg8[%c0_127, %c56] : memref<256x72xf32, #tpu.memory_space<vmem>>, vector<256x8xf32>
    tpu.vector_store %arg8[%c0_127, %c56], %70 {strides = array<i32>} : memref<256x72xf32, #tpu.memory_space<vmem>>, vector<256x8xf32>,
    %c0_128 = arith.constant 0 : index
    %c2_129 = arith.constant 2 : index
    %c2_130 = arith.constant 2 : index
    %c0_131 = arith.constant 0 : index
    %72 = vector.load %arg7[%c0_128, %c2_129, %c2_130, %c0_131] : memref<1x18x18x8xf32, #tpu.memory_space<vmem>>, vector<1x16x16x8xf32>
    %73 = vector.shape_cast %72 : vector<1x16x16x8xf32> to vector<256x8xf32>
    %c0_132 = arith.constant 0 : index
    %c64 = arith.constant 64 : index
    %74 = vector.load %arg8[%c0_132, %c64] : memref<256x72xf32, #tpu.memory_space<vmem>>, vector<256x8xf32>
    tpu.vector_store %arg8[%c0_132, %c64], %73 {strides = array<i32>} : memref<256x72xf32, #tpu.memory_space<vmem>>, vector<256x8xf32>,
    %c0_133 = arith.constant 0 : index
    %c0_134 = arith.constant 0 : index
    %75 = vector.load %arg8[%c0_133, %c0_134] : memref<256x72xf32, #tpu.memory_space<vmem>>, vector<256x72xf32>
    %76 = arith.truncf %75 : vector<256x72xf32> to vector<256x72xbf16>
    %cst_135 = arith.constant dense<0.000000e+00> : vector<256x8xf32>
    %77 = tpu.matmul %76, %46, %cst_135 {dimension_numbers = #tpu.dot_dimension_numbers<[1], [0], [0], [1], [0, 0, 1, 1], [], []>} : vector<256x72xbf16>, vector<72x8xbf16>, vector<256x8xf32> -> vector<256x8xf32>
    %78 = vector.broadcast %47 : vector<1x8xf32> to vector<256x8xf32>
    %79 = arith.addf %77, %78 : vector<256x8xf32>
    %cst_136 = arith.constant 0.000000e+00 : f32
    %80 = vector.broadcast %cst_136 : f32 to vector<256x8xf32>
    %81 = arith.maximumf %79, %80 : vector<256x8xf32>
    %82 = vector.shape_cast %81 : vector<256x8xf32> to vector<1x8x2x16x8xf32>
    %83 = vector.extract_strided_slice %82 {offsets = [0, 0, 0, 0, 0], sizes = [1, 8, 1, 16, 8], strides = [1, 1, 1, 1, 1]} : vector<1x8x2x16x8xf32> to vector<1x8x1x16x8xf32>
    %84 = vector.shape_cast %83 : vector<1x8x1x16x8xf32> to vector<1x8x16x8xf32>
    %85 = vector.extract_strided_slice %82 {offsets = [0, 0, 1, 0, 0], sizes = [1, 8, 1, 16, 8], strides = [1, 1, 1, 1, 1]} : vector<1x8x2x16x8xf32> to vector<1x8x1x16x8xf32>
    %86 = vector.shape_cast %85 : vector<1x8x1x16x8xf32> to vector<1x8x16x8xf32>
    %87 = arith.maximumf %84, %86 : vector<1x8x16x8xf32>
    %88 = vector.shape_cast %87 : vector<1x8x16x8xf32> to vector<128x8xf32>
    %c0_137 = arith.constant 0 : index
    %c0_138 = arith.constant 0 : index
    %89 = vector.load %arg9[%c0_137, %c0_138] : memref<128x8xf32, #tpu.memory_space<vmem>>, vector<128x8xf32>
    tpu.vector_store %arg9[%c0_137, %c0_138], %88 {strides = array<i32>} : memref<128x8xf32, #tpu.memory_space<vmem>>, vector<128x8xf32>,
    %c0_139 = arith.constant 0 : index
    %c0_140 = arith.constant 0 : index
    %90 = tpu.strided_load %arg9[%c0_139, %c0_140] {strides = array<i32: 2, 1>} : memref<128x8xf32, #tpu.memory_space<vmem>>, vector<64x8xf32>
    %c1_141 = arith.constant 1 : index
    %c0_142 = arith.constant 0 : index
    %91 = tpu.strided_load %arg9[%c1_141, %c0_142] {strides = array<i32: 2, 1>} : memref<128x8xf32, #tpu.memory_space<vmem>>, vector<64x8xf32>
    %92 = arith.maximumf %90, %91 : vector<64x8xf32>
    %93 = vector.shape_cast %92 : vector<64x8xf32> to vector<1x64x8xf32>
    %c0_143 = arith.constant 0 : index
    %c0_144 = arith.constant 0 : index
    %c0_145 = arith.constant 0 : index
    %94 = vector.load %arg6[%c0_143, %c0_144, %c0_145] : memref<1x64x8xf32, #tpu.memory_space<vmem>>, vector<1x64x8xf32>
    tpu.vector_store %arg6[%c0_143, %c0_144, %c0_145], %93 {strides = array<i32>} : memref<1x64x8xf32, #tpu.memory_space<vmem>>, vector<1x64x8xf32>,
    return
  }
  func.func @transform_0(%arg0: i32) -> (i32, i32, i32, i32) {
    %c0_i32 = arith.constant 0 : i32
    %c0_i32_0 = arith.constant 0 : i32
    %c0_i32_1 = arith.constant 0 : i32
    %c0_i32_2 = arith.constant 0 : i32
    return %arg0, %c0_i32, %c0_i32_0, %c0_i32_1 : i32, i32, i32, i32
  }
  func.func @transform_1(%arg0: i32) -> (i32, i32) {
    %c0_i32 = arith.constant 0 : i32
    %c0_i32_0 = arith.constant 0 : i32
    %c0_i32_1 = arith.constant 0 : i32
    return %c0_i32, %c0_i32_0 : i32, i32
  }
  func.func @transform_2(%arg0: i32) -> (i32, i32) {
    %c0_i32 = arith.constant 0 : i32
    %c0_i32_0 = arith.constant 0 : i32
    %c0_i32_1 = arith.constant 0 : i32
    return %c0_i32, %c0_i32_0 : i32, i32
  }
  func.func @transform_3(%arg0: i32) -> (i32, i32) {
    %c0_i32 = arith.constant 0 : i32
    %c0_i32_0 = arith.constant 0 : i32
    %c0_i32_1 = arith.constant 0 : i32
    return %c0_i32, %c0_i32_0 : i32, i32
  }
  func.func @transform_4(%arg0: i32) -> (i32, i32) {
    %c0_i32 = arith.constant 0 : i32
    %c0_i32_0 = arith.constant 0 : i32
    %c0_i32_1 = arith.constant 0 : i32
    return %c0_i32, %c0_i32_0 : i32, i32
  }
  func.func @transform_5(%arg0: i32) -> (i32, i32, i32) {
    %c0_i32 = arith.constant 0 : i32
    %c0_i32_0 = arith.constant 0 : i32
    %c0_i32_1 = arith.constant 0 : i32
    return %arg0, %c0_i32, %c0_i32_0 : i32, i32, i32
  }
}

module attributes {stable_mosaic.version = 11 : i64} {
  func.func @classifier_kernel(%arg0: i32, %arg1: memref<2x512xf32, #tpu.memory_space<vmem>>, %arg2: memref<512x128xbf16, #tpu.memory_space<vmem>>, %arg3: memref<1x128xf32, #tpu.memory_space<vmem>>, %arg4: memref<128x128xbf16, #tpu.memory_space<vmem>>, %arg5: memref<1x128xf32, #tpu.memory_space<vmem>>, %arg6: memref<2x128xf32, #tpu.memory_space<vmem>>) attributes {dimension_semantics = [#tpu.dimension_semantics<parallel>], iteration_bounds = array<i64: 1>, scalar_prefetch = 0 : i64, scratch_operands = 0 : i64, tpu.core_type = #tpu.core_type<tc>, window_params = [{transform_indices = @transform_0, window_bounds = array<i64: 2, 512>}, {pipeline_mode = #tpu.pipeline_mode<synchronous>, transform_indices = @transform_1, window_bounds = array<i64: 512, 128>}, {pipeline_mode = #tpu.pipeline_mode<synchronous>, transform_indices = @transform_2, window_bounds = array<i64: 1, 128>}, {pipeline_mode = #tpu.pipeline_mode<synchronous>, transform_indices = @transform_3, window_bounds = array<i64: 128, 128>}, {pipeline_mode = #tpu.pipeline_mode<synchronous>, transform_indices = @transform_4, window_bounds = array<i64: 1, 128>}, {transform_indices = @transform_5, window_bounds = array<i64: 2, 128>}]} {
    %c0 = arith.constant 0 : index
    %c0_0 = arith.constant 0 : index
    %0 = vector.load %arg1[%c0, %c0_0] : memref<2x512xf32, #tpu.memory_space<vmem>>, vector<2x512xf32>
    %c0_1 = arith.constant 0 : index
    %c0_2 = arith.constant 0 : index
    %1 = vector.load %arg2[%c0_1, %c0_2] : memref<512x128xbf16, #tpu.memory_space<vmem>>, vector<512x128xbf16>
    %c0_3 = arith.constant 0 : index
    %c0_4 = arith.constant 0 : index
    %2 = vector.load %arg3[%c0_3, %c0_4] : memref<1x128xf32, #tpu.memory_space<vmem>>, vector<1x128xf32>
    %3 = arith.truncf %0 : vector<2x512xf32> to vector<2x512xbf16>
    %cst = arith.constant dense<0.000000e+00> : vector<2x128xf32>
    %4 = tpu.matmul %3, %1, %cst {dimension_numbers = #tpu.dot_dimension_numbers<[1], [0], [0], [1], [0, 0, 1, 1], [], []>} : vector<2x512xbf16>, vector<512x128xbf16>, vector<2x128xf32> -> vector<2x128xf32>
    %5 = vector.broadcast %2 : vector<1x128xf32> to vector<2x128xf32>
    %6 = arith.addf %4, %5 : vector<2x128xf32>
    %cst_5 = arith.constant 0.000000e+00 : f32
    %7 = vector.broadcast %cst_5 : f32 to vector<2x128xf32>
    %8 = arith.maximumf %6, %7 : vector<2x128xf32>
    %c0_6 = arith.constant 0 : index
    %c0_7 = arith.constant 0 : index
    %9 = vector.load %arg4[%c0_6, %c0_7] : memref<128x128xbf16, #tpu.memory_space<vmem>>, vector<128x128xbf16>
    %c0_8 = arith.constant 0 : index
    %c0_9 = arith.constant 0 : index
    %10 = vector.load %arg5[%c0_8, %c0_9] : memref<1x128xf32, #tpu.memory_space<vmem>>, vector<1x128xf32>
    %11 = arith.truncf %8 : vector<2x128xf32> to vector<2x128xbf16>
    %cst_10 = arith.constant dense<0.000000e+00> : vector<2x128xf32>
    %12 = tpu.matmul %11, %9, %cst_10 {dimension_numbers = #tpu.dot_dimension_numbers<[1], [0], [0], [1], [0, 0, 1, 1], [], []>} : vector<2x128xbf16>, vector<128x128xbf16>, vector<2x128xf32> -> vector<2x128xf32>
    %13 = vector.broadcast %10 : vector<1x128xf32> to vector<2x128xf32>
    %14 = arith.addf %12, %13 : vector<2x128xf32>
    %c0_11 = arith.constant 0 : index
    %c0_12 = arith.constant 0 : index
    %15 = vector.load %arg6[%c0_11, %c0_12] : memref<2x128xf32, #tpu.memory_space<vmem>>, vector<2x128xf32>
    tpu.vector_store %arg6[%c0_11, %c0_12], %14 {strides = array<i32>} : memref<2x128xf32, #tpu.memory_space<vmem>>, vector<2x128xf32>,
    return
  }
  func.func @transform_0(%arg0: i32) -> (i32, i32) {
    %c0_i32 = arith.constant 0 : i32
    %c0_i32_0 = arith.constant 0 : i32
    return %arg0, %c0_i32 : i32, i32
  }
  func.func @transform_1(%arg0: i32) -> (i32, i32) {
    %c0_i32 = arith.constant 0 : i32
    %c0_i32_0 = arith.constant 0 : i32
    %c0_i32_1 = arith.constant 0 : i32
    return %c0_i32, %c0_i32_0 : i32, i32
  }
  func.func @transform_2(%arg0: i32) -> (i32, i32) {
    %c0_i32 = arith.constant 0 : i32
    %c0_i32_0 = arith.constant 0 : i32
    %c0_i32_1 = arith.constant 0 : i32
    return %c0_i32, %c0_i32_0 : i32, i32
  }
  func.func @transform_3(%arg0: i32) -> (i32, i32) {
    %c0_i32 = arith.constant 0 : i32
    %c0_i32_0 = arith.constant 0 : i32
    %c0_i32_1 = arith.constant 0 : i32
    return %c0_i32, %c0_i32_0 : i32, i32
  }
  func.func @transform_4(%arg0: i32) -> (i32, i32) {
    %c0_i32 = arith.constant 0 : i32
    %c0_i32_0 = arith.constant 0 : i32
    %c0_i32_1 = arith.constant 0 : i32
    return %c0_i32, %c0_i32_0 : i32, i32
  }
  func.func @transform_5(%arg0: i32) -> (i32, i32) {
    %c0_i32 = arith.constant 0 : i32
    %c0_i32_0 = arith.constant 0 : i32
    return %arg0, %c0_i32 : i32, i32
  }
}

</mosaic_0001>

<bundles_post_ra>
// kernel: your_code_net_forward.3
= control target key start
LH: loop header
LB: loop body
LE: loop exit
PB: predicated region body
PF: predicated region fallthrough
CT: control target
= control target key end

     0   :  { %v93_v29 = vlaneseq  ;;  %v702_v35 = vmov 1983009808   ;;  %v703_v37 = vmov 0.0   ;;  %s868_s0 = inlined_call_operand.vmem [shape: f32[2,512], index: 0, kind: input, shape index: {}]   ;;  %s869_s1 = inlined_call_operand.vmem [shape: bf16[512,128], index: 1, kind: input, shape index: {}]   ;;  %s870_s2 = inlined_call_operand.vmem [shape: f32[1,128], index: 2, kind: input, shape index: {}]   ;;  %s871_s3 = inlined_call_operand.vmem [shape: bf16[128,128], index: 3, kind: input, shape index: {}]   ;;  %s872_s4 = inlined_call_operand.vmem [shape: f32[1,128], index: 4, kind: input, shape index: {}]   ;;  %s873_s5 = inlined_call_operand.hbm [shape: f32[2,128], index: 5, kind: output, shape index: {}]  }
   0x1   :  { %v639_v0 = vld [vmem:[%s869_s1 + $0x78] sm:$0xff]   ;;  %v643_v4 = vld [vmem:[%s869_s1 + $0x70] sm:$0xff]   ;;  %v647_v8 = vld [vmem:[%s869_s1 + $0x68] sm:$0xff]   ;;  %v91_v36 = vunpack.c.l.s4 %v702_v35 }
   0x2   :  { %v640_v1 = vld [vmem:[%s869_s1 + $0xf8] sm:$0xff]   ;;  %562 = vmatprep.subr.bf16.mxu0 %v639_v0  ;;  %v644_v5 = vld [vmem:[%s869_s1 + $0xf0] sm:$0xff]   ;;  %v648_v9 = vld [vmem:[%s869_s1 + $0xe8] sm:$0xff]   ;;  %v94_v34 = vshrl.u32 %v93_v29, 7 }
   0x3   :  { %v641_v2 = vld [vmem:[%s869_s1 + $0x38] sm:$0xff]   ;;  %584 = vmatprep.subr.bf16.mxu1 %v640_v1  ;;  %v645_v6 = vld [vmem:[%s869_s1 + $0x30] sm:$0xff]   ;;  %v649_v10 = vld [vmem:[%s869_s1 + $0x28] sm:$0xff]   ;;  %v92_v38 = vunpack.c.0.s8 %v91_v36 }
   0x4   :  { %v642_v3 = vld [vmem:[%s869_s1 + $0xb8] sm:$0xff]   ;;  %563 = vmatpush3.bf16.msra.mxu0 %v641_v2  ;;  %v646_v7 = vld [vmem:[%s869_s1 + $0xb0] sm:$0xff]   ;;  %v650_v11 = vld [vmem:[%s869_s1 + $0xa8] sm:$0xff]  }
   0x5   :  { %585 = vmatpush3.bf16.msra.mxu1 %v642_v3  ;;  %564 = vmatprep.subr.bf16.mxu0 %v643_v4  ;;  %v651_v12 = vld [vmem:[%s869_s1 + $0x60] sm:$0xff]   ;;  %v655_v16 = vld [vmem:[%s869_s1 + $0x58] sm:$0xff]   ;;  %v659_v20 = vld [vmem:[%s869_s1 + $0x50] sm:$0xff]   ;;  %v95_v40 = vsub.s32 %v92_v38, %v94_v34 }
   0x6   :  { %586 = vmatprep.subr.bf16.mxu1 %v644_v5  ;;  %v652_v13 = vld [vmem:[%s869_s1 + $0xe0] sm:$0xff]   ;;  %v656_v17 = vld [vmem:[%s869_s1 + $0xd8] sm:$0xff]   ;;  %v660_v21 = vld [vmem:[%s869_s1 + $0xd0] sm:$0xff]  }
   0x7   :  { %v653_v14 = vld [vmem:[%s869_s1 + $0x20] sm:$0xff]   ;;  %v657_v18 = vld [vmem:[%s869_s1 + $0x18] sm:$0xff]   ;;  %v661_v22 = vld [vmem:[%s869_s1 + $0x10] sm:$0xff]  }
   0x8   :  { %565 = vmatpush3.bf16.msra.mxu0 %v645_v6  ;;  %v654_v15 = vld [vmem:[%s869_s1 + $0xa0] sm:$0xff]   ;;  %v658_v19 = vld [vmem:[%s869_s1 + $0x98] sm:$0xff]   ;;  %v662_v23 = vld [vmem:[%s869_s1 + $0x90] sm:$0xff]  }
   0x9   :  { %587 = vmatpush3.bf16.msra.mxu1 %v646_v7  ;;  %566 = vmatprep.subr.bf16.mxu0 %v647_v8  ;;  %v663_v24 = vld [vmem:[%s869_s1 + $0x48] sm:$0xff]   ;;  %v667_v28 = vld [vmem:[%s869_s1 + $0x40] sm:$0xff]  }
   0xa   :  { %588 = vmatprep.subr.bf16.mxu1 %v648_v9  ;;  %v664_v25 = vld [vmem:[%s869_s1 + $0xc8] sm:$0xff]   ;;  %v668_v30 = vld [vmem:[%s869_s1 + $0xc0] sm:$0xff]  }
   0xb   :  { %v665_v26 = vld [vmem:[%s869_s1 + $0x8] sm:$0xff]   ;;  %v669_v31 = vld [vmem:[%s869_s1] sm:$0xff]  }
   0xc   :  { %567 = vmatpush3.bf16.msra.mxu0 %v649_v10  ;;  %v666_v27 = vld [vmem:[%s869_s1 + $0x88] sm:$0xff]   ;;  %v670_v32 = vld [vmem:[%s869_s1 + $0x80] sm:$0xff]  }
   0xd   :  { %589 = vmatpush3.bf16.msra.mxu1 %v650_v11  ;;  %568 = vmatprep.subr.bf16.mxu0 %v651_v12  ;;  %v22_v33 = vld [vmem:[%s868_s0] sm:$0xff] }
   0xe   :  { %590 = vmatprep.subr.bf16.mxu1 %v652_v13  ;;  %v89_v39 = vcombine.high %v22_v33, %v22_v33  ;;  %v96_v41 = vrot.slane %v22_v33, %v95_v40 }
  0x10   :  { %569 = vmatpush3.bf16.msra.mxu0 %v653_v14  ;;  %v103_v42 = vrot.slane %v89_v39, %v95_v40 }
  0x11   :  { %591 = vmatpush3.bf16.msra.mxu1 %v654_v15  ;;  %570 = vmatprep.subr.bf16.mxu0 %v655_v16 }
  0x12   :  { %592 = vmatprep.subr.bf16.mxu1 %v656_v17 }
  0x14   :  { %571 = vmatpush3.bf16.msra.mxu0 %v657_v18 }
  0x15   :  { %593 = vmatpush3.bf16.msra.mxu1 %v658_v19  ;;  %572 = vmatprep.subr.bf16.mxu0 %v659_v20 }
  0x16   :  { %594 = vmatprep.subr.bf16.mxu1 %v660_v21 }
  0x18   :  { %573 = vmatpush3.bf16.msra.mxu0 %v661_v22 }
  0x19   :  { %595 = vmatpush3.bf16.msra.mxu1 %v662_v23  ;;  %574 = vmatprep.subr.bf16.mxu0 %v663_v24 }
  0x1a   :  { %596 = vmatprep.subr.bf16.mxu1 %v664_v25 }
  0x1c   :  { %575 = vmatpush3.bf16.msra.mxu0 %v665_v26 }
  0x1d   :  { %597 = vmatpush3.bf16.msra.mxu1 %v666_v27  ;;  %576 = vmatprep.subr.bf16.mxu0 %v667_v28 }
  0x1e   :  { %598 = vmatprep.subr.bf16.mxu1 %v668_v30 }
  0x20   :  { %577 = vmatpush3.bf16.msra.mxu0 %v669_v31 }
  0x21   :  { %599 = vmatpush3.bf16.msra.mxu1 %v670_v32  ;;  %615 = vmatprep.subr.bf16.mxu0 %v703_v37 }
  0x22   :  { %10 = vsyncpa [#allocation3], 0  ;;  %v104_v43 = vcombine.high %v96_v41, %v96_v41  ;;  %v105_v44 = vcombine.high %v103_v42, %v103_v42  ;;  %v110_v45 = vpack.c.bf16 %v96_v41, %v96_v41  ;;  %v112_v46 = vpack.c.bf16 %v103_v42, %v103_v42  ;;  %v672_v49 = vld [vmem:[%s871_s3 + $0x38] sm:$0xff]   ;;  %v673_v50 = vld [vmem:[%s871_s3 + $0x30] sm:$0xff]   ;;  %s705_s26 = smov [#allocation2]  }
  0x23   :  { %v674_v51 = vld [vmem:[%s871_s3 + $0x28] sm:$0xff]   ;;  %v675_v52 = vld [vmem:[%s871_s3 + $0x20] sm:$0xff]   ;;  %v676_v53 = vld [vmem:[%s871_s3 + $0x18] sm:$0xff]   ;;  %vm704_vm0 = vmmov 0   ;;  %s512_s27 = sshll.u32 %s705_s26, 4  ;;  %s513_s27 = int_to_ptr.vmem [resolvable:$true] %s512_s27 }
  0x24   :  { %v111_v47 = vpack.c.bf16 %v104_v43, %v104_v43  ;;  %v113_v48 = vpack.c.bf16 %v105_v44, %v105_v44  ;;  %v677_v54 = vld [vmem:[%s871_s3 + $0x10] sm:$0xff]   ;;  %v678_v55 = vld [vmem:[%s871_s3 + $0x8] sm:$0xff]   ;;  %v679_v56 = vld [vmem:[%s871_s3] sm:$0xff]   ;;  %p685_p1 = scmp.lt.s32.totalorder %s513_s27, %s513_s27 }
  0x25   :  { %v520_v59 = vld [vmem:[%s870_s2] ss:$0 sm:$0xff]  ;;  %s680_s2 = scalar_lea.vmem %s513_s27, 32 }
  0x26   :  { %344 = vmatprep.mubr.bf16.mxu0 %v111_v47  ;;  %384 = vmatprep.mubr.bf16.mxu1 %v113_v48  ;;  %v553_v8 = vld [vmem:[%s872_s4] ss:$0 sm:$0xff]  ;;  %p681_p0 = scmp.ne.s32.totalorder %s513_s27, %s680_s2  ;;  %p686_p2 = scmp.lt.s32.totalorder %s680_s2, %s680_s2 }
  0x27   :  { %345 = vmatmul.mubr.bf16.vlgmr.msra.gmra.mxu0 %v110_v45  ;;  %385 = vmatmul.mubr.bf16.vlgmr.msra.gmra.mxu1 %v112_v46 }
  0x28   :  { %616 = vmatpush3.bf16.msra.mxu0 %v672_v49  ;;  %631 = vmatprep.mubr.msk.bf16.mxu0 %vm704_vm0, %v703_v37  ;;  %p687_p3 = por %p686_p2, %p685_p1 }
  0x29   :  { %617 = vmatprep.subr.bf16.mxu0 %v703_v37 }
  0x2a   :  { %p688_p4 = pnand %p687_p3, %p681_p0 }
  0x2c   :  { %618 = vmatpush3.bf16.msra.mxu0 %v673_v50 }
  0x2d   :  { %619 = vmatprep.subr.bf16.mxu0 %v703_v37 }
  0x30   :  { %620 = vmatpush3.bf16.msra.mxu0 %v674_v51 }
  0x31   :  { %621 = vmatprep.subr.bf16.mxu0 %v703_v37 }
  0x34   :  { %622 = vmatpush3.bf16.msra.mxu0 %v675_v52 }
  0x35   :  { %623 = vmatprep.subr.bf16.mxu0 %v703_v37 }
  0x38   :  { %624 = vmatpush3.bf16.msra.mxu0 %v676_v53 }
  0x39   :  { %625 = vmatprep.subr.bf16.mxu0 %v703_v37 }
  0x3c   :  { %626 = vmatpush3.bf16.msra.mxu0 %v677_v54 }
  0x3d   :  { %627 = vmatprep.subr.bf16.mxu0 %v703_v37 }
  0x40   :  { %628 = vmatpush3.bf16.msra.mxu0 %v678_v55 }
  0x41   :  { %629 = vmatprep.subr.bf16.mxu0 %v703_v37 }
  0x44   :  { %630 = vmatpush3.bf16.msra.mxu0 %v679_v56 }
  0xe7   :  { %v578_v57 = vpop.f32.mrf.mxu0  ;;  %v600_v58 = vpop.f32.mrf.mxu1 }
  0xe9   :  { %v579_v60 = vpop.f32.mrf.mxu0  ;;  %v601_v61 = vpop.f32.mrf.mxu1 }
  0xea   :  { %v580_v62 = vadd.f32 %v579_v60, %v578_v57  ;;  %v602_v2 = vadd.f32 %v601_v61, %v600_v58 }
  0xeb   :  { %v581_v63 = vpop.f32.mrf.mxu0  ;;  %v603_v0 = vpop.f32.mrf.mxu1 }
  0xec   :  { %v347_v1 = vadd.f32 %v580_v62, %v520_v59 }
  0xed   :  { %v582_v3 = vpop.f32.mrf.mxu0  ;;  %v604_v4 = vpop.f32.mrf.mxu1 }
  0xee   :  { %v387_v5 = vadd.f32 %v602_v2, %v347_v1 }
  0xf0   :  { %v392_v6 = vmax.f32 %v387_v5, 0.0 }
  0xf2   :  { %v410_v7 = vpack.c.bf16 %v392_v6, %v392_v6 }
  0xf4   :  { %632 = vmatmul.mubr.bf16.vlgmr.msra.gmra.mxu0 %v410_v7 }
 0x1b4   :  { %v499_v9 = vpop.f32.mrf.mxu0 }
 0x1b5   :  { %v500_v10 = vadd.f32 %v553_v8, %v499_v9 }
 0x1b6   :  { %v633_v11 = vpop.f32.mrf.mxu0 }
 0x1b7   :  { %505 = vst [vmem:[#allocation2] sm:$0x3] %v500_v10 }
 0x1b8   :  { %v502_v12 = vpop.f32.mrf.mxu0 }
 0x1b9   :  { %691 = shalt.err (!%p688_p4)
}
 0x1ba   :  { %515 = dma.vmem_to_hbm [thread:$0]  %s513_s27, 32, %s873_s5, [#allocation3]   ;;  %v634_v13 = vpop.f32.mrf.mxu0 }
 0x1bb   :  { %700 = dma.done.wait [#allocation3], 32  }
 0x1bc   :  { %701 = vsyncadd [#allocation3], 4294967264 }
 0x1bd   :  { %519 = vsyncpa [#allocation3], 1 }

// kernel: your_code_net_forward.2
= control target key start
LH: loop header
LB: loop body
LE: loop exit
PB: predicated region body
PF: predicated region fallthrough
CT: control target
= control target key end

     0   :  { %s4632_s18 = smov 0   ;;  %s6708_s0 = inlined_call_operand.vmem [shape: f32[2,16,16,4], index: 0, kind: input, shape index: {}]   ;;  %s6709_s1 = inlined_call_operand.vmem [shape: bf16[36,8], index: 1, kind: input, shape index: {}]   ;;  %s6710_s2 = inlined_call_operand.vmem [shape: f32[1,8], index: 2, kind: input, shape index: {}]   ;;  %s6711_s3 = inlined_call_operand.vmem [shape: bf16[72,8], index: 3, kind: input, shape index: {}]   ;;  %s6712_s4 = inlined_call_operand.vmem [shape: f32[1,8], index: 4, kind: input, shape index: {}]   ;;  %s6713_s5 = inlined_call_operand.vmem [shape: f32[2,64,8], index: 5, kind: output, shape index: {}]  }
   0x1 LB: > { %s4375_s19 = sadd.s32 4294967295, %s4587_s18   ;;  %p4379_p0 = scmp.ge.s32.totalorder %s4587_s18, 1  ;;  %s4587_s18 = sphi %s4632_s18, %s15_s18  }
   0x2   : > { %p187_p1 = scmp.lt.s32.totalorder %s4587_s18, 3 }
   0x4   : > { %p188_p2 = pnand %p4379_p0, %p187_p1 }
   0x6   : > { %191 = sbr.rel (%p188_p2) target bundleno = 1672 (0x688), region = 40 }
   0xb   : > { %vm226_vm0 = vcmask 64512   ;;  %p215_p3 = scmp.lt.s32.totalorder %s4375_s19, 1  ;;  %vm229_vm1 = vcmask 58368   ;;  %v4589_v0 = vmov 0.0   ;;  %vm236_vm2 = vcmask 57344   ;;  %s4590_s24 = smov 4  }
   0xc   : > { %227 = vst.msk [vmem:[#allocation2] sm:$0xff] %vm226_vm0, %v4589_v0  ;;  %228 = vst.msk [vmem:[#allocation2 + $0x8] sm:$0xff] %vm226_vm0, %v4589_v0  ;;  %vm301_vm3 = vcmask 31744   ;;  %s4591_s25 = smov 8   ;;  %vm564_vm4 = vcmask 64544   ;;  %s4592_s26 = smov 12  }
   0xd   : > { %232 = vst.msk [vmem:[#allocation2 + $0x198] sm:$0xff] %vm226_vm0, %v4589_v0  ;;  %233 = vst.msk [vmem:[#allocation2 + $0x1a0] sm:$0xff] %vm226_vm0, %v4589_v0  ;;  %s6805_s19 = smov (!%p215_p3, %s4375_s19), 1  ;;  %vm757_vm5 = vcmask 97344   ;;  %s4593_s27 = smov 16   ;;  %vm950_vm6 = vcmask 130144  }
   0xe   : > { %230 = vst.msk [vmem:[#allocation2 + $0x10] sm:$0x3] %vm229_vm1, %v4589_v0  ;;  %234 = vst.msk [vmem:[#allocation2 + $0x1a8] sm:$0x3] %vm229_vm1, %v4589_v0  ;;  %s4428_s20 = sshll.u32 %s6805_s19, 8  ;;  %s4594_s28 = smov 20  }
   0xf   : > { %253 = vst.msk [vmem:[#allocation2 + $0x29] sm:$0x1] %vm236_vm2, %v4589_v0  ;;  %237 = vst.msk [vmem:[#allocation2 + $0x18] sm:$0x1] %vm236_vm2, %v4589_v0  ;;  %s4682_s23 = scalar_lea.vmem %s6708_s0, %s4428_s20  ;;  %vm1143_vm7 = vcmask 162944   ;;  %s4595_s29 = smov 24  }
  0x10   : > { %238 = vst.msk [vmem:[#allocation2 + $0x30] sm:$0x1] %vm236_vm2, %v4589_v0  ;;  %239 = vst.msk [vmem:[#allocation2 + $0x48] sm:$0x1] %vm236_vm2, %v4589_v0  ;;  %v269_v1 = vld [vmem:[%s4682_s23] sm:$0xff]  ;;  %v270_v2 = vld [vmem:[%s4682_s23 + $0x8] sm:$0xff] }
  0x11   : > { %240 = vst.msk [vmem:[#allocation2 + $0x60] sm:$0x1] %vm236_vm2, %v4589_v0  ;;  %241 = vst.msk [vmem:[#allocation2 + $0x78] sm:$0x1] %vm236_vm2, %v4589_v0  ;;  %v271_v3 = vld [vmem:[%s4682_s23 + $0x10] sm:$0xff]  ;;  %v272_v4 = vld [vmem:[%s4682_s23 + $0x18] sm:$0xff] }
  0x12   : > { %242 = vst.msk [vmem:[#allocation2 + $0x90] sm:$0x1] %vm236_vm2, %v4589_v0  ;;  %243 = vst.msk [vmem:[#allocation2 + $0xa8] sm:$0x1] %vm236_vm2, %v4589_v0  ;;  %v273_v5 = vld [vmem:[%s4682_s23 + $0x20] sm:$0xff]  ;;  %v274_v6 = vld [vmem:[%s4682_s23 + $0x28] sm:$0xff] }
  0x13   : > { %244 = vst.msk [vmem:[#allocation2 + $0xc0] sm:$0x1] %vm236_vm2, %v4589_v0  ;;  %245 = vst.msk [vmem:[#allocation2 + $0xd8] sm:$0x1] %vm236_vm2, %v4589_v0  ;;  %v404_v7 = vld [vmem:[#allocation2 + $0x1] sm:$0xff]  ;;  %v275_v9 = vld [vmem:[%s4682_s23 + $0x30] sm:$0xff] }
  0x14   : > { %246 = vst.msk [vmem:[#allocation2 + $0xf0] sm:$0x1] %vm236_vm2, %v4589_v0  ;;  %247 = vst.msk [vmem:[#allocation2 + $0x108] sm:$0x1] %vm236_vm2, %v4589_v0  ;;  %468 = vrot.lane.b32.xlu0 %v404_v7, %s4590_s24  ;;  %v276_v10 = vld [vmem:[%s4682_s23 + $0x38] sm:$0xff]  ;;  %v277_v11 = vld [vmem:[%s4682_s23 + $0x40] sm:$0xff] }
  0x15   : > { %248 = vst.msk [vmem:[#allocation2 + $0x120] sm:$0x1] %vm236_vm2, %v4589_v0  ;;  %249 = vst.msk [vmem:[#allocation2 + $0x138] sm:$0x1] %vm236_vm2, %v4589_v0  ;;  %v405_v8 = vld [vmem:[#allocation2 + $0x9] sm:$0xff]  ;;  %v280_v14 = vld [vmem:[%s4682_s23 + $0x58] sm:$0xff] }
  0x16   : > { %250 = vst.msk [vmem:[#allocation2 + $0x150] sm:$0x1] %vm236_vm2, %v4589_v0  ;;  %251 = vst.msk [vmem:[#allocation2 + $0x168] sm:$0x1] %vm236_vm2, %v4589_v0  ;;  %v278_v12 = vld [vmem:[%s4682_s23 + $0x48] sm:$0xff]  ;;  %v279_v13 = vld [vmem:[%s4682_s23 + $0x50] sm:$0xff] }
  0x17   : > { %252 = vst.msk [vmem:[#allocation2 + $0x180] sm:$0x1] %vm236_vm2, %v4589_v0  ;;  %254 = vst.msk [vmem:[#allocation2 + $0x41] sm:$0x1] %vm236_vm2, %v4589_v0  ;;  %v281_v15 = vld [vmem:[%s4682_s23 + $0x60] sm:$0xff]  ;;  %v282_v16 = vld [vmem:[%s4682_s23 + $0x68] sm:$0xff] }
  0x18   : > { %255 = vst.msk [vmem:[#allocation2 + $0x59] sm:$0x1] %vm236_vm2, %v4589_v0  ;;  %256 = vst.msk [vmem:[#allocation2 + $0x71] sm:$0x1] %vm236_vm2, %v4589_v0  ;;  %v283_v17 = vld [vmem:[%s4682_s23 + $0x70] sm:$0xff]  ;;  %v284_v18 = vld [vmem:[%s4682_s23 + $0x78] sm:$0xff]  ;;  %470 = vrot.lane.b32.xlu0 %v405_v8, %s4590_s24 }
  0x19   : > { %257 = vst.msk [vmem:[#allocation2 + $0x89] sm:$0x1] %vm236_vm2, %v4589_v0  ;;  %258 = vst.msk [vmem:[#allocation2 + $0xa1] sm:$0x1] %vm236_vm2, %v4589_v0  ;;  %v285_v19 = vld [vmem:[%s4682_s23 + $0x80] sm:$0xff]  ;;  %v286_v20 = vld [vmem:[%s4682_s23 + $0x88] sm:$0xff] }
  0x1a   : > { %259 = vst.msk [vmem:[#allocation2 + $0xb9] sm:$0x1] %vm236_vm2, %v4589_v0  ;;  %260 = vst.msk [vmem:[#allocation2 + $0xd1] sm:$0x1] %vm236_vm2, %v4589_v0  ;;  %v287_v21 = vld [vmem:[%s4682_s23 + $0x90] sm:$0xff]  ;;  %v288_v22 = vld [vmem:[%s4682_s23 + $0x98] sm:$0xff] }
  0x1b   : > { %261 = vst.msk [vmem:[#allocation2 + $0xe9] sm:$0x1] %vm236_vm2, %v4589_v0  ;;  %262 = vst.msk [vmem:[#allocation2 + $0x101] sm:$0x1] %vm236_vm2, %v4589_v0  ;;  %v289_v23 = vld [vmem:[%s4682_s23 + $0xa0] sm:$0xff]  ;;  %v290_v24 = vld [vmem:[%s4682_s23 + $0xa8] sm:$0xff] }
  0x1c   : > { %263 = vst.msk [vmem:[#allocation2 + $0x119] sm:$0x1] %vm236_vm2, %v4589_v0  ;;  %264 = vst.msk [vmem:[#allocation2 + $0x131] sm:$0x1] %vm236_vm2, %v4589_v0  ;;  %v291_v28 = vld [vmem:[%s4682_s23 + $0xb0] sm:$0xff]  ;;  %v292_v29 = vld [vmem:[%s4682_s23 + $0xb8] sm:$0xff] }
  0x1d   : > { %265 = vst.msk [vmem:[#allocation2 + $0x149] sm:$0x1] %vm236_vm2, %v4589_v0  ;;  %266 = vst.msk [vmem:[#allocation2 + $0x161] sm:$0x1] %vm236_vm2, %v4589_v0  ;;  %v293_v33 = vld [vmem:[%s4682_s23 + $0xc0] sm:$0xff]  ;;  %v294_v34 = vld [vmem:[%s4682_s23 + $0xc8] sm:$0xff] }
  0x1e   : > { %267 = vst.msk [vmem:[#allocation2 + $0x179] sm:$0x1] %vm236_vm2, %v4589_v0  ;;  %268 = vst.msk [vmem:[#allocation2 + $0x191] sm:$0x1] %vm236_vm2, %v4589_v0  ;;  %v295_v35 = vld [vmem:[%s4682_s23 + $0xd0] sm:$0xff]  ;;  %v296_v36 = vld [vmem:[%s4682_s23 + $0xd8] sm:$0xff] }
  0x1f   : > { %302 = vst.msk [vmem:[#allocation2 + $0x19] sm:$0xff] %vm301_vm3, %v269_v1  ;;  %303 = vst.msk [vmem:[#allocation2 + $0x21] sm:$0xff] %vm301_vm3, %v270_v2  ;;  %v297_v37 = vld [vmem:[%s4682_s23 + $0xe0] sm:$0xff]  ;;  %v298_v38 = vld [vmem:[%s4682_s23 + $0xe8] sm:$0xff]  ;;  %vm1336_vm8 = vcmask 195744   ;;  %s4596_s30 = smov 28  }
  0x20   : > { %304 = vst.msk [vmem:[#allocation2 + $0x31] sm:$0xff] %vm301_vm3, %v271_v3  ;;  %305 = vst.msk [vmem:[#allocation2 + $0x39] sm:$0xff] %vm301_vm3, %v272_v4  ;;  %v340_v45 = vld [vmem:[#allocation2] sm:$0xff]  ;;  %v341_v48 = vld [vmem:[#allocation2 + $0x8] sm:$0xff]  ;;  %vm2067_vm9 = vcmask 1041408   ;;  %s4597_s10 = smov 32  }
  0x21   : > { %306 = vst.msk [vmem:[#allocation2 + $0x49] sm:$0xff] %vm301_vm3, %v273_v5  ;;  %307 = vst.msk [vmem:[#allocation2 + $0x51] sm:$0xff] %vm301_vm3, %v274_v6  ;;  %vm1530_vm10 = vcmask 228544   ;;  %vm1723_vm11 = vcmask 261344   ;;  %vm1916_vm12 = vcmask 294144   ;;  %vm2018_vm13 = vcmask 293888  }
  0x22   : > { %308 = vst.msk [vmem:[#allocation2 + $0x61] sm:$0xff] %vm301_vm3, %v275_v9  ;;  %309 = vst.msk [vmem:[#allocation2 + $0x69] sm:$0xff] %vm301_vm3, %v276_v10  ;;  %vm2530_vm14 = vcmask 130112   ;;  %s4598_s15 = smov 40   ;;  %vm2723_vm15 = vcmask 195712   ;;  %s4599_s16 = smov 48  }
  0x23   : > { %310 = vst.msk [vmem:[#allocation2 + $0x79] sm:$0xff] %vm301_vm3, %v277_v11  ;;  %311 = vst.msk [vmem:[#allocation2 + $0x81] sm:$0xff] %vm301_vm3, %v278_v12  ;;  %vm4044_vm1 = vcmask 1043456   ;;  %vm2916_vm2 = vcmask 261312   ;;  %s4429_s8 = sshll.u32 %s6805_s19, 6 }
  0x24   : > { %312 = vst.msk [vmem:[#allocation2 + $0x91] sm:$0xff] %vm301_vm3, %v279_v13  ;;  %313 = vst.msk [vmem:[#allocation2 + $0x99] sm:$0xff] %vm301_vm3, %v280_v14  ;;  %s6600_s11 = scalar_lea.vmem %s6713_s5, %s4429_s8 }
  0x25   : > { %314 = vst.msk [vmem:[#allocation2 + $0xa9] sm:$0xff] %vm301_vm3, %v281_v15  ;;  %315 = vst.msk [vmem:[#allocation2 + $0xb1] sm:$0xff] %vm301_vm3, %v282_v16 }
  0x26   : > { %316 = vst.msk [vmem:[#allocation2 + $0xc1] sm:$0xff] %vm301_vm3, %v283_v17  ;;  %317 = vst.msk [vmem:[#allocation2 + $0xc9] sm:$0xff] %vm301_vm3, %v284_v18  ;;  %v4727_v25 = vld [vmem:[#allocation2 + $0x19] sm:$0xff]  ;;  %v4736_v27 = vld [vmem:[#allocation2 + $0x21] sm:$0xff] }
  0x27   : > { %318 = vst.msk [vmem:[#allocation2 + $0xd9] sm:$0xff] %vm301_vm3, %v285_v19  ;;  %319 = vst.msk [vmem:[#allocation2 + $0xe1] sm:$0xff] %vm301_vm3, %v286_v20  ;;  %v4729_v26 = vld [vmem:[#allocation2 + $0x31] sm:$0xff]  ;;  %472 = vrot.lane.b32.xlu1 %v4727_v25, %s4590_s24  ;;  %v4748_v31 = vld [vmem:[#allocation2 + $0x39] sm:$0xff] }
  0x28   : > { %320 = vst.msk [vmem:[#allocation2 + $0xf1] sm:$0xff] %vm301_vm3, %v287_v21  ;;  %321 = vst.msk [vmem:[#allocation2 + $0xf9] sm:$0xff] %vm301_vm3, %v288_v22  ;;  %476 = vrot.lane.b32.xlu0 %v4729_v26, %s4590_s24  ;;  %v4744_v30 = vld [vmem:[#allocation2 + $0x49] sm:$0xff]  ;;  %v4765_v39 = vld [vmem:[#allocation2 + $0x51] sm:$0xff] }
  0x29   : > { %322 = vst.msk [vmem:[#allocation2 + $0x109] sm:$0xff] %vm301_vm3, %v289_v23  ;;  %323 = vst.msk [vmem:[#allocation2 + $0x111] sm:$0xff] %vm301_vm3, %v290_v24  ;;  %v4752_v32 = vld [vmem:[#allocation2 + $0x61] sm:$0xff]  ;;  %v4776_v41 = vld [vmem:[#allocation2 + $0x69] sm:$0xff] }
  0x2a   : > { %324 = vst.msk [vmem:[#allocation2 + $0x121] sm:$0xff] %vm301_vm3, %v291_v28  ;;  %325 = vst.msk [vmem:[#allocation2 + $0x129] sm:$0xff] %vm301_vm3, %v292_v29  ;;  %v4772_v40 = vld [vmem:[#allocation2 + $0x79] sm:$0xff]  ;;  %v4784_v43 = vld [vmem:[#allocation2 + $0x81] sm:$0xff] }
  0x2b   : > { %474 = vrot.lane.b32.xlu1 %v4736_v27, %s4590_s24  ;;  %326 = vst.msk [vmem:[#allocation2 + $0x139] sm:$0xff] %vm301_vm3, %v293_v33  ;;  %327 = vst.msk [vmem:[#allocation2 + $0x141] sm:$0xff] %vm301_vm3, %v294_v34  ;;  %v4780_v42 = vld [vmem:[#allocation2 + $0x91] sm:$0xff]  ;;  %v4794_v47 = vld [vmem:[#allocation2 + $0x99] sm:$0xff] }
  0x2c   : > { %480 = vrot.lane.b32.xlu0 %v4744_v30, %s4590_s24  ;;  %328 = vst.msk [vmem:[#allocation2 + $0x151] sm:$0xff] %vm301_vm3, %v295_v35  ;;  %329 = vst.msk [vmem:[#allocation2 + $0x159] sm:$0xff] %vm301_vm3, %v296_v36  ;;  %v4788_v44 = vld [vmem:[#allocation2 + $0xa9] sm:$0xff]  ;;  %v4792_v46 = vld [vmem:[#allocation2 + $0x18] sm:$0xff] }
  0x2d   : > { %330 = vst.msk [vmem:[#allocation2 + $0x169] sm:$0xff] %vm301_vm3, %v297_v37  ;;  %331 = vst.msk [vmem:[#allocation2 + $0x171] sm:$0xff] %vm301_vm3, %v298_v38  ;;  %v4802_v49 = vld [vmem:[#allocation2 + $0x20] sm:$0xff]  ;;  %v4808_v51 = vld [vmem:[#allocation2 + $0x30] sm:$0xff] }
  0x2e   : > { %372 = vst.msk [vmem:[#allocation3] sm:$0xff] %vm301_vm3, %v340_v45  ;;  %374 = vst.msk [vmem:[#allocation3 + $0x10] sm:$0xff] %vm301_vm3, %v4792_v46  ;;  %v4804_v50 = vld [vmem:[#allocation2 + $0xc1] sm:$0xff]  ;;  %v4810_v52 = vld [vmem:[#allocation2 + $0x38] sm:$0xff] }
  0x2f   : > { %478 = vrot.lane.b32.xlu1 %v4748_v31, %s4590_s24  ;;  %373 = vst.msk [vmem:[#allocation3 + $0x8] sm:$0xff] %vm301_vm3, %v341_v48  ;;  %375 = vst.msk [vmem:[#allocation3 + $0x18] sm:$0xff] %vm301_vm3, %v4802_v49  ;;  %v4814_v53 = vld [vmem:[#allocation2 + $0xb1] sm:$0xff]  ;;  %v4820_v54 = vld [vmem:[#allocation2 + $0x48] sm:$0xff] }
  0x30   : > { %484 = vrot.lane.b32.xlu0 %v4752_v32, %s4590_s24  ;;  %376 = vst.msk [vmem:[#allocation3 + $0x20] sm:$0xff] %vm301_vm3, %v4808_v51  ;;  %377 = vst.msk [vmem:[#allocation3 + $0x28] sm:$0xff] %vm301_vm3, %v4810_v52  ;;  %v4822_v55 = vld [vmem:[#allocation2 + $0x50] sm:$0xff]  ;;  %v4824_v56 = vld [vmem:[#allocation2 + $0xd9] sm:$0xff] }
  0x31   : > { %378 = vst.msk [vmem:[#allocation3 + $0x30] sm:$0xff] %vm301_vm3, %v4820_v54  ;;  %379 = vst.msk [vmem:[#allocation3 + $0x38] sm:$0xff] %vm301_vm3, %v4822_v55  ;;  %v4830_v57 = vld [vmem:[#allocation2 + $0x60] sm:$0xff]  ;;  %v4832_v58 = vld [vmem:[#allocation2 + $0x68] sm:$0xff] }
  0x32   : > { %v4834_v59 = vld [vmem:[#allocation2 + $0x78] sm:$0xff]  ;;  %380 = vst.msk [vmem:[#allocation3 + $0x40] sm:$0xff] %vm301_vm3, %v4830_v57  ;;  %381 = vst.msk [vmem:[#allocation3 + $0x48] sm:$0xff] %vm301_vm3, %v4832_v58  ;;  %v4844_v60 = vld [vmem:[#allocation2 + $0x80] sm:$0xff] }
  0x33   : > { %482 = vrot.lane.b32.xlu1 %v4765_v39, %s4590_s24  ;;  %382 = vst.msk [vmem:[#allocation3 + $0x50] sm:$0xff] %vm301_vm3, %v4834_v59  ;;  %v4846_v61 = vld [vmem:[#allocation2 + $0x90] sm:$0xff]  ;;  %v4848_v62 = vld [vmem:[#allocation2 + $0x98] sm:$0xff]  ;;  %383 = vst.msk [vmem:[#allocation3 + $0x58] sm:$0xff] %vm301_vm3, %v4844_v60 }
  0x34   : > { %488 = vrot.lane.b32.xlu0 %v4772_v40, %s4590_s24  ;;  %v4850_v63 = vld [vmem:[#allocation2 + $0xc9] sm:$0xff]  ;;  %384 = vst.msk [vmem:[#allocation3 + $0x60] sm:$0xff] %vm301_vm3, %v4846_v61  ;;  %385 = vst.msk [vmem:[#allocation3 + $0x68] sm:$0xff] %vm301_vm3, %v4848_v62  ;;  %v4862_v2 = vld [vmem:[#allocation2 + $0xc0] sm:$0xff] }
  0x35   : > { %v4858_v0 = vld [vmem:[#allocation2 + $0xa8] sm:$0xff]  ;;  %v4860_v1 = vld [vmem:[#allocation2 + $0xb0] sm:$0xff]  ;;  %388 = vst.msk [vmem:[#allocation3 + $0x80] sm:$0xff] %vm301_vm3, %v4862_v2  ;;  %v4874_v4 = vld [vmem:[#allocation2 + $0xd8] sm:$0xff] }
  0x36   : > { %386 = vst.msk [vmem:[#allocation3 + $0x70] sm:$0xff] %vm301_vm3, %v4858_v0  ;;  %387 = vst.msk [vmem:[#allocation3 + $0x78] sm:$0xff] %vm301_vm3, %v4860_v1  ;;  %v4872_v3 = vld [vmem:[#allocation2 + $0xc8] sm:$0xff]  ;;  %v4876_v5 = vld [vmem:[#allocation2 + $0xe0] sm:$0xff] }
  0x37   : > { %486 = vrot.lane.b32.xlu1 %v4776_v41, %s4590_s24  ;;  %389 = vst.msk [vmem:[#allocation3 + $0x88] sm:$0xff] %vm301_vm3, %v4872_v3  ;;  %390 = vst.msk [vmem:[#allocation3 + $0x90] sm:$0xff] %vm301_vm3, %v4874_v4  ;;  %v4884_v6 = vld [vmem:[#allocation2 + $0xf0] sm:$0xff]  ;;  %v4886_v7 = vld [vmem:[#allocation2 + $0xf8] sm:$0xff] }
  0x38   : > { %492 = vrot.lane.b32.xlu0 %v4780_v42, %s4590_s24  ;;  %391 = vst.msk [vmem:[#allocation3 + $0x98] sm:$0xff] %vm301_vm3, %v4876_v5  ;;  %v4888_v8 = vld [vmem:[#allocation2 + $0x108] sm:$0xff]  ;;  %392 = vst.msk [vmem:[#allocation3 + $0xa0] sm:$0xff] %vm301_vm3, %v4884_v6  ;;  %v4898_v9 = vld [vmem:[#allocation2 + $0x110] sm:$0xff] }
  0x39   : > { %393 = vst.msk [vmem:[#allocation3 + $0xa8] sm:$0xff] %vm301_vm3, %v4886_v7  ;;  %394 = vst.msk [vmem:[#allocation3 + $0xb0] sm:$0xff] %vm301_vm3, %v4888_v8  ;;  %v4900_v10 = vld [vmem:[#allocation2 + $0xf1] sm:$0xff]  ;;  %v4906_v11 = vld [vmem:[#allocation2 + $0x120] sm:$0xff] }
  0x3a   : > { %395 = vst.msk [vmem:[#allocation3 + $0xb8] sm:$0xff] %vm301_vm3, %v4898_v9  ;;  %v4908_v12 = vld [vmem:[#allocation2 + $0x128] sm:$0xff]  ;;  %396 = vst.msk [vmem:[#allocation3 + $0xc0] sm:$0xff] %vm301_vm3, %v4906_v11  ;;  %v4922_v15 = vld [vmem:[#allocation2 + $0x138] sm:$0xff] }
  0x3b   : > { %490 = vrot.lane.b32.xlu1 %v4784_v43, %s4590_s24  ;;  %v4910_v13 = vld [vmem:[#allocation2 + $0xe1] sm:$0xff]  ;;  %397 = vst.msk [vmem:[#allocation3 + $0xc8] sm:$0xff] %vm301_vm3, %v4908_v12  ;;  %v4918_v14 = vld [vmem:[#allocation2 + $0x109] sm:$0xff]  ;;  %v4926_v17 = vld [vmem:[#allocation2 + $0xf9] sm:$0xff] }
  0x3c   : > { %496 = vrot.lane.b32.xlu0 %v4788_v44, %s4590_s24  ;;  %v4924_v16 = vld [vmem:[#allocation2 + $0x140] sm:$0xff]  ;;  %398 = vst.msk [vmem:[#allocation3 + $0xd0] sm:$0xff] %vm301_vm3, %v4922_v15  ;;  %v4938_v19 = vld [vmem:[#allocation2 + $0x150] sm:$0xff]  ;;  %v4940_v20 = vld [vmem:[#allocation2 + $0x158] sm:$0xff] }
  0x3d   : > { %399 = vst.msk [vmem:[#allocation3 + $0xd8] sm:$0xff] %vm301_vm3, %v4924_v16  ;;  %v4934_v18 = vld [vmem:[#allocation2 + $0x121] sm:$0xff]  ;;  %v4942_v21 = vld [vmem:[#allocation2 + $0x111] sm:$0xff]  ;;  %400 = vst.msk [vmem:[#allocation3 + $0xe0] sm:$0xff] %vm301_vm3, %v4938_v19 }
  0x3e   : > { %401 = vst.msk [vmem:[#allocation3 + $0xe8] sm:$0xff] %vm301_vm3, %v4940_v20  ;;  %v4950_v22 = vld [vmem:[#allocation2 + $0x139] sm:$0xff]  ;;  %v4954_v23 = vld [vmem:[#allocation2 + $0x168] sm:$0xff]  ;;  %v4956_v24 = vld [vmem:[#allocation2 + $0x170] sm:$0xff] }
  0x3f   : > { %494 = vrot.lane.b32.xlu1 %v4794_v47, %s4590_s24  ;;  %v4958_v28 = vld [vmem:[#allocation2 + $0x129] sm:$0xff]  ;;  %402 = vst.msk [vmem:[#allocation3 + $0xf0] sm:$0xff] %vm301_vm3, %v4954_v23  ;;  %403 = vst.msk [vmem:[#allocation3 + $0xf8] sm:$0xff] %vm301_vm3, %v4956_v24  ;;  %v4966_v29 = vld [vmem:[#allocation2 + $0x151] sm:$0xff] }
  0x40   : > { %500 = vrot.lane.b32.xlu0 %v4804_v50, %s4590_s24  ;;  %v4970_v33 = vld [vmem:[#allocation2 + $0x141] sm:$0xff]  ;;  %v4974_v34 = vld [vmem:[#allocation2 + $0x169] sm:$0xff]  ;;  %v300_v36 = vld [vmem:[%s4682_s23 + $0xf8] sm:$0xff] }
  0x41   : > { %6744 = vst [vmem:[#allocation5_spill] sm:$0xff] %v4970_v33  ;;  %6745 = vst [vmem:[#allocation6_spill] sm:$0xff] %v4974_v34  ;;  %v299_v35 = vld [vmem:[%s4682_s23 + $0xf0] sm:$0xff]  ;;  %v4982_v37 = vld [vmem:[#allocation2 + $0x159] sm:$0xff]  ;;  %s4600_s23 = smov 56  }
  0x42   : > { %332 = vst.msk [vmem:[#allocation2 + $0x181] sm:$0xff] %vm301_vm3, %v299_v35  ;;  %333 = vst.msk [vmem:[#allocation2 + $0x189] sm:$0xff] %vm301_vm3, %v300_v36  ;;  %v597_v38 = vld [vmem:[#allocation2 + $0x2] sm:$0xff]  ;;  %v4988_v45 = vld [vmem:[#allocation2 + $0x171] sm:$0xff]  ;;  %vm3109_vm3 = vcmask 326912  }
  0x43   : > { %498 = vrot.lane.b32.xlu1 %v4814_v53, %s4590_s24  ;;  %6746 = vst [vmem:[#allocation7_spill] sm:$0xff] %v4982_v37  ;;  %6747 = vst [vmem:[#allocation8_spill] sm:$0xff] %v4988_v45  ;;  %v4991_v48 = vld [vmem:[#allocation2 + $0x1a] sm:$0xff]  ;;  %v598_v35 = vld [vmem:[#allocation2 + $0xa] sm:$0xff] }
  0x44   : > { %504 = vrot.lane.b32.xlu0 %v4824_v56, %s4590_s24  ;;  %6748 = vst [vmem:[#allocation9_spill] sm:$0xff] %v4991_v48  ;;  %v4997_v36 = vld [vmem:[#allocation2 + $0x32] sm:$0xff] }
  0x45   : > { %6749 = vst [vmem:[#allocation10_spill] sm:$0xff] %v4997_v36 }
  0x47   : > { %502 = vrot.lane.b32.xlu1 %v4850_v63, %s4590_s24 }
  0x48   : > { %508 = vrot.lane.b32.xlu0 %v4900_v10, %s4590_s24 }
  0x4b   : > { %506 = vrot.lane.b32.xlu1 %v4910_v13, %s4590_s24 }
  0x4c   : > { %512 = vrot.lane.b32.xlu0 %v4918_v14, %s4590_s24 }
  0x4f   : > { %510 = vrot.lane.b32.xlu1 %v4926_v17, %s4590_s24 }
  0x50   : > { %516 = vrot.lane.b32.xlu0 %v4934_v18, %s4590_s24 }
  0x53   : > { %514 = vrot.lane.b32.xlu1 %v4942_v21, %s4590_s24 }
  0x54   : > { %520 = vrot.lane.b32.xlu0 %v4950_v22, %s4590_s24 }
  0x57   : > { %518 = vrot.lane.b32.xlu1 %v4958_v28, %s4590_s24 }
  0x58   : > { %524 = vrot.lane.b32.xlu0 %v4966_v29, %s4590_s24 }
  0x5b   : > { %522 = vrot.lane.b32.xlu1 %v4970_v33, %s4590_s24 }
  0x5c   : > { %528 = vrot.lane.b32.xlu0 %v4974_v34, %s4590_s24  ;;  %v5000_v34 = vld [vmem:[#allocation2 + $0x22] sm:$0xff] }
  0x5d   : > { %6750 = vst [vmem:[#allocation11_spill] sm:$0xff] %v5000_v34 }
  0x5f   : > { %526 = vrot.lane.b32.xlu1 %v4982_v37, %s4590_s24  ;;  %v5004_v37 = vld [vmem:[#allocation2 + $0x4a] sm:$0xff] }
  0x60   : > { %661 = vrot.lane.b32.xlu0 %v597_v38, %s4591_s25  ;;  %6751 = vst [vmem:[#allocation12_spill] sm:$0xff] %v5004_v37  ;;  %v5008_v38 = vld [vmem:[#allocation2 + $0x3a] sm:$0xff] }
  0x61   : > { %6752 = vst [vmem:[#allocation13_spill] sm:$0xff] %v5008_v38 }
  0x63   : > { %530 = vrot.lane.b32.xlu1 %v4988_v45, %s4590_s24  ;;  %v5088_v45 = vld [vmem:[#allocation2 + $0x12a] sm:$0xff] }
  0x64   : > { %665 = vrot.lane.b32.xlu0 %v4991_v48, %s4591_s25  ;;  %v5012_v48 = vld [vmem:[#allocation2 + $0x62] sm:$0xff]  ;;  %6772 = vst [vmem:[#allocation33_spill] sm:$0xff] %v5088_v45 }
  0x65   : > { %6753 = vst [vmem:[#allocation14_spill] sm:$0xff] %v5012_v48 }
  0x67   : > { %663 = vrot.lane.b32.xlu1 %v598_v35, %s4591_s25  ;;  %v5016_v35 = vld [vmem:[#allocation2 + $0x52] sm:$0xff] }
  0x68   : > { %669 = vrot.lane.b32.xlu0 %v4997_v36, %s4591_s25  ;;  %6754 = vst [vmem:[#allocation15_spill] sm:$0xff] %v5016_v35  ;;  %v5020_v36 = vld [vmem:[#allocation2 + $0x7a] sm:$0xff] }
  0x69   : > { %6755 = vst [vmem:[#allocation16_spill] sm:$0xff] %v5020_v36 }
  0x6b   : > { %667 = vrot.lane.b32.xlu1 %v5000_v34, %s4591_s25  ;;  %v5024_v34 = vld [vmem:[#allocation2 + $0x6a] sm:$0xff] }
  0x6c   : > { %673 = vrot.lane.b32.xlu0 %v5004_v37, %s4591_s25  ;;  %6756 = vst [vmem:[#allocation17_spill] sm:$0xff] %v5024_v34  ;;  %v5028_v37 = vld [vmem:[#allocation2 + $0x92] sm:$0xff] }
  0x6d   : > { %6757 = vst [vmem:[#allocation18_spill] sm:$0xff] %v5028_v37 }
  0x6f   : > { %671 = vrot.lane.b32.xlu1 %v5008_v38, %s4591_s25  ;;  %v5032_v38 = vld [vmem:[#allocation2 + $0x82] sm:$0xff] }
  0x70   : > { %677 = vrot.lane.b32.xlu0 %v5012_v48, %s4591_s25  ;;  %6758 = vst [vmem:[#allocation19_spill] sm:$0xff] %v5032_v38  ;;  %v5036_v48 = vld [vmem:[#allocation2 + $0xaa] sm:$0xff] }
  0x71   : > { %6759 = vst [vmem:[#allocation20_spill] sm:$0xff] %v5036_v48 }
  0x73   : > { %675 = vrot.lane.b32.xlu1 %v5016_v35, %s4591_s25  ;;  %v5040_v35 = vld [vmem:[#allocation2 + $0x9a] sm:$0xff] }
  0x74   : > { %681 = vrot.lane.b32.xlu0 %v5020_v36, %s4591_s25  ;;  %6760 = vst [vmem:[#allocation21_spill] sm:$0xff] %v5040_v35  ;;  %v5044_v36 = vld [vmem:[#allocation2 + $0xc2] sm:$0xff] }
  0x75   : > { %6761 = vst [vmem:[#allocation22_spill] sm:$0xff] %v5044_v36 }
  0x77   : > { %679 = vrot.lane.b32.xlu1 %v5024_v34, %s4591_s25  ;;  %v5048_v34 = vld [vmem:[#allocation2 + $0xb2] sm:$0xff] }
  0x78   : > { %685 = vrot.lane.b32.xlu0 %v5028_v37, %s4591_s25  ;;  %6762 = vst [vmem:[#allocation23_spill] sm:$0xff] %v5048_v34  ;;  %v5052_v37 = vld [vmem:[#allocation2 + $0xda] sm:$0xff] }
  0x79   : > { %6763 = vst [vmem:[#allocation24_spill] sm:$0xff] %v5052_v37 }
  0x7b   : > { %683 = vrot.lane.b32.xlu1 %v5032_v38, %s4591_s25  ;;  %v5056_v38 = vld [vmem:[#allocation2 + $0xca] sm:$0xff] }
  0x7c   : > { %689 = vrot.lane.b32.xlu0 %v5036_v48, %s4591_s25  ;;  %6764 = vst [vmem:[#allocation25_spill] sm:$0xff] %v5056_v38  ;;  %v5060_v48 = vld [vmem:[#allocation2 + $0xf2] sm:$0xff] }
  0x7d   : > { %6765 = vst [vmem:[#allocation26_spill] sm:$0xff] %v5060_v48 }
  0x7f   : > { %687 = vrot.lane.b32.xlu1 %v5040_v35, %s4591_s25  ;;  %v5064_v35 = vld [vmem:[#allocation2 + $0xe2] sm:$0xff] }
  0x80   : > { %693 = vrot.lane.b32.xlu0 %v5044_v36, %s4591_s25  ;;  %6766 = vst [vmem:[#allocation27_spill] sm:$0xff] %v5064_v35  ;;  %v5068_v36 = vld [vmem:[#allocation2 + $0x10a] sm:$0xff] }
  0x81   : > { %6767 = vst [vmem:[#allocation28_spill] sm:$0xff] %v5068_v36 }
  0x83   : > { %691 = vrot.lane.b32.xlu1 %v5048_v34, %s4591_s25  ;;  %v5072_v34 = vld [vmem:[#allocation2 + $0xfa] sm:$0xff] }
  0x84   : > { %697 = vrot.lane.b32.xlu0 %v5052_v37, %s4591_s25  ;;  %6768 = vst [vmem:[#allocation29_spill] sm:$0xff] %v5072_v34  ;;  %v5076_v37 = vld [vmem:[#allocation2 + $0x122] sm:$0xff] }
  0x85   : > { %6769 = vst [vmem:[#allocation30_spill] sm:$0xff] %v5076_v37 }
  0x87   : > { %695 = vrot.lane.b32.xlu1 %v5056_v38, %s4591_s25  ;;  %v5080_v38 = vld [vmem:[#allocation2 + $0x112] sm:$0xff] }
  0x88   : > { %701 = vrot.lane.b32.xlu0 %v5060_v48, %s4591_s25  ;;  %6770 = vst [vmem:[#allocation31_spill] sm:$0xff] %v5080_v38  ;;  %v5084_v48 = vld [vmem:[#allocation2 + $0x13a] sm:$0xff] }
  0x89   : > { %6771 = vst [vmem:[#allocation32_spill] sm:$0xff] %v5084_v48 }
  0x8b   : > { %699 = vrot.lane.b32.xlu1 %v5064_v35, %s4591_s25  ;;  %v469_v35 = vpop.permute.xlu0 %468 }
  0x8c   : > { %705 = vrot.lane.b32.xlu0 %v5068_v36, %s4591_s25  ;;  %565 = vst.msk [vmem:[#allocation3] sm:$0xff] %vm564_vm4, %v469_v35  ;;  %v5097_v36 = vld [vmem:[#allocation2 + $0x142] sm:$0xff]  ;;  %v5103_v35 = vld [vmem:[#allocation2 + $0x16a] sm:$0xff] }
  0x8d   : > { %6773 = vst [vmem:[#allocation34_spill] sm:$0xff] %v5097_v36 }
  0x8f   : > { %703 = vrot.lane.b32.xlu1 %v5072_v34, %s4591_s25  ;;  %v5093_v34 = vld [vmem:[#allocation2 + $0x152] sm:$0xff] }
  0x90   : > { %709 = vrot.lane.b32.xlu0 %v5076_v37, %s4591_s25  ;;  %v471_v37 = vpop.permute.xlu0 %470 }
  0x91   : > { %566 = vst.msk [vmem:[#allocation3 + $0x8] sm:$0xff] %vm564_vm4, %v471_v37  ;;  %v5115_v37 = vld [vmem:[#allocation2 + $0x172] sm:$0xff] }
  0x93   : > { %707 = vrot.lane.b32.xlu1 %v5080_v38, %s4591_s25  ;;  %v5107_v38 = vld [vmem:[#allocation2 + $0x15a] sm:$0xff] }
  0x94   : > { %713 = vrot.lane.b32.xlu0 %v5084_v48, %s4591_s25 }
  0x97   : > { %711 = vrot.lane.b32.xlu1 %v5088_v45, %s4591_s25 }
  0x98   : > { %717 = vrot.lane.b32.xlu0 %v5093_v34, %s4591_s25 }
  0x99   : > { %v473_v33 = vpop.permute.xlu1 %472 }
  0x9a   : > { %567 = vst.msk [vmem:[#allocation3 + $0x10] sm:$0xff] %vm564_vm4, %v473_v33  ;;  %v477_v48 = vpop.permute.xlu0 %476 }
  0x9b   : > { %715 = vrot.lane.b32.xlu1 %v5097_v36, %s4591_s25  ;;  %569 = vst.msk [vmem:[#allocation3 + $0x20] sm:$0xff] %vm564_vm4, %v477_v48 }
  0x9c   : > { %721 = vrot.lane.b32.xlu0 %v5103_v35, %s4591_s25 }
  0x9d   : > { %v475_v45 = vpop.permute.xlu1 %474 }
  0x9e   : > { %568 = vst.msk [vmem:[#allocation3 + $0x18] sm:$0xff] %vm564_vm4, %v475_v45  ;;  %v481_v33 = vpop.permute.xlu0 %480 }
  0x9f   : > { %719 = vrot.lane.b32.xlu1 %v5107_v38, %s4591_s25  ;;  %571 = vst.msk [vmem:[#allocation3 + $0x30] sm:$0xff] %vm564_vm4, %v481_v33 }
  0xa0   : > { %854 = vrot.lane.b32.xlu0 %v4792_v46, %s4592_s26 }
  0xa1   : > { %v479_v36 = vpop.permute.xlu1 %478 }
  0xa2   : > { %570 = vst.msk [vmem:[#allocation3 + $0x28] sm:$0xff] %vm564_vm4, %v479_v36  ;;  %v485_v48 = vpop.permute.xlu0 %484 }
  0xa3   : > { %723 = vrot.lane.b32.xlu1 %v5115_v37, %s4591_s25  ;;  %573 = vst.msk [vmem:[#allocation3 + $0x40] sm:$0xff] %vm564_vm4, %v485_v48 }
  0xa4   : > { %858 = vrot.lane.b32.xlu0 %v4808_v51, %s4592_s26 }
  0xa5   : > { %v483_v45 = vpop.permute.xlu1 %482 }
  0xa6   : > { %572 = vst.msk [vmem:[#allocation3 + $0x38] sm:$0xff] %vm564_vm4, %v483_v45  ;;  %v489_v33 = vpop.permute.xlu0 %488 }
  0xa7   : > { %856 = vrot.lane.b32.xlu1 %v4802_v49, %s4592_s26  ;;  %575 = vst.msk [vmem:[#allocation3 + $0x50] sm:$0xff] %vm564_vm4, %v489_v33 }
  0xa8   : > { %862 = vrot.lane.b32.xlu0 %v4820_v54, %s4592_s26 }
  0xa9   : > { %v487_v46 = vpop.permute.xlu1 %486 }
  0xaa   : > { %574 = vst.msk [vmem:[#allocation3 + $0x48] sm:$0xff] %vm564_vm4, %v487_v46  ;;  %v493_v36 = vpop.permute.xlu0 %492 }
  0xab   : > { %860 = vrot.lane.b32.xlu1 %v4810_v52, %s4592_s26  ;;  %577 = vst.msk [vmem:[#allocation3 + $0x60] sm:$0xff] %vm564_vm4, %v493_v36 }
  0xac   : > { %866 = vrot.lane.b32.xlu0 %v4830_v57, %s4592_s26 }
  0xad   : > { %v491_v48 = vpop.permute.xlu1 %490 }
  0xae   : > { %576 = vst.msk [vmem:[#allocation3 + $0x58] sm:$0xff] %vm564_vm4, %v491_v48  ;;  %v497_v49 = vpop.permute.xlu0 %496 }
  0xaf   : > { %864 = vrot.lane.b32.xlu1 %v4822_v55, %s4592_s26  ;;  %579 = vst.msk [vmem:[#allocation3 + $0x70] sm:$0xff] %vm564_vm4, %v497_v49 }
  0xb0   : > { %870 = vrot.lane.b32.xlu0 %v4834_v59, %s4592_s26 }
  0xb1   : > { %v495_v45 = vpop.permute.xlu1 %494 }
  0xb2   : > { %578 = vst.msk [vmem:[#allocation3 + $0x68] sm:$0xff] %vm564_vm4, %v495_v45  ;;  %v501_v33 = vpop.permute.xlu0 %500 }
  0xb3   : > { %868 = vrot.lane.b32.xlu1 %v4832_v58, %s4592_s26  ;;  %581 = vst.msk [vmem:[#allocation3 + $0x80] sm:$0xff] %vm564_vm4, %v501_v33 }
  0xb4   : > { %874 = vrot.lane.b32.xlu0 %v4846_v61, %s4592_s26 }
  0xb5   : > { %v499_v46 = vpop.permute.xlu1 %498 }
  0xb6   : > { %580 = vst.msk [vmem:[#allocation3 + $0x78] sm:$0xff] %vm564_vm4, %v499_v46  ;;  %v505_v36 = vpop.permute.xlu0 %504 }
  0xb7   : > { %872 = vrot.lane.b32.xlu1 %v4844_v60, %s4592_s26  ;;  %583 = vst.msk [vmem:[#allocation3 + $0x90] sm:$0xff] %vm564_vm4, %v505_v36 }
  0xb8   : > { %878 = vrot.lane.b32.xlu0 %v4858_v0, %s4592_s26 }
  0xb9   : > { %v503_v48 = vpop.permute.xlu1 %502 }
  0xba   : > { %582 = vst.msk [vmem:[#allocation3 + $0x88] sm:$0xff] %vm564_vm4, %v503_v48  ;;  %v509_v49 = vpop.permute.xlu0 %508 }
  0xbb   : > { %876 = vrot.lane.b32.xlu1 %v4848_v62, %s4592_s26  ;;  %585 = vst.msk [vmem:[#allocation3 + $0xa0] sm:$0xff] %vm564_vm4, %v509_v49 }
  0xbc   : > { %882 = vrot.lane.b32.xlu0 %v4862_v2, %s4592_s26 }
  0xbd   : > { %v507_v45 = vpop.permute.xlu1 %506 }
  0xbe   : > { %584 = vst.msk [vmem:[#allocation3 + $0x98] sm:$0xff] %vm564_vm4, %v507_v45  ;;  %v513_v33 = vpop.permute.xlu0 %512 }
  0xbf   : > { %880 = vrot.lane.b32.xlu1 %v4860_v1, %s4592_s26  ;;  %587 = vst.msk [vmem:[#allocation3 + $0xb0] sm:$0xff] %vm564_vm4, %v513_v33 }
  0xc0   : > { %886 = vrot.lane.b32.xlu0 %v4874_v4, %s4592_s26 }
  0xc1   : > { %v511_v46 = vpop.permute.xlu1 %510 }
  0xc2   : > { %586 = vst.msk [vmem:[#allocation3 + $0xa8] sm:$0xff] %vm564_vm4, %v511_v46  ;;  %v517_v36 = vpop.permute.xlu0 %516 }
  0xc3   : > { %884 = vrot.lane.b32.xlu1 %v4872_v3, %s4592_s26  ;;  %589 = vst.msk [vmem:[#allocation3 + $0xc0] sm:$0xff] %vm564_vm4, %v517_v36 }
  0xc4   : > { %890 = vrot.lane.b32.xlu0 %v4884_v6, %s4592_s26 }
  0xc5   : > { %v515_v48 = vpop.permute.xlu1 %514 }
  0xc6   : > { %588 = vst.msk [vmem:[#allocation3 + $0xb8] sm:$0xff] %vm564_vm4, %v515_v48  ;;  %v521_v49 = vpop.permute.xlu0 %520 }
  0xc7   : > { %888 = vrot.lane.b32.xlu1 %v4876_v5, %s4592_s26  ;;  %591 = vst.msk [vmem:[#allocation3 + $0xd0] sm:$0xff] %vm564_vm4, %v521_v49 }
  0xc8   : > { %894 = vrot.lane.b32.xlu0 %v4888_v8, %s4592_s26 }
  0xc9   : > { %v519_v45 = vpop.permute.xlu1 %518 }
  0xca   : > { %590 = vst.msk [vmem:[#allocation3 + $0xc8] sm:$0xff] %vm564_vm4, %v519_v45  ;;  %v525_v33 = vpop.permute.xlu0 %524 }
  0xcb   : > { %892 = vrot.lane.b32.xlu1 %v4886_v7, %s4592_s26  ;;  %593 = vst.msk [vmem:[#allocation3 + $0xe0] sm:$0xff] %vm564_vm4, %v525_v33 }
  0xcc   : > { %898 = vrot.lane.b32.xlu0 %v4906_v11, %s4592_s26 }
  0xcd   : > { %v523_v46 = vpop.permute.xlu1 %522 }
  0xce   : > { %592 = vst.msk [vmem:[#allocation3 + $0xd8] sm:$0xff] %vm564_vm4, %v523_v46  ;;  %v529_v36 = vpop.permute.xlu0 %528 }
  0xcf   : > { %896 = vrot.lane.b32.xlu1 %v4898_v9, %s4592_s26  ;;  %595 = vst.msk [vmem:[#allocation3 + $0xf0] sm:$0xff] %vm564_vm4, %v529_v36  ;;  %v5205_v36 = vld [vmem:[#allocation2 + $0x180] sm:$0xff] }
  0xd0   : > { %902 = vrot.lane.b32.xlu0 %v4922_v15, %s4592_s26 }
  0xd1   : > { %v527_v48 = vpop.permute.xlu1 %526 }
  0xd2   : > { %594 = vst.msk [vmem:[#allocation3 + $0xe8] sm:$0xff] %vm564_vm4, %v527_v48  ;;  %v662_v49 = vpop.permute.xlu0 %661 }
  0xd3   : > { %900 = vrot.lane.b32.xlu1 %v4908_v12, %s4592_s26  ;;  %758 = vst.msk [vmem:[#allocation3] sm:$0xff] %vm757_vm5, %v662_v49 }
  0xd4   : > { %906 = vrot.lane.b32.xlu0 %v4938_v19, %s4592_s26 }
  0xd5   : > { %v531_v45 = vpop.permute.xlu1 %530 }
  0xd6   : > { %596 = vst.msk [vmem:[#allocation3 + $0xf8] sm:$0xff] %vm564_vm4, %v531_v45  ;;  %v666_v33 = vpop.permute.xlu0 %665  ;;  %vm3302_vm4 = vcmask 392512  }
  0xd7   : > { %904 = vrot.lane.b32.xlu1 %v4924_v16, %s4592_s26  ;;  %760 = vst.msk [vmem:[#allocation3 + $0x10] sm:$0xff] %vm757_vm5, %v666_v33  ;;  %v5215_v33 = vld [vmem:[#allocation2 + $0x188] sm:$0xff] }
  0xd8   : > { %910 = vrot.lane.b32.xlu0 %v4954_v23, %s4592_s26 }
  0xd9   : > { %v664_v46 = vpop.permute.xlu1 %663 }
  0xda   : > { %759 = vst.msk [vmem:[#allocation3 + $0x8] sm:$0xff] %vm757_vm5, %v664_v46  ;;  %v670_v48 = vpop.permute.xlu0 %669 }
  0xdb   : > { %908 = vrot.lane.b32.xlu1 %v4940_v20, %s4592_s26  ;;  %762 = vst.msk [vmem:[#allocation3 + $0x20] sm:$0xff] %vm757_vm5, %v670_v48 }
  0xdc   : > { %914 = vrot.lane.b32.xlu0 %v5205_v36, %s4592_s26 }
  0xdd   : > { %v668_v49 = vpop.permute.xlu1 %667 }
  0xde   : > { %761 = vst.msk [vmem:[#allocation3 + $0x18] sm:$0xff] %vm757_vm5, %v668_v49  ;;  %v674_v45 = vpop.permute.xlu0 %673 }
  0xdf   : > { %912 = vrot.lane.b32.xlu1 %v4956_v24, %s4592_s26  ;;  %764 = vst.msk [vmem:[#allocation3 + $0x30] sm:$0xff] %vm757_vm5, %v674_v45 }
  0xe0   : > { %1047 = vrot.lane.b32.xlu0 %v4727_v25, %s4593_s27 }
  0xe1   : > { %v672_v46 = vpop.permute.xlu1 %671 }
  0xe2   : > { %763 = vst.msk [vmem:[#allocation3 + $0x28] sm:$0xff] %vm757_vm5, %v672_v46  ;;  %v678_v48 = vpop.permute.xlu0 %677 }
  0xe3   : > { %916 = vrot.lane.b32.xlu1 %v5215_v33, %s4592_s26  ;;  %766 = vst.msk [vmem:[#allocation3 + $0x40] sm:$0xff] %vm757_vm5, %v678_v48 }
  0xe4   : > { %1051 = vrot.lane.b32.xlu0 %v4729_v26, %s4593_s27 }
  0xe5   : > { %v676_v49 = vpop.permute.xlu1 %675 }
  0xe6   : > { %765 = vst.msk [vmem:[#allocation3 + $0x38] sm:$0xff] %vm757_vm5, %v676_v49  ;;  %v682_v45 = vpop.permute.xlu0 %681  ;;  %v6775_v49 = vld [vmem:[#allocation6_spill] sm:$0xff] }
  0xe7   : > { %1049 = vrot.lane.b32.xlu1 %v4736_v27, %s4593_s27  ;;  %768 = vst.msk [vmem:[#allocation3 + $0x50] sm:$0xff] %vm757_vm5, %v682_v45  ;;  %v6776_v45 = vld [vmem:[#allocation7_spill] sm:$0xff] }
  0xe8   : > { %1055 = vrot.lane.b32.xlu0 %v4744_v30, %s4593_s27 }
  0xe9   : > { %v680_v25 = vpop.permute.xlu1 %679 }
  0xea   : > { %767 = vst.msk [vmem:[#allocation3 + $0x48] sm:$0xff] %vm757_vm5, %v680_v25  ;;  %v686_v46 = vpop.permute.xlu0 %685 }
  0xeb   : > { %1053 = vrot.lane.b32.xlu1 %v4748_v31, %s4593_s27  ;;  %770 = vst.msk [vmem:[#allocation3 + $0x60] sm:$0xff] %vm757_vm5, %v686_v46  ;;  %v6777_v46 = vld [vmem:[#allocation8_spill] sm:$0xff] }
  0xec   : > { %1059 = vrot.lane.b32.xlu0 %v4752_v32, %s4593_s27 }
  0xed   : > { %v684_v26 = vpop.permute.xlu1 %683 }
  0xee   : > { %769 = vst.msk [vmem:[#allocation3 + $0x58] sm:$0xff] %vm757_vm5, %v684_v26  ;;  %v690_v27 = vpop.permute.xlu0 %689 }
  0xef   : > { %1057 = vrot.lane.b32.xlu1 %v4765_v39, %s4593_s27  ;;  %772 = vst.msk [vmem:[#allocation3 + $0x70] sm:$0xff] %vm757_vm5, %v690_v27  ;;  %v5315_v27 = vld [vmem:[#allocation2 + $0x189] sm:$0xff] }
  0xf0   : > { %1063 = vrot.lane.b32.xlu0 %v4772_v40, %s4593_s27 }
  0xf1   : > { %v688_v30 = vpop.permute.xlu1 %687 }
  0xf2   : > { %771 = vst.msk [vmem:[#allocation3 + $0x68] sm:$0xff] %vm757_vm5, %v688_v30  ;;  %v694_v31 = vpop.permute.xlu0 %693 }
  0xf3   : > { %1061 = vrot.lane.b32.xlu1 %v4776_v41, %s4593_s27  ;;  %774 = vst.msk [vmem:[#allocation3 + $0x80] sm:$0xff] %vm757_vm5, %v694_v31  ;;  %v6778_v31 = vld [vmem:[#allocation9_spill] sm:$0xff] }
  0xf4   : > { %1067 = vrot.lane.b32.xlu0 %v4780_v42, %s4593_s27 }
  0xf5   : > { %v692_v32 = vpop.permute.xlu1 %691 }
  0xf6   : > { %773 = vst.msk [vmem:[#allocation3 + $0x78] sm:$0xff] %vm757_vm5, %v692_v32  ;;  %v698_v39 = vpop.permute.xlu0 %697 }
  0xf7   : > { %1065 = vrot.lane.b32.xlu1 %v4784_v43, %s4593_s27  ;;  %776 = vst.msk [vmem:[#allocation3 + $0x90] sm:$0xff] %vm757_vm5, %v698_v39 }
  0xf8   : > { %1071 = vrot.lane.b32.xlu0 %v4788_v44, %s4593_s27 }
  0xf9   : > { %v696_v40 = vpop.permute.xlu1 %695 }
  0xfa   : > { %775 = vst.msk [vmem:[#allocation3 + $0x88] sm:$0xff] %vm757_vm5, %v696_v40  ;;  %v702_v41 = vpop.permute.xlu0 %701  ;;  %v6779_v40 = vld [vmem:[#allocation10_spill] sm:$0xff] }
  0xfb   : > { %1069 = vrot.lane.b32.xlu1 %v4794_v47, %s4593_s27  ;;  %778 = vst.msk [vmem:[#allocation3 + $0xa0] sm:$0xff] %vm757_vm5, %v702_v41  ;;  %v6780_v41 = vld [vmem:[#allocation11_spill] sm:$0xff] }
  0xfc   : > { %1075 = vrot.lane.b32.xlu0 %v4804_v50, %s4593_s27 }
  0xfd   : > { %v700_v42 = vpop.permute.xlu1 %699 }
  0xfe   : > { %777 = vst.msk [vmem:[#allocation3 + $0x98] sm:$0xff] %vm757_vm5, %v700_v42  ;;  %v706_v43 = vpop.permute.xlu0 %705 }
  0xff   : > { %1073 = vrot.lane.b32.xlu1 %v4814_v53, %s4593_s27  ;;  %780 = vst.msk [vmem:[#allocation3 + $0xb0] sm:$0xff] %vm757_vm5, %v706_v43 }
 0x100   : > { %1079 = vrot.lane.b32.xlu0 %v4824_v56, %s4593_s27 }
 0x101   : > { %v704_v44 = vpop.permute.xlu1 %703 }
 0x102   : > { %779 = vst.msk [vmem:[#allocation3 + $0xa8] sm:$0xff] %vm757_vm5, %v704_v44  ;;  %v710_v47 = vpop.permute.xlu0 %709  ;;  %v6781_v44 = vld [vmem:[#allocation12_spill] sm:$0xff] }
 0x103   : > { %1077 = vrot.lane.b32.xlu1 %v4850_v63, %s4593_s27  ;;  %782 = vst.msk [vmem:[#allocation3 + $0xc0] sm:$0xff] %vm757_vm5, %v710_v47  ;;  %v6782_v47 = vld [vmem:[#allocation13_spill] sm:$0xff] }
 0x104   : > { %1083 = vrot.lane.b32.xlu0 %v4900_v10, %s4593_s27 }
 0x105   : > { %v708_v50 = vpop.permute.xlu1 %707 }
 0x106   : > { %781 = vst.msk [vmem:[#allocation3 + $0xb8] sm:$0xff] %vm757_vm5, %v708_v50  ;;  %v714_v53 = vpop.permute.xlu0 %713 }
 0x107   : > { %1081 = vrot.lane.b32.xlu1 %v4910_v13, %s4593_s27  ;;  %784 = vst.msk [vmem:[#allocation3 + $0xd0] sm:$0xff] %vm757_vm5, %v714_v53 }
 0x108   : > { %1087 = vrot.lane.b32.xlu0 %v4918_v14, %s4593_s27 }
 0x109   : > { %v712_v56 = vpop.permute.xlu1 %711 }
 0x10a   : > { %783 = vst.msk [vmem:[#allocation3 + $0xc8] sm:$0xff] %vm757_vm5, %v712_v56  ;;  %v718_v63 = vpop.permute.xlu0 %717  ;;  %v6783_v56 = vld [vmem:[#allocation14_spill] sm:$0xff] }
 0x10b   : > { %1085 = vrot.lane.b32.xlu1 %v4926_v17, %s4593_s27  ;;  %786 = vst.msk [vmem:[#allocation3 + $0xe0] sm:$0xff] %vm757_vm5, %v718_v63  ;;  %v6784_v63 = vld [vmem:[#allocation15_spill] sm:$0xff] }
 0x10c   : > { %1091 = vrot.lane.b32.xlu0 %v4934_v18, %s4593_s27 }
 0x10d   : > { %v716_v10 = vpop.permute.xlu1 %715 }
 0x10e   : > { %785 = vst.msk [vmem:[#allocation3 + $0xd8] sm:$0xff] %vm757_vm5, %v716_v10  ;;  %v722_v13 = vpop.permute.xlu0 %721 }
 0x10f   : > { %1089 = vrot.lane.b32.xlu1 %v4942_v21, %s4593_s27  ;;  %788 = vst.msk [vmem:[#allocation3 + $0xf0] sm:$0xff] %vm757_vm5, %v722_v13  ;;  %v6774_v21 = vld [vmem:[#allocation5_spill] sm:$0xff] }
 0x110   : > { %1095 = vrot.lane.b32.xlu0 %v4950_v22, %s4593_s27 }
 0x111   : > { %v720_v14 = vpop.permute.xlu1 %719 }
 0x112   : > { %787 = vst.msk [vmem:[#allocation3 + $0xe8] sm:$0xff] %vm757_vm5, %v720_v14  ;;  %v855_v17 = vpop.permute.xlu0 %854  ;;  %v6785_v14 = vld [vmem:[#allocation16_spill] sm:$0xff] }
 0x113   : > { %1093 = vrot.lane.b32.xlu1 %v4958_v28, %s4593_s27  ;;  %951 = vst.msk [vmem:[#allocation3] sm:$0xff] %vm950_vm6, %v855_v17  ;;  %v5305_v28 = vld [vmem:[#allocation2 + $0x181] sm:$0xff]  ;;  %v6786_v17 = vld [vmem:[#allocation17_spill] sm:$0xff] }
 0x114   : > { %1099 = vrot.lane.b32.xlu0 %v4966_v29, %s4593_s27 }
 0x115   : > { %v724_v18 = vpop.permute.xlu1 %723 }
 0x116   : > { %789 = vst.msk [vmem:[#allocation3 + $0xf8] sm:$0xff] %vm757_vm5, %v724_v18  ;;  %v859_v48 = vpop.permute.xlu0 %858  ;;  %vm3495_vm5 = vcmask 458112  }
 0x117   : > { %1097 = vrot.lane.b32.xlu1 %v6774_v21, %s4593_s27  ;;  %953 = vst.msk [vmem:[#allocation3 + $0x10] sm:$0xff] %vm950_vm6, %v859_v48  ;;  %v6787_v48 = vld [vmem:[#allocation18_spill] sm:$0xff] }
 0x118   : > { %1103 = vrot.lane.b32.xlu0 %v6775_v49, %s4593_s27 }
 0x119   : > { %v857_v22 = vpop.permute.xlu1 %856 }
 0x11a   : > { %952 = vst.msk [vmem:[#allocation3 + $0x8] sm:$0xff] %vm950_vm6, %v857_v22  ;;  %v863_v29 = vpop.permute.xlu0 %862  ;;  %v6788_v22 = vld [vmem:[#allocation19_spill] sm:$0xff] }
 0x11b   : > { %1101 = vrot.lane.b32.xlu1 %v6776_v45, %s4593_s27  ;;  %955 = vst.msk [vmem:[#allocation3 + $0x20] sm:$0xff] %vm950_vm6, %v863_v29  ;;  %v6789_v29 = vld [vmem:[#allocation20_spill] sm:$0xff] }
 0x11c   : > { %1107 = vrot.lane.b32.xlu0 %v5305_v28, %s4593_s27 }
 0x11d   : > { %v861_v25 = vpop.permute.xlu1 %860 }
 0x11e   : > { %954 = vst.msk [vmem:[#allocation3 + $0x18] sm:$0xff] %vm950_vm6, %v861_v25  ;;  %v867_v26 = vpop.permute.xlu0 %866  ;;  %v6790_v25 = vld [vmem:[#allocation21_spill] sm:$0xff] }
 0x11f   : > { %1105 = vrot.lane.b32.xlu1 %v6777_v46, %s4593_s27  ;;  %957 = vst.msk [vmem:[#allocation3 + $0x30] sm:$0xff] %vm950_vm6, %v867_v26 }
 0x120   : > { %1240 = vrot.lane.b32.xlu0 %v6778_v31, %s4594_s28  ;;  %v6792_v31 = vld [vmem:[#allocation23_spill] sm:$0xff] }
 0x121   : > { %v865_v30 = vpop.permute.xlu1 %864 }
 0x122   : > { %956 = vst.msk [vmem:[#allocation3 + $0x28] sm:$0xff] %vm950_vm6, %v865_v30  ;;  %v871_v32 = vpop.permute.xlu0 %870  ;;  %v6791_v30 = vld [vmem:[#allocation22_spill] sm:$0xff] }
 0x123   : > { %1109 = vrot.lane.b32.xlu1 %v5315_v27, %s4593_s27  ;;  %959 = vst.msk [vmem:[#allocation3 + $0x40] sm:$0xff] %vm950_vm6, %v871_v32 }
 0x124   : > { %1244 = vrot.lane.b32.xlu0 %v6779_v40, %s4594_s28  ;;  %v6793_v40 = vld [vmem:[#allocation24_spill] sm:$0xff] }
 0x125   : > { %v869_v39 = vpop.permute.xlu1 %868 }
 0x126   : > { %958 = vst.msk [vmem:[#allocation3 + $0x38] sm:$0xff] %vm950_vm6, %v869_v39  ;;  %v875_v42 = vpop.permute.xlu0 %874 }
 0x127   : > { %1242 = vrot.lane.b32.xlu1 %v6780_v41, %s4594_s28  ;;  %961 = vst.msk [vmem:[#allocation3 + $0x50] sm:$0xff] %vm950_vm6, %v875_v42  ;;  %v6794_v41 = vld [vmem:[#allocation25_spill] sm:$0xff] }
 0x128   : > { %1248 = vrot.lane.b32.xlu0 %v6781_v44, %s4594_s28  ;;  %v6795_v44 = vld [vmem:[#allocation26_spill] sm:$0xff] }
 0x129   : > { %v873_v43 = vpop.permute.xlu1 %872 }
 0x12a   : > { %960 = vst.msk [vmem:[#allocation3 + $0x48] sm:$0xff] %vm950_vm6, %v873_v43  ;;  %v879_v50 = vpop.permute.xlu0 %878 }
 0x12b   : > { %1246 = vrot.lane.b32.xlu1 %v6782_v47, %s4594_s28  ;;  %963 = vst.msk [vmem:[#allocation3 + $0x60] sm:$0xff] %vm950_vm6, %v879_v50  ;;  %v6796_v47 = vld [vmem:[#allocation27_spill] sm:$0xff] }
 0x12c   : > { %1252 = vrot.lane.b32.xlu0 %v6783_v56, %s4594_s28  ;;  %v6797_v56 = vld [vmem:[#allocation28_spill] sm:$0xff] }
 0x12d   : > { %v877_v53 = vpop.permute.xlu1 %876 }
 0x12e   : > { %962 = vst.msk [vmem:[#allocation3 + $0x58] sm:$0xff] %vm950_vm6, %v877_v53  ;;  %v883_v10 = vpop.permute.xlu0 %882 }
 0x12f   : > { %1250 = vrot.lane.b32.xlu1 %v6784_v63, %s4594_s28  ;;  %965 = vst.msk [vmem:[#allocation3 + $0x70] sm:$0xff] %vm950_vm6, %v883_v10  ;;  %v6798_v63 = vld [vmem:[#allocation29_spill] sm:$0xff] }
 0x130   : > { %1256 = vrot.lane.b32.xlu0 %v6785_v14, %s4594_s28  ;;  %v6799_v14 = vld [vmem:[#allocation30_spill] sm:$0xff] }
 0x131   : > { %v881_v13 = vpop.permute.xlu1 %880 }
 0x132   : > { %964 = vst.msk [vmem:[#allocation3 + $0x68] sm:$0xff] %vm950_vm6, %v881_v13  ;;  %v887_v18 = vpop.permute.xlu0 %886 }
 0x133   : > { %1254 = vrot.lane.b32.xlu1 %v6786_v17, %s4594_s28  ;;  %967 = vst.msk [vmem:[#allocation3 + $0x80] sm:$0xff] %vm950_vm6, %v887_v18  ;;  %v6800_v17 = vld [vmem:[#allocation31_spill] sm:$0xff] }
 0x134   : > { %1260 = vrot.lane.b32.xlu0 %v6787_v48, %s4594_s28  ;;  %v6801_v48 = vld [vmem:[#allocation32_spill] sm:$0xff] }
 0x135   : > { %v885_v21 = vpop.permute.xlu1 %884 }
 0x136   : > { %966 = vst.msk [vmem:[#allocation3 + $0x78] sm:$0xff] %vm950_vm6, %v885_v21  ;;  %v891_v49 = vpop.permute.xlu0 %890 }
 0x137   : > { %1258 = vrot.lane.b32.xlu1 %v6788_v22, %s4594_s28  ;;  %969 = vst.msk [vmem:[#allocation3 + $0x90] sm:$0xff] %vm950_vm6, %v891_v49  ;;  %v6802_v22 = vld [vmem:[#allocation33_spill] sm:$0xff] }
 0x138   : > { %1264 = vrot.lane.b32.xlu0 %v6789_v29, %s4594_s28  ;;  %v6803_v29 = vld [vmem:[#allocation34_spill] sm:$0xff] }
 0x139   : > { %v889_v45 = vpop.permute.xlu1 %888 }
 0x13a   : > { %968 = vst.msk [vmem:[#allocation3 + $0x88] sm:$0xff] %vm950_vm6, %v889_v45  ;;  %v895_v46 = vpop.permute.xlu0 %894 }
 0x13b   : > { %1262 = vrot.lane.b32.xlu1 %v6790_v25, %s4594_s28  ;;  %971 = vst.msk [vmem:[#allocation3 + $0xa0] sm:$0xff] %vm950_vm6, %v895_v46 }
 0x13c   : > { %1268 = vrot.lane.b32.xlu0 %v6791_v30, %s4594_s28 }
 0x13d   : > { %v893_v26 = vpop.permute.xlu1 %892 }
 0x13e   : > { %970 = vst.msk [vmem:[#allocation3 + $0x98] sm:$0xff] %vm950_vm6, %v893_v26  ;;  %v899_v32 = vpop.permute.xlu0 %898  ;;  %v5405_v26 = vld [vmem:[#allocation2 + $0x182] sm:$0xff] }
 0x13f   : > { %1266 = vrot.lane.b32.xlu1 %v6792_v31, %s4594_s28  ;;  %973 = vst.msk [vmem:[#allocation3 + $0xb0] sm:$0xff] %vm950_vm6, %v899_v32  ;;  %v5415_v31 = vld [vmem:[#allocation2 + $0x18a] sm:$0xff] }
 0x140   : > { %1272 = vrot.lane.b32.xlu0 %v6793_v40, %s4594_s28 }
 0x141   : > { %v897_v39 = vpop.permute.xlu1 %896 }
 0x142   : > { %972 = vst.msk [vmem:[#allocation3 + $0xa8] sm:$0xff] %vm950_vm6, %v897_v39  ;;  %v903_v42 = vpop.permute.xlu0 %902 }
 0x143   : > { %1270 = vrot.lane.b32.xlu1 %v6794_v41, %s4594_s28  ;;  %975 = vst.msk [vmem:[#allocation3 + $0xc0] sm:$0xff] %vm950_vm6, %v903_v42 }
 0x144   : > { %1276 = vrot.lane.b32.xlu0 %v6795_v44, %s4594_s28 }
 0x145   : > { %v901_v43 = vpop.permute.xlu1 %900 }
 0x146   : > { %974 = vst.msk [vmem:[#allocation3 + $0xb8] sm:$0xff] %vm950_vm6, %v901_v43  ;;  %v907_v50 = vpop.permute.xlu0 %906 }
 0x147   : > { %1274 = vrot.lane.b32.xlu1 %v6796_v47, %s4594_s28  ;;  %977 = vst.msk [vmem:[#allocation3 + $0xd0] sm:$0xff] %vm950_vm6, %v907_v50  ;;  %v1564_v47 = vld [vmem:[#allocation2 + $0x39] sm:$0xff] }
 0x148   : > { %1280 = vrot.lane.b32.xlu0 %v6797_v56, %s4594_s28 }
 0x149   : > { %v905_v53 = vpop.permute.xlu1 %904 }
 0x14a   : > { %976 = vst.msk [vmem:[#allocation3 + $0xc8] sm:$0xff] %vm950_vm6, %v905_v53  ;;  %v911_v10 = vpop.permute.xlu0 %910  ;;  %v4573_v53 = vld [vmem:[%s6709_s1 + $0x10] ss:$0 sps:$4 sm:$0x33]  }
 0x14b   : > { %1278 = vrot.lane.b32.xlu1 %v6798_v63, %s4594_s28  ;;  %979 = vst.msk [vmem:[#allocation3 + $0xe0] sm:$0xff] %vm950_vm6, %v911_v10  ;;  %v1566_v63 = vld [vmem:[#allocation2 + $0x51] sm:$0xff]  ;;  %4550 = vmatprep.subr.msk.bf16.mxu0 %vm2067_vm9, %v4573_v53  ;;  %v2069_v10 = vsel %vm2067_vm9, %v4573_v53, 0 }
 0x14c   : > { %1284 = vrot.lane.b32.xlu0 %v6799_v14, %s4594_s28  ;;  %4471 = vmatpush3.bf16.msra.mxu0 %v2069_v10  ;;  %v1756_v14 = vld [vmem:[#allocation2 + $0x32] sm:$0xff]  ;;  %v1581_v10 = vld [vmem:[#allocation2 + $0x109] sm:$0xff] }
 0x14d   : > { %v909_v13 = vpop.permute.xlu1 %908 }
 0x14e   : > { %978 = vst.msk [vmem:[#allocation3 + $0xd8] sm:$0xff] %vm950_vm6, %v909_v13  ;;  %v915_v18 = vpop.permute.xlu0 %914 }
 0x14f   : > { %1282 = vrot.lane.b32.xlu1 %v6800_v17, %s4594_s28  ;;  %981 = vst.msk [vmem:[#allocation3 + $0xf0] sm:$0xff] %vm950_vm6, %v915_v18  ;;  %v4574_v17 = vld [vmem:[%s6709_s1 + $0x8] sm:$0xff]  }
 0x150   : > { %1288 = vrot.lane.b32.xlu0 %v6801_v48, %s4594_s28  ;;  %4472 = vmatprep.subr.bf16.mxu0 %v4574_v17 }
 0x151   : > { %v913_v21 = vpop.permute.xlu1 %912  ;;  %4473 = vmatpush3.bf16.msra.mxu0 %v4574_v17 }
 0x152   : > { %980 = vst.msk [vmem:[#allocation3 + $0xe8] sm:$0xff] %vm950_vm6, %v913_v21  ;;  %v1048_v49 = vpop.permute.xlu0 %1047  ;;  %v1568_v21 = vld [vmem:[#allocation2 + $0x69] sm:$0xff] }
 0x153   : > { %1286 = vrot.lane.b32.xlu1 %v6802_v22, %s4594_s28  ;;  %1144 = vst.msk [vmem:[#allocation3] sm:$0xff] %vm1143_vm7, %v1048_v49  ;;  %v1758_v22 = vld [vmem:[#allocation2 + $0x4a] sm:$0xff]  ;;  %v4575_v49 = vld [vmem:[%s6709_s1] sm:$0xff]  }
 0x154   : > { %1292 = vrot.lane.b32.xlu0 %v5093_v34, %s4594_s28  ;;  %4474 = vmatprep.subr.bf16.mxu0 %v4575_v49 }
 0x155   : > { %v917_v45 = vpop.permute.xlu1 %916  ;;  %4475 = vmatpush3.bf16.msra.mxu0 %v4575_v49  ;;  %v1774_v49 = vld [vmem:[#allocation2 + $0x10a] sm:$0xff] }
 0x156   : > { %982 = vst.msk [vmem:[#allocation3 + $0xf8] sm:$0xff] %vm950_vm6, %v917_v45  ;;  %v1052_v25 = vpop.permute.xlu0 %1051  ;;  %vm3688_vm6 = vcmask 523712  }
 0x157   : > { %1290 = vrot.lane.b32.xlu1 %v6803_v29, %s4594_s28  ;;  %1146 = vst.msk [vmem:[#allocation3 + $0x10] sm:$0xff] %vm1143_vm7, %v1052_v25  ;;  %v1757_v29 = vld [vmem:[#allocation2 + $0x3a] sm:$0xff] }
 0x158   : > { %1296 = vrot.lane.b32.xlu0 %v5103_v35, %s4594_s28 }
 0x159   : > { %v1050_v46 = vpop.permute.xlu1 %1049 }
 0x15a   : > { %1145 = vst.msk [vmem:[#allocation3 + $0x8] sm:$0xff] %vm1143_vm7, %v1050_v46  ;;  %v1056_v34 = vpop.permute.xlu0 %1055  ;;  %v1569_v46 = vld [vmem:[#allocation2 + $0x79] sm:$0xff] }
 0x15b   : > { %1294 = vrot.lane.b32.xlu1 %v5107_v38, %s4594_s28  ;;  %1148 = vst.msk [vmem:[#allocation3 + $0x20] sm:$0xff] %vm1143_vm7, %v1056_v34 }
 0x15c   : > { %1300 = vrot.lane.b32.xlu0 %v5405_v26, %s4594_s28 }
 0x15d   : > { %v1054_v30 = vpop.permute.xlu1 %1053 }
 0x15e   : > { %1147 = vst.msk [vmem:[#allocation3 + $0x18] sm:$0xff] %vm1143_vm7, %v1054_v30  ;;  %v1060_v35 = vpop.permute.xlu0 %1059  ;;  %v1759_v30 = vld [vmem:[#allocation2 + $0x52] sm:$0xff] }
 0x15f   : > { %1298 = vrot.lane.b32.xlu1 %v5115_v37, %s4594_s28  ;;  %1150 = vst.msk [vmem:[#allocation3 + $0x30] sm:$0xff] %vm1143_vm7, %v1060_v35 }
 0x160   : > { %1434 = vrot.lane.b32.xlu0 %v4808_v51, %s4595_s29 }
 0x161   : > { %v1058_v32 = vpop.permute.xlu1 %1057 }
 0x162   : > { %1149 = vst.msk [vmem:[#allocation3 + $0x28] sm:$0xff] %vm1143_vm7, %v1058_v32  ;;  %v1064_v38 = vpop.permute.xlu0 %1063  ;;  %v1760_v32 = vld [vmem:[#allocation2 + $0x62] sm:$0xff] }
 0x163   : > { %1302 = vrot.lane.b32.xlu1 %v5415_v31, %s4594_s28  ;;  %1152 = vst.msk [vmem:[#allocation3 + $0x40] sm:$0xff] %vm1143_vm7, %v1064_v38  ;;  %s4601_s28 = smov 64  }
 0x164   : > { %1438 = vrot.lane.b32.xlu0 %v4820_v54, %s4595_s29 }
 0x165   : > { %v1062_v39 = vpop.permute.xlu1 %1061 }
 0x166   : > { %1151 = vst.msk [vmem:[#allocation3 + $0x38] sm:$0xff] %vm1143_vm7, %v1062_v39  ;;  %v1068_v37 = vpop.permute.xlu0 %1067  ;;  %v1570_v39 = vld [vmem:[#allocation2 + $0x81] sm:$0xff] }
 0x167   : > { %1436 = vrot.lane.b32.xlu1 %v4810_v52, %s4595_s29  ;;  %1154 = vst.msk [vmem:[#allocation3 + $0x50] sm:$0xff] %vm1143_vm7, %v1068_v37 }
 0x168   : > { %1442 = vrot.lane.b32.xlu0 %v4830_v57, %s4595_s29 }
 0x169   : > { %v1066_v51 = vpop.permute.xlu1 %1065 }
 0x16a   : > { %1153 = vst.msk [vmem:[#allocation3 + $0x48] sm:$0xff] %vm1143_vm7, %v1066_v51  ;;  %v1072_v40 = vpop.permute.xlu0 %1071  ;;  %v1762_v51 = vld [vmem:[#allocation2 + $0x7a] sm:$0xff] }
 0x16b   : > { %1440 = vrot.lane.b32.xlu1 %v4822_v55, %s4595_s29  ;;  %1156 = vst.msk [vmem:[#allocation3 + $0x60] sm:$0xff] %vm1143_vm7, %v1072_v40 }
 0x16c   : > { %1446 = vrot.lane.b32.xlu0 %v4834_v59, %s4595_s29 }
 0x16d   : > { %v1070_v54 = vpop.permute.xlu1 %1069 }
 0x16e   : > { %1155 = vst.msk [vmem:[#allocation3 + $0x58] sm:$0xff] %vm1143_vm7, %v1070_v54  ;;  %v1076_v52 = vpop.permute.xlu0 %1075  ;;  %v1761_v54 = vld [vmem:[#allocation2 + $0x6a] sm:$0xff] }
 0x16f   : > { %1444 = vrot.lane.b32.xlu1 %v4832_v58, %s4595_s29  ;;  %1158 = vst.msk [vmem:[#allocation3 + $0x70] sm:$0xff] %vm1143_vm7, %v1076_v52 }
 0x170   : > { %1450 = vrot.lane.b32.xlu0 %v4846_v61, %s4595_s29 }
 0x171   : > { %v1074_v57 = vpop.permute.xlu1 %1073 }
 0x172   : > { %1157 = vst.msk [vmem:[#allocation3 + $0x68] sm:$0xff] %vm1143_vm7, %v1074_v57  ;;  %v1080_v55 = vpop.permute.xlu0 %1079  ;;  %v1571_v57 = vld [vmem:[#allocation2 + $0x91] sm:$0xff] }
 0x173   : > { %1448 = vrot.lane.b32.xlu1 %v4844_v60, %s4595_s29  ;;  %1160 = vst.msk [vmem:[#allocation3 + $0x80] sm:$0xff] %vm1143_vm7, %v1080_v55 }
 0x174   : > { %1454 = vrot.lane.b32.xlu0 %v4858_v0, %s4595_s29 }
 0x175   : > { %v1078_v59 = vpop.permute.xlu1 %1077 }
 0x176   : > { %1159 = vst.msk [vmem:[#allocation3 + $0x78] sm:$0xff] %vm1143_vm7, %v1078_v59  ;;  %v1084_v58 = vpop.permute.xlu0 %1083  ;;  %v1763_v59 = vld [vmem:[#allocation2 + $0x82] sm:$0xff] }
 0x177   : > { %1452 = vrot.lane.b32.xlu1 %v4848_v62, %s4595_s29  ;;  %1162 = vst.msk [vmem:[#allocation3 + $0x90] sm:$0xff] %vm1143_vm7, %v1084_v58 }
 0x178   : > { %1458 = vrot.lane.b32.xlu0 %v4862_v2, %s4595_s29 }
 0x179   : > { %v1082_v61 = vpop.permute.xlu1 %1081 }
 0x17a   : > { %1161 = vst.msk [vmem:[#allocation3 + $0x88] sm:$0xff] %vm1143_vm7, %v1082_v61  ;;  %v1088_v60 = vpop.permute.xlu0 %1087  ;;  %v1573_v61 = vld [vmem:[#allocation2 + $0xa9] sm:$0xff] }
 0x17b   : > { %1456 = vrot.lane.b32.xlu1 %v4860_v1, %s4595_s29  ;;  %1164 = vst.msk [vmem:[#allocation3 + $0xa0] sm:$0xff] %vm1143_vm7, %v1088_v60 }
 0x17c   : > { %1462 = vrot.lane.b32.xlu0 %v4874_v4, %s4595_s29 }
 0x17d   : > { %v1086_v0 = vpop.permute.xlu1 %1085 }
 0x17e   : > { %1163 = vst.msk [vmem:[#allocation3 + $0x98] sm:$0xff] %vm1143_vm7, %v1086_v0  ;;  %v1092_v62 = vpop.permute.xlu0 %1091  ;;  %v1572_v0 = vld [vmem:[#allocation2 + $0x99] sm:$0xff] }
 0x17f   : > { %1460 = vrot.lane.b32.xlu1 %v4872_v3, %s4595_s29  ;;  %1166 = vst.msk [vmem:[#allocation3 + $0xb0] sm:$0xff] %vm1143_vm7, %v1092_v62 }
 0x180   : > { %1466 = vrot.lane.b32.xlu0 %v4884_v6, %s4595_s29 }
 0x181   : > { %v1090_v2 = vpop.permute.xlu1 %1089 }
 0x182   : > { %1165 = vst.msk [vmem:[#allocation3 + $0xa8] sm:$0xff] %vm1143_vm7, %v1090_v2  ;;  %v1096_v1 = vpop.permute.xlu0 %1095  ;;  %v1764_v2 = vld [vmem:[#allocation2 + $0x92] sm:$0xff] }
 0x183   : > { %1464 = vrot.lane.b32.xlu1 %v4876_v5, %s4595_s29  ;;  %1168 = vst.msk [vmem:[#allocation3 + $0xc0] sm:$0xff] %vm1143_vm7, %v1096_v1 }
 0x184   : > { %1470 = vrot.lane.b32.xlu0 %v4888_v8, %s4595_s29 }
 0x185   : > { %v1094_v4 = vpop.permute.xlu1 %1093 }
 0x186   : > { %1167 = vst.msk [vmem:[#allocation3 + $0xb8] sm:$0xff] %vm1143_vm7, %v1094_v4  ;;  %v1100_v3 = vpop.permute.xlu0 %1099  ;;  %v1574_v4 = vld [vmem:[#allocation2 + $0xb1] sm:$0xff] }
 0x187   : > { %1468 = vrot.lane.b32.xlu1 %v4886_v7, %s4595_s29  ;;  %1170 = vst.msk [vmem:[#allocation3 + $0xd0] sm:$0xff] %vm1143_vm7, %v1100_v3 }
 0x188   : > { %1474 = vrot.lane.b32.xlu0 %v4906_v11, %s4595_s29 }
 0x189   : > { %v1098_v6 = vpop.permute.xlu1 %1097 }
 0x18a   : > { %1169 = vst.msk [vmem:[#allocation3 + $0xc8] sm:$0xff] %vm1143_vm7, %v1098_v6  ;;  %v1104_v5 = vpop.permute.xlu0 %1103  ;;  %v1766_v6 = vld [vmem:[#allocation2 + $0xaa] sm:$0xff] }
 0x18b   : > { %1472 = vrot.lane.b32.xlu1 %v4898_v9, %s4595_s29  ;;  %1172 = vst.msk [vmem:[#allocation3 + $0xe0] sm:$0xff] %vm1143_vm7, %v1104_v5 }
 0x18c   : > { %1478 = vrot.lane.b32.xlu0 %v4922_v15, %s4595_s29 }
 0x18d   : > { %v1102_v8 = vpop.permute.xlu1 %1101 }
 0x18e   : > { %1171 = vst.msk [vmem:[#allocation3 + $0xd8] sm:$0xff] %vm1143_vm7, %v1102_v8  ;;  %v1108_v7 = vpop.permute.xlu0 %1107  ;;  %v1765_v8 = vld [vmem:[#allocation2 + $0x9a] sm:$0xff] }
 0x18f   : > { %1476 = vrot.lane.b32.xlu1 %v4908_v12, %s4595_s29  ;;  %1174 = vst.msk [vmem:[#allocation3 + $0xf0] sm:$0xff] %vm1143_vm7, %v1108_v7 }
 0x190   : > { %1482 = vrot.lane.b32.xlu0 %v4938_v19, %s4595_s29 }
 0x191   : > { %v1106_v11 = vpop.permute.xlu1 %1105 }
 0x192   : > { %1173 = vst.msk [vmem:[#allocation3 + $0xe8] sm:$0xff] %vm1143_vm7, %v1106_v11  ;;  %v1241_v9 = vpop.permute.xlu0 %1240  ;;  %v1575_v11 = vld [vmem:[#allocation2 + $0xc1] sm:$0xff] }
 0x193   : > { %1480 = vrot.lane.b32.xlu1 %v4924_v16, %s4595_s29  ;;  %1337 = vst.msk [vmem:[#allocation3] sm:$0xff] %vm1336_vm8, %v1241_v9  ;;  %v1400_v16 = vld [vmem:[#allocation2 + $0x198] sm:$0xff] }
 0x194   : > { %1486 = vrot.lane.b32.xlu0 %v4954_v23, %s4595_s29 }
 0x195   : > { %v1110_v15 = vpop.permute.xlu1 %1109 }
 0x196   : > { %1175 = vst.msk [vmem:[#allocation3 + $0xf8] sm:$0xff] %vm1143_vm7, %v1110_v15  ;;  %v1245_v12 = vpop.permute.xlu0 %1244  ;;  %v1767_v15 = vld [vmem:[#allocation2 + $0xb2] sm:$0xff]  ;;  %vm3881_vm7 = vcmask 589312  }
 0x197   : > { %1484 = vrot.lane.b32.xlu1 %v4940_v20, %s4595_s29  ;;  %1339 = vst.msk [vmem:[#allocation3 + $0x10] sm:$0xff] %vm1336_vm8, %v1245_v12  ;;  %v1563_v20 = vld [vmem:[#allocation2 + $0x31] sm:$0xff] }
 0x198   : > { %1490 = vrot.lane.b32.xlu0 %v5205_v36, %s4595_s29  ;;  %v1401_v36 = vld [vmem:[#allocation2 + $0x1a0] sm:$0xff] }
 0x199   : > { %v1243_v19 = vpop.permute.xlu1 %1242 }
 0x19a   : > { %1338 = vst.msk [vmem:[#allocation3 + $0x8] sm:$0xff] %vm1336_vm8, %v1243_v19  ;;  %v1249_v41 = vpop.permute.xlu0 %1248  ;;  %v1577_v19 = vld [vmem:[#allocation2 + $0xd9] sm:$0xff] }
 0x19b   : > { %1488 = vrot.lane.b32.xlu1 %v4956_v24, %s4595_s29  ;;  %1341 = vst.msk [vmem:[#allocation3 + $0x20] sm:$0xff] %vm1336_vm8, %v1249_v41  ;;  %v1565_v24 = vld [vmem:[#allocation2 + $0x49] sm:$0xff] }
 0x19c   : > { %1494 = vrot.lane.b32.xlu0 %v1400_v16, %s4595_s29  ;;  %v1576_v41 = vld [vmem:[#allocation2 + $0xc9] sm:$0xff] }
 0x19d   : > { %v1247_v23 = vpop.permute.xlu1 %1246 }
 0x19e   : > { %1340 = vst.msk [vmem:[#allocation3 + $0x18] sm:$0xff] %vm1336_vm8, %v1247_v23  ;;  %v1253_v42 = vpop.permute.xlu0 %1252 }
 0x19f   : > { %1492 = vrot.lane.b32.xlu1 %v5215_v33, %s4595_s29  ;;  %1343 = vst.msk [vmem:[#allocation3 + $0x30] sm:$0xff] %vm1336_vm8, %v1253_v42  ;;  %v1567_v33 = vld [vmem:[#allocation2 + $0x61] sm:$0xff] }
 0x1a0   : > { %1627 = vrot.lane.b32.xlu0 %v1563_v20, %s4596_s30  ;;  %v1768_v20 = vld [vmem:[#allocation2 + $0xc2] sm:$0xff] }
 0x1a1   : > { %v1251_v43 = vpop.permute.xlu1 %1250 }
 0x1a2   : > { %1342 = vst.msk [vmem:[#allocation3 + $0x28] sm:$0xff] %vm1336_vm8, %v1251_v43  ;;  %v1257_v44 = vpop.permute.xlu0 %1256 }
 0x1a3   : > { %1496 = vrot.lane.b32.xlu1 %v1401_v36, %s4595_s29  ;;  %1345 = vst.msk [vmem:[#allocation3 + $0x40] sm:$0xff] %vm1336_vm8, %v1257_v44  ;;  %v1578_v36 = vld [vmem:[#allocation2 + $0xe1] sm:$0xff] }
 0x1a4   : > { %1631 = vrot.lane.b32.xlu0 %v1565_v24, %s4596_s30  ;;  %v1770_v24 = vld [vmem:[#allocation2 + $0xda] sm:$0xff] }
 0x1a5   : > { %v1255_v50 = vpop.permute.xlu1 %1254 }
 0x1a6   : > { %1344 = vst.msk [vmem:[#allocation3 + $0x38] sm:$0xff] %vm1336_vm8, %v1255_v50  ;;  %v1261_v56 = vpop.permute.xlu0 %1260 }
 0x1a7   : > { %1629 = vrot.lane.b32.xlu1 %v1564_v47, %s4596_s30  ;;  %1347 = vst.msk [vmem:[#allocation3 + $0x50] sm:$0xff] %vm1336_vm8, %v1261_v56  ;;  %v1769_v47 = vld [vmem:[#allocation2 + $0xca] sm:$0xff]  ;;  %v1771_v56 = vld [vmem:[#allocation2 + $0xe2] sm:$0xff] }
 0x1a8   : > { %1635 = vrot.lane.b32.xlu0 %v1567_v33, %s4596_s30  ;;  %v1579_v33 = vld [vmem:[#allocation2 + $0xf1] sm:$0xff] }
 0x1a9   : > { %v1259_v13 = vpop.permute.xlu1 %1258 }
 0x1aa   : > { %1346 = vst.msk [vmem:[#allocation3 + $0x48] sm:$0xff] %vm1336_vm8, %v1259_v13  ;;  %v1265_v18 = vpop.permute.xlu0 %1264 }
 0x1ab   : > { %1633 = vrot.lane.b32.xlu1 %v1566_v63, %s4596_s30  ;;  %1349 = vst.msk [vmem:[#allocation3 + $0x60] sm:$0xff] %vm1336_vm8, %v1265_v18  ;;  %v1772_v18 = vld [vmem:[#allocation2 + $0xf2] sm:$0xff] }
 0x1ac   : > { %1820 = vrot.lane.b32.xlu0 %v1756_v14, %s4597_s10  ;;  %v1580_v14 = vld [vmem:[#allocation2 + $0xf9] sm:$0xff] }
 0x1ad   : > { %v1263_v48 = vpop.permute.xlu1 %1262 }
 0x1ae   : > { %1348 = vst.msk [vmem:[#allocation3 + $0x58] sm:$0xff] %vm1336_vm8, %v1263_v48  ;;  %v1269_v45 = vpop.permute.xlu0 %1268  ;;  %v1582_v48 = vld [vmem:[#allocation2 + $0x111] sm:$0xff] }
 0x1af   : > { %1637 = vrot.lane.b32.xlu1 %v1568_v21, %s4596_s30  ;;  %1351 = vst.msk [vmem:[#allocation3 + $0x70] sm:$0xff] %vm1336_vm8, %v1269_v45 }
 0x1b0   : > { %1824 = vrot.lane.b32.xlu0 %v1758_v22, %s4597_s10 }
 0x1b1   : > { %v1267_v25 = vpop.permute.xlu1 %1266 }
 0x1b2   : > { %1350 = vst.msk [vmem:[#allocation3 + $0x68] sm:$0xff] %vm1336_vm8, %v1267_v25  ;;  %v1273_v34 = vpop.permute.xlu0 %1272 }
 0x1b3   : > { %1822 = vrot.lane.b32.xlu1 %v1757_v29, %s4597_s10  ;;  %1353 = vst.msk [vmem:[#allocation3 + $0x80] sm:$0xff] %vm1336_vm8, %v1273_v34  ;;  %v1773_v29 = vld [vmem:[#allocation2 + $0xfa] sm:$0xff] }
 0x1b4   : > { %1639 = vrot.lane.b32.xlu0 %v1569_v46, %s4596_s30  ;;  %v1583_v46 = vld [vmem:[#allocation2 + $0x121] sm:$0xff] }
 0x1b5   : > { %v1271_v35 = vpop.permute.xlu1 %1270 }
 0x1b6   : > { %1352 = vst.msk [vmem:[#allocation3 + $0x78] sm:$0xff] %vm1336_vm8, %v1271_v35  ;;  %v1277_v38 = vpop.permute.xlu0 %1276 }
 0x1b7   : > { %1826 = vrot.lane.b32.xlu1 %v1759_v30, %s4597_s10  ;;  %1355 = vst.msk [vmem:[#allocation3 + $0x90] sm:$0xff] %vm1336_vm8, %v1277_v38  ;;  %v1775_v30 = vld [vmem:[#allocation2 + $0x112] sm:$0xff] }
 0x1b8   : > { %1828 = vrot.lane.b32.xlu0 %v1760_v32, %s4597_s10  ;;  %v1585_v32 = vld [vmem:[#allocation2 + $0x139] sm:$0xff] }
 0x1b9   : > { %v1275_v37 = vpop.permute.xlu1 %1274 }
 0x1ba   : > { %1354 = vst.msk [vmem:[#allocation3 + $0x88] sm:$0xff] %vm1336_vm8, %v1275_v37  ;;  %v1281_v40 = vpop.permute.xlu0 %1280 }
 0x1bb   : > { %1641 = vrot.lane.b32.xlu1 %v1570_v39, %s4596_s30  ;;  %1357 = vst.msk [vmem:[#allocation3 + $0xa0] sm:$0xff] %vm1336_vm8, %v1281_v40  ;;  %v1584_v39 = vld [vmem:[#allocation2 + $0x129] sm:$0xff] }
 0x1bc   : > { %1832 = vrot.lane.b32.xlu0 %v1762_v51, %s4597_s10  ;;  %v1776_v51 = vld [vmem:[#allocation2 + $0x122] sm:$0xff] }
 0x1bd   : > { %v1279_v52 = vpop.permute.xlu1 %1278 }
 0x1be   : > { %1356 = vst.msk [vmem:[#allocation3 + $0x98] sm:$0xff] %vm1336_vm8, %v1279_v52  ;;  %v1285_v55 = vpop.permute.xlu0 %1284 }
 0x1bf   : > { %1830 = vrot.lane.b32.xlu1 %v1761_v54, %s4597_s10  ;;  %1359 = vst.msk [vmem:[#allocation3 + $0xb0] sm:$0xff] %vm1336_vm8, %v1285_v55  ;;  %v1586_v54 = vld [vmem:[#allocation2 + $0x141] sm:$0xff] }
 0x1c0   : > { %1643 = vrot.lane.b32.xlu0 %v1571_v57, %s4596_s30  ;;  %v1778_v57 = vld [vmem:[#allocation2 + $0x13a] sm:$0xff] }
 0x1c1   : > { %v1283_v58 = vpop.permute.xlu1 %1282 }
 0x1c2   : > { %1358 = vst.msk [vmem:[#allocation3 + $0xa8] sm:$0xff] %vm1336_vm8, %v1283_v58  ;;  %v1289_v60 = vpop.permute.xlu0 %1288 }
 0x1c3   : > { %1834 = vrot.lane.b32.xlu1 %v1763_v59, %s4597_s10  ;;  %1361 = vst.msk [vmem:[#allocation3 + $0xc0] sm:$0xff] %vm1336_vm8, %v1289_v60  ;;  %v1777_v59 = vld [vmem:[#allocation2 + $0x12a] sm:$0xff] }
 0x1c4   : > { %1647 = vrot.lane.b32.xlu0 %v1573_v61, %s4596_s30  ;;  %v1587_v61 = vld [vmem:[#allocation2 + $0x151] sm:$0xff] }
 0x1c5   : > { %v1287_v62 = vpop.permute.xlu1 %1286 }
 0x1c6   : > { %1360 = vst.msk [vmem:[#allocation3 + $0xb8] sm:$0xff] %vm1336_vm8, %v1287_v62  ;;  %v1293_v1 = vpop.permute.xlu0 %1292 }
 0x1c7   : > { %1645 = vrot.lane.b32.xlu1 %v1572_v0, %s4596_s30  ;;  %1363 = vst.msk [vmem:[#allocation3 + $0xd0] sm:$0xff] %vm1336_vm8, %v1293_v1  ;;  %v1779_v0 = vld [vmem:[#allocation2 + $0x142] sm:$0xff] }
 0x1c8   : > { %1836 = vrot.lane.b32.xlu0 %v1764_v2, %s4597_s10  ;;  %v1589_v2 = vld [vmem:[#allocation2 + $0x169] sm:$0xff] }
 0x1c9   : > { %v1291_v3 = vpop.permute.xlu1 %1290 }
 0x1ca   : > { %1362 = vst.msk [vmem:[#allocation3 + $0xc8] sm:$0xff] %vm1336_vm8, %v1291_v3  ;;  %v1297_v5 = vpop.permute.xlu0 %1296 }
 0x1cb   : > { %1649 = vrot.lane.b32.xlu1 %v1574_v4, %s4596_s30  ;;  %1365 = vst.msk [vmem:[#allocation3 + $0xe0] sm:$0xff] %vm1336_vm8, %v1297_v5  ;;  %v1588_v4 = vld [vmem:[#allocation2 + $0x159] sm:$0xff] }
 0x1cc   : > { %1840 = vrot.lane.b32.xlu0 %v1766_v6, %s4597_s10  ;;  %v1780_v6 = vld [vmem:[#allocation2 + $0x152] sm:$0xff] }
 0x1cd   : > { %v1295_v7 = vpop.permute.xlu1 %1294 }
 0x1ce   : > { %1364 = vst.msk [vmem:[#allocation3 + $0xd8] sm:$0xff] %vm1336_vm8, %v1295_v7  ;;  %v1301_v9 = vpop.permute.xlu0 %1300 }
 0x1cf   : > { %1838 = vrot.lane.b32.xlu1 %v1765_v8, %s4597_s10  ;;  %1367 = vst.msk [vmem:[#allocation3 + $0xf0] sm:$0xff] %vm1336_vm8, %v1301_v9  ;;  %v1590_v8 = vld [vmem:[#allocation2 + $0x171] sm:$0xff] }
 0x1d0   : > { %1651 = vrot.lane.b32.xlu0 %v1575_v11, %s4596_s30  ;;  %v1782_v11 = vld [vmem:[#allocation2 + $0x16a] sm:$0xff] }
 0x1d1   : > { %v1299_v12 = vpop.permute.xlu1 %1298 }
 0x1d2   : > { %1366 = vst.msk [vmem:[#allocation3 + $0xe8] sm:$0xff] %vm1336_vm8, %v1299_v12  ;;  %v1435_v16 = vpop.permute.xlu0 %1434 }
 0x1d3   : > { %1842 = vrot.lane.b32.xlu1 %v1767_v15, %s4597_s10  ;;  %1531 = vst.msk [vmem:[#allocation3] sm:$0xff] %vm1530_vm10, %v1435_v16  ;;  %v1781_v15 = vld [vmem:[#allocation2 + $0x15a] sm:$0xff]  ;;  %v1783_v16 = vld [vmem:[#allocation2 + $0x172] sm:$0xff] }
 0x1d4   : > { %1655 = vrot.lane.b32.xlu0 %v1577_v19, %s4596_s30 }
 0x1d5   : > { %v1303_v23 = vpop.permute.xlu1 %1302 }
 0x1d6   : > { %1368 = vst.msk [vmem:[#allocation3 + $0xf8] sm:$0xff] %vm1336_vm8, %v1303_v23  ;;  %v1439_v42 = vpop.permute.xlu0 %1438  ;;  %v1593_v23 = vld [vmem:[#allocation2 + $0x199] sm:$0xff]  ;;  %vm3995_vm8 = vcmask 588800  }
 0x1d7   : > { %1653 = vrot.lane.b32.xlu1 %v1576_v41, %s4596_s30  ;;  %1533 = vst.msk [vmem:[#allocation3 + $0x10] sm:$0xff] %vm1530_vm10, %v1439_v42 }
 0x1d8   : > { %1844 = vrot.lane.b32.xlu0 %v1768_v20, %s4597_s10 }
 0x1d9   : > { %v1437_v43 = vpop.permute.xlu1 %1436 }
 0x1da   : > { %1532 = vst.msk [vmem:[#allocation3 + $0x8] sm:$0xff] %vm1530_vm10, %v1437_v43  ;;  %v1443_v44 = vpop.permute.xlu0 %1442  ;;  %v1594_v43 = vld [vmem:[#allocation2 + $0x1a1] sm:$0xff] }
 0x1db   : > { %1657 = vrot.lane.b32.xlu1 %v1578_v36, %s4596_s30  ;;  %1535 = vst.msk [vmem:[#allocation3 + $0x20] sm:$0xff] %vm1530_vm10, %v1443_v44 }
 0x1dc   : > { %1848 = vrot.lane.b32.xlu0 %v1770_v24, %s4597_s10  ;;  %v1786_v24 = vld [vmem:[#allocation2 + $0x19a] sm:$0xff] }
 0x1dd   : > { %v1441_v50 = vpop.permute.xlu1 %1440 }
 0x1de   : > { %1534 = vst.msk [vmem:[#allocation3 + $0x18] sm:$0xff] %vm1530_vm10, %v1441_v50  ;;  %v1447_v53 = vpop.permute.xlu0 %1446  ;;  %v1787_v50 = vld [vmem:[#allocation2 + $0x1a2] sm:$0xff] }
 0x1df   : > { %1846 = vrot.lane.b32.xlu1 %v1769_v47, %s4597_s10  ;;  %1537 = vst.msk [vmem:[#allocation3 + $0x30] sm:$0xff] %vm1530_vm10, %v1447_v53 }
 0x1e0   : > { %1659 = vrot.lane.b32.xlu0 %v1579_v33, %s4596_s30 }
 0x1e1   : > { %v1445_v63 = vpop.permute.xlu1 %1444 }
 0x1e2   : > { %1536 = vst.msk [vmem:[#allocation3 + $0x28] sm:$0xff] %vm1530_vm10, %v1445_v63  ;;  %v1451_v13 = vpop.permute.xlu0 %1450 }
 0x1e3   : > { %1850 = vrot.lane.b32.xlu1 %v1771_v56, %s4597_s10  ;;  %1539 = vst.msk [vmem:[#allocation3 + $0x40] sm:$0xff] %vm1530_vm10, %v1451_v13 }
 0x1e4   : > { %1663 = vrot.lane.b32.xlu0 %v1581_v10, %s4596_s30 }
 0x1e5   : > { %v1449_v17 = vpop.permute.xlu1 %1448 }
 0x1e6   : > { %1538 = vst.msk [vmem:[#allocation3 + $0x38] sm:$0xff] %vm1530_vm10, %v1449_v17  ;;  %v1455_v21 = vpop.permute.xlu0 %1454 }
 0x1e7   : > { %1661 = vrot.lane.b32.xlu1 %v1580_v14, %s4596_s30  ;;  %1541 = vst.msk [vmem:[#allocation3 + $0x50] sm:$0xff] %vm1530_vm10, %v1455_v21 }
 0x1e8   : > { %1852 = vrot.lane.b32.xlu0 %v1772_v18, %s4597_s10 }
 0x1e9   : > { %v1453_v22 = vpop.permute.xlu1 %1452 }
 0x1ea   : > { %1540 = vst.msk [vmem:[#allocation3 + $0x48] sm:$0xff] %vm1530_vm10, %v1453_v22  ;;  %v1459_v45 = vpop.permute.xlu0 %1458 }
 0x1eb   : > { %1665 = vrot.lane.b32.xlu1 %v1582_v48, %s4596_s30  ;;  %1543 = vst.msk [vmem:[#allocation3 + $0x60] sm:$0xff] %vm1530_vm10, %v1459_v45 }
 0x1ec   : > { %1856 = vrot.lane.b32.xlu0 %v1774_v49, %s4597_s10 }
 0x1ed   : > { %v1457_v25 = vpop.permute.xlu1 %1456 }
 0x1ee   : > { %1542 = vst.msk [vmem:[#allocation3 + $0x58] sm:$0xff] %vm1530_vm10, %v1457_v25  ;;  %v1463_v34 = vpop.permute.xlu0 %1462 }
 0x1ef   : > { %1854 = vrot.lane.b32.xlu1 %v1773_v29, %s4597_s10  ;;  %1545 = vst.msk [vmem:[#allocation3 + $0x70] sm:$0xff] %vm1530_vm10, %v1463_v34 }
 0x1f0   : > { %1667 = vrot.lane.b32.xlu0 %v1583_v46, %s4596_s30 }
 0x1f1   : > { %v1461_v35 = vpop.permute.xlu1 %1460 }
 0x1f2   : > { %1544 = vst.msk [vmem:[#allocation3 + $0x68] sm:$0xff] %vm1530_vm10, %v1461_v35  ;;  %v1467_v38 = vpop.permute.xlu0 %1466 }
 0x1f3   : > { %1858 = vrot.lane.b32.xlu1 %v1775_v30, %s4597_s10  ;;  %1547 = vst.msk [vmem:[#allocation3 + $0x80] sm:$0xff] %vm1530_vm10, %v1467_v38 }
 0x1f4   : > { %1671 = vrot.lane.b32.xlu0 %v1585_v32, %s4596_s30 }
 0x1f5   : > { %v1465_v37 = vpop.permute.xlu1 %1464 }
 0x1f6   : > { %1546 = vst.msk [vmem:[#allocation3 + $0x78] sm:$0xff] %vm1530_vm10, %v1465_v37  ;;  %v1471_v40 = vpop.permute.xlu0 %1470 }
 0x1f7   : > { %1669 = vrot.lane.b32.xlu1 %v1584_v39, %s4596_s30  ;;  %1549 = vst.msk [vmem:[#allocation3 + $0x90] sm:$0xff] %vm1530_vm10, %v1471_v40 }
 0x1f8   : > { %1860 = vrot.lane.b32.xlu0 %v1776_v51, %s4597_s10 }
 0x1f9   : > { %v1469_v52 = vpop.permute.xlu1 %1468 }
 0x1fa   : > { %1548 = vst.msk [vmem:[#allocation3 + $0x88] sm:$0xff] %vm1530_vm10, %v1469_v52  ;;  %v1475_v55 = vpop.permute.xlu0 %1474 }
 0x1fb   : > { %1673 = vrot.lane.b32.xlu1 %v1586_v54, %s4596_s30  ;;  %1551 = vst.msk [vmem:[#allocation3 + $0xa0] sm:$0xff] %vm1530_vm10, %v1475_v55 }
 0x1fc   : > { %1864 = vrot.lane.b32.xlu0 %v1778_v57, %s4597_s10 }
 0x1fd   : > { %v1473_v58 = vpop.permute.xlu1 %1472 }
 0x1fe   : > { %1550 = vst.msk [vmem:[#allocation3 + $0x98] sm:$0xff] %vm1530_vm10, %v1473_v58  ;;  %v1479_v60 = vpop.permute.xlu0 %1478 }
 0x1ff   : > { %1862 = vrot.lane.b32.xlu1 %v1777_v59, %s4597_s10  ;;  %1553 = vst.msk [vmem:[#allocation3 + $0xb0] sm:$0xff] %vm1530_vm10, %v1479_v60 }
 0x200   : > { %1675 = vrot.lane.b32.xlu0 %v1587_v61, %s4596_s30 }
 0x201   : > { %v1477_v62 = vpop.permute.xlu1 %1476 }
 0x202   : > { %1552 = vst.msk [vmem:[#allocation3 + $0xa8] sm:$0xff] %vm1530_vm10, %v1477_v62  ;;  %v1483_v1 = vpop.permute.xlu0 %1482 }
 0x203   : > { %1866 = vrot.lane.b32.xlu1 %v1779_v0, %s4597_s10  ;;  %1555 = vst.msk [vmem:[#allocation3 + $0xc0] sm:$0xff] %vm1530_vm10, %v1483_v1 }
 0x204   : > { %1679 = vrot.lane.b32.xlu0 %v1589_v2, %s4596_s30 }
 0x205   : > { %v1481_v3 = vpop.permute.xlu1 %1480 }
 0x206   : > { %1554 = vst.msk [vmem:[#allocation3 + $0xb8] sm:$0xff] %vm1530_vm10, %v1481_v3  ;;  %v1487_v5 = vpop.permute.xlu0 %1486 }
 0x207   : > { %1677 = vrot.lane.b32.xlu1 %v1588_v4, %s4596_s30  ;;  %1557 = vst.msk [vmem:[#allocation3 + $0xd0] sm:$0xff] %vm1530_vm10, %v1487_v5 }
 0x208   : > { %1868 = vrot.lane.b32.xlu0 %v1780_v6, %s4597_s10 }
 0x209   : > { %v1485_v7 = vpop.permute.xlu1 %1484 }
 0x20a   : > { %1556 = vst.msk [vmem:[#allocation3 + $0xc8] sm:$0xff] %vm1530_vm10, %v1485_v7  ;;  %v1491_v9 = vpop.permute.xlu0 %1490 }
 0x20b   : > { %1681 = vrot.lane.b32.xlu1 %v1590_v8, %s4596_s30  ;;  %1559 = vst.msk [vmem:[#allocation3 + $0xe0] sm:$0xff] %vm1530_vm10, %v1491_v9 }
 0x20c   : > { %1872 = vrot.lane.b32.xlu0 %v1782_v11, %s4597_s10 }
 0x20d   : > { %v1489_v12 = vpop.permute.xlu1 %1488 }
 0x20e   : > { %1558 = vst.msk [vmem:[#allocation3 + $0xd8] sm:$0xff] %vm1530_vm10, %v1489_v12  ;;  %v1495_v19 = vpop.permute.xlu0 %1494 }
 0x20f   : > { %1870 = vrot.lane.b32.xlu1 %v1781_v15, %s4597_s10  ;;  %1561 = vst.msk [vmem:[#allocation3 + $0xf0] sm:$0xff] %vm1530_vm10, %v1495_v19 }
 0x210   : > { %1683 = vrot.lane.b32.xlu0 %v5305_v28, %s4596_s30 }
 0x211   : > { %v1493_v41 = vpop.permute.xlu1 %1492 }
 0x212   : > { %1560 = vst.msk [vmem:[#allocation3 + $0xe8] sm:$0xff] %vm1530_vm10, %v1493_v41  ;;  %v1628_v20 = vpop.permute.xlu0 %1627 }
 0x213   : > { %1874 = vrot.lane.b32.xlu1 %v1783_v16, %s4597_s10  ;;  %1724 = vst.msk [vmem:[#allocation3] sm:$0xff] %vm1723_vm11, %v1628_v20 }
 0x214   : > { %1687 = vrot.lane.b32.xlu0 %v1593_v23, %s4596_s30 }
 0x215   : > { %v1497_v42 = vpop.permute.xlu1 %1496 }
 0x216   : > { %1562 = vst.msk [vmem:[#allocation3 + $0xf8] sm:$0xff] %vm1530_vm10, %v1497_v42  ;;  %v1632_v36 = vpop.permute.xlu0 %1631 }
 0x217   : > { %1685 = vrot.lane.b32.xlu1 %v5315_v27, %s4596_s30  ;;  %1726 = vst.msk [vmem:[#allocation3 + $0x10] sm:$0xff] %vm1723_vm11, %v1632_v36 }
 0x218   : > { %1876 = vrot.lane.b32.xlu0 %v5405_v26, %s4597_s10 }
 0x219   : > { %v1630_v28 = vpop.permute.xlu1 %1629 }
 0x21a   : > { %1725 = vst.msk [vmem:[#allocation3 + $0x8] sm:$0xff] %vm1723_vm11, %v1630_v28  ;;  %v1636_v44 = vpop.permute.xlu0 %1635 }
 0x21b   : > { %1689 = vrot.lane.b32.xlu1 %v1594_v43, %s4596_s30  ;;  %1728 = vst.msk [vmem:[#allocation3 + $0x20] sm:$0xff] %vm1723_vm11, %v1636_v44 }
 0x21c   : > { %1880 = vrot.lane.b32.xlu0 %v1786_v24, %s4597_s10 }
 0x21d   : > { %v1634_v47 = vpop.permute.xlu1 %1633 }
 0x21e   : > { %1727 = vst.msk [vmem:[#allocation3 + $0x18] sm:$0xff] %vm1723_vm11, %v1634_v47  ;;  %v1821_v27 = vpop.permute.xlu0 %1820 }
 0x21f   : > { %1878 = vrot.lane.b32.xlu1 %v5415_v31, %s4597_s10  ;;  %1917 = vst.msk [vmem:[#allocation3] sm:$0xff] %vm1916_vm12, %v1821_v27 }
 0x221   : > { %v1638_v26 = vpop.permute.xlu1 %1637 }
 0x222   : > { %1729 = vst.msk [vmem:[#allocation3 + $0x28] sm:$0xff] %vm1723_vm11, %v1638_v26  ;;  %v1825_v33 = vpop.permute.xlu0 %1824 }
 0x223   : > { %1882 = vrot.lane.b32.xlu1 %v1787_v50, %s4597_s10  ;;  %1919 = vst.msk [vmem:[#allocation3 + $0x10] sm:$0xff] %vm1916_vm12, %v1825_v33 }
 0x225   : > { %v1823_v53 = vpop.permute.xlu1 %1822 }
 0x226   : > { %1918 = vst.msk [vmem:[#allocation3 + $0x8] sm:$0xff] %vm1916_vm12, %v1823_v53  ;;  %v1640_v56 = vpop.permute.xlu0 %1639  ;;  %v1949_v31 = vld [vmem:[#allocation3] sm:$0xff] }
 0x227   : > { %1730 = vst.msk [vmem:[#allocation3 + $0x30] sm:$0xff] %vm1723_vm11, %v1640_v56 }
 0x229   : > { %v1827_v63 = vpop.permute.xlu1 %1826 }
 0x22a   : > { %1920 = vst.msk [vmem:[#allocation3 + $0x18] sm:$0xff] %vm1916_vm12, %v1827_v63  ;;  %v1829_v10 = vpop.permute.xlu0 %1828  ;;  %v1951_v18 = vld [vmem:[#allocation3 + $0x10] sm:$0xff] }
 0x22b   : > { %1921 = vst.msk [vmem:[#allocation3 + $0x20] sm:$0xff] %vm1916_vm12, %v1829_v10 }
 0x22d   : > { %v1642_v13 = vpop.permute.xlu1 %1641  ;;  %v1950_v14 = vld [vmem:[#allocation3 + $0x8] sm:$0xff] }
 0x22e   : > { %1731 = vst.msk [vmem:[#allocation3 + $0x38] sm:$0xff] %vm1723_vm11, %v1642_v13  ;;  %v1981_v17 = vpack.c.bf16 %v1950_v14, %v1949_v31  ;;  %v1833_v21 = vpop.permute.xlu0 %1832 }
 0x22f   : > { %1923 = vst.msk [vmem:[#allocation3 + $0x30] sm:$0xff] %vm1916_vm12, %v1833_v21 }
 0x230   : > { %4476 = vmatprep.mubr.msk.bf16.mxu0 %vm2018_vm13, %v1981_v17 }
 0x231   : > { %v1831_v48 = vpop.permute.xlu1 %1830  ;;  %v1952_v22 = vld [vmem:[#allocation3 + $0x18] sm:$0xff] }
 0x232   : > { %1922 = vst.msk [vmem:[#allocation3 + $0x28] sm:$0xff] %vm1916_vm12, %v1831_v48  ;;  %v1982_v49 = vpack.c.bf16 %v1952_v22, %v1951_v18  ;;  %v1644_v45 = vpop.permute.xlu0 %1643  ;;  %v1953_v25 = vld [vmem:[#allocation3 + $0x20] sm:$0xff] }
 0x233   : > { %1732 = vst.msk [vmem:[#allocation3 + $0x40] sm:$0xff] %vm1723_vm11, %v1644_v45 }
 0x234   : > { %4477 = vmatmul.mubr.msk.bf16.vlgmr.msra.gmra.mxu0 %vm2018_vm13, %v1982_v49 }
 0x235   : > { %v1835_v29 = vpop.permute.xlu1 %1834 }
 0x236   : > { %1924 = vst.msk [vmem:[#allocation3 + $0x38] sm:$0xff] %vm1916_vm12, %v1835_v29  ;;  %v1648_v46 = vpop.permute.xlu0 %1647  ;;  %v1955_v32 = vld [vmem:[#allocation3 + $0x30] sm:$0xff] }
 0x237   : > { %1734 = vst.msk [vmem:[#allocation3 + $0x50] sm:$0xff] %vm1723_vm11, %v1648_v46 }
 0x239   : > { %v1646_v34 = vpop.permute.xlu1 %1645  ;;  %v1954_v30 = vld [vmem:[#allocation3 + $0x28] sm:$0xff] }
 0x23a   : > { %1733 = vst.msk [vmem:[#allocation3 + $0x48] sm:$0xff] %vm1723_vm11, %v1646_v34  ;;  %v1983_v35 = vpack.c.bf16 %v1954_v30, %v1953_v25  ;;  %v1837_v38 = vpop.permute.xlu0 %1836  ;;  %v2370_v34 = vld [vmem:[#allocation2 + $0x1] sm:$0xff] }
 0x23b   : > { %1925 = vst.msk [vmem:[#allocation3 + $0x40] sm:$0xff] %vm1916_vm12, %v1837_v38  ;;  %2434 = vrot.lane.b32.xlu0 %v2370_v34, %s4591_s25 }
 0x23c   : > { %4480 = vmatprep.mubr.msk.bf16.mxu0 %vm2018_vm13, %v1983_v35 }
 0x23d   : > { %v1650_v39 = vpop.permute.xlu1 %1649  ;;  %v1956_v37 = vld [vmem:[#allocation3 + $0x38] sm:$0xff] }
 0x23e   : > { %1735 = vst.msk [vmem:[#allocation3 + $0x58] sm:$0xff] %vm1723_vm11, %v1650_v39  ;;  %v1984_v51 = vpack.c.bf16 %v1956_v37, %v1955_v32  ;;  %v1841_v40 = vpop.permute.xlu0 %1840  ;;  %v2371_v32 = vld [vmem:[#allocation2 + $0x9] sm:$0xff] }
 0x23f   : > { %1927 = vst.msk [vmem:[#allocation3 + $0x50] sm:$0xff] %vm1916_vm12, %v1841_v40  ;;  %2436 = vrot.lane.b32.xlu1 %v2371_v32, %s4591_s25 }
 0x240   : > { %4481 = vmatmul.mubr.msk.bf16.gmra.mxu0 %vm2018_vm13, %v1984_v51 }
 0x241   : > { %v1839_v54 = vpop.permute.xlu1 %1838 }
 0x242   : > { %1926 = vst.msk [vmem:[#allocation3 + $0x48] sm:$0xff] %vm1916_vm12, %v1839_v54  ;;  %v1652_v52 = vpop.permute.xlu0 %1651  ;;  %v1957_v55 = vld [vmem:[#allocation3 + $0x40] sm:$0xff] }
 0x243   : > { %1736 = vst.msk [vmem:[#allocation3 + $0x60] sm:$0xff] %vm1723_vm11, %v1652_v52 }
 0x245   : > { %v1843_v57 = vpop.permute.xlu1 %1842 }
 0x246   : > { %1928 = vst.msk [vmem:[#allocation3 + $0x58] sm:$0xff] %vm1916_vm12, %v1843_v57  ;;  %v1656_v59 = vpop.permute.xlu0 %1655  ;;  %v1959_v0 = vld [vmem:[#allocation3 + $0x50] sm:$0xff] }
 0x247   : > { %1738 = vst.msk [vmem:[#allocation3 + $0x70] sm:$0xff] %vm1723_vm11, %v1656_v59 }
 0x249   : > { %v1654_v58 = vpop.permute.xlu1 %1653  ;;  %v1958_v61 = vld [vmem:[#allocation3 + $0x48] sm:$0xff] }
 0x24a   : > { %1737 = vst.msk [vmem:[#allocation3 + $0x68] sm:$0xff] %vm1723_vm11, %v1654_v58  ;;  %v1985_v60 = vpack.c.bf16 %v1958_v61, %v1957_v55  ;;  %v1845_v62 = vpop.permute.xlu0 %1844 }
 0x24b   : > { %1929 = vst.msk [vmem:[#allocation3 + $0x60] sm:$0xff] %vm1916_vm12, %v1845_v62 }
 0x24c   : > { %4484 = vmatprep.mubr.msk.bf16.mxu0 %vm2018_vm13, %v1985_v60 }
 0x24d   : > { %v1658_v2 = vpop.permute.xlu1 %1657  ;;  %v1960_v1 = vld [vmem:[#allocation3 + $0x58] sm:$0xff] }
 0x24e   : > { %1739 = vst.msk [vmem:[#allocation3 + $0x78] sm:$0xff] %vm1723_vm11, %v1658_v2  ;;  %v1986_v4 = vpack.c.bf16 %v1960_v1, %v1959_v0  ;;  %v1849_v3 = vpop.permute.xlu0 %1848 }
 0x24f   : > { %1931 = vst.msk [vmem:[#allocation3 + $0x70] sm:$0xff] %vm1916_vm12, %v1849_v3 }
 0x250   : > { %4485 = vmatmul.mubr.msk.bf16.gmra.mxu0 %vm2018_vm13, %v1986_v4 }
 0x251   : > { %v1847_v6 = vpop.permute.xlu1 %1846 }
 0x252   : > { %1930 = vst.msk [vmem:[#allocation3 + $0x68] sm:$0xff] %vm1916_vm12, %v1847_v6  ;;  %v1660_v5 = vpop.permute.xlu0 %1659  ;;  %v1961_v7 = vld [vmem:[#allocation3 + $0x60] sm:$0xff] }
 0x253   : > { %1740 = vst.msk [vmem:[#allocation3 + $0x80] sm:$0xff] %vm1723_vm11, %v1660_v5 }
 0x255   : > { %v1851_v8 = vpop.permute.xlu1 %1850 }
 0x256   : > { %1932 = vst.msk [vmem:[#allocation3 + $0x78] sm:$0xff] %vm1916_vm12, %v1851_v8  ;;  %v1664_v11 = vpop.permute.xlu0 %1663  ;;  %v1963_v19 = vld [vmem:[#allocation3 + $0x70] sm:$0xff] }
 0x257   : > { %1742 = vst.msk [vmem:[#allocation3 + $0x90] sm:$0xff] %vm1723_vm11, %v1664_v11  ;;  %v2306_v8 = vld [vmem:[#allocation2] sm:$0xff] }
 0x258   : > { %2338 = vst.msk [vmem:[#allocation3] sm:$0xff] %vm226_vm0, %v2306_v8  ;;  %v5735_v11 = vld [vmem:[%s6710_s2] ss:$0 sm:$0xff] }
 0x259   : > { %v1662_v9 = vpop.permute.xlu1 %1661  ;;  %v1962_v15 = vld [vmem:[#allocation3 + $0x68] sm:$0xff] }
 0x25a   : > { %1741 = vst.msk [vmem:[#allocation3 + $0x88] sm:$0xff] %vm1723_vm11, %v1662_v9  ;;  %v1987_v12 = vpack.c.bf16 %v1962_v15, %v1961_v7  ;;  %v1853_v16 = vpop.permute.xlu0 %1852  ;;  %v2307_v9 = vld [vmem:[#allocation2 + $0x8] sm:$0xff] }
 0x25b   : > { %1933 = vst.msk [vmem:[#allocation3 + $0x80] sm:$0xff] %vm1916_vm12, %v1853_v16 }
 0x25c   : > { %4488 = vmatprep.mubr.msk.bf16.mxu0 %vm2018_vm13, %v1987_v12  ;;  %2339 = vst.msk [vmem:[#allocation3 + $0x8] sm:$0xff] %vm226_vm0, %v2307_v9 }
 0x25d   : > { %v1666_v41 = vpop.permute.xlu1 %1665  ;;  %v1964_v23 = vld [vmem:[#allocation3 + $0x78] sm:$0xff] }
 0x25e   : > { %1743 = vst.msk [vmem:[#allocation3 + $0x98] sm:$0xff] %vm1723_vm11, %v1666_v41  ;;  %v1988_v20 = vpack.c.bf16 %v1964_v23, %v1963_v19  ;;  %v1857_v42 = vpop.permute.xlu0 %1856 }
 0x25f   : > { %1935 = vst.msk [vmem:[#allocation3 + $0x90] sm:$0xff] %vm1916_vm12, %v1857_v42 }
 0x260   : > { %4489 = vmatmul.mubr.msk.bf16.gmra.mxu0 %vm2018_vm13, %v1988_v20 }
 0x261   : > { %v1855_v36 = vpop.permute.xlu1 %1854 }
 0x262   : > { %1934 = vst.msk [vmem:[#allocation3 + $0x88] sm:$0xff] %vm1916_vm12, %v1855_v36  ;;  %v1668_v43 = vpop.permute.xlu0 %1667  ;;  %v1965_v24 = vld [vmem:[#allocation3 + $0x80] sm:$0xff] }
 0x263   : > { %1744 = vst.msk [vmem:[#allocation3 + $0xa0] sm:$0xff] %vm1723_vm11, %v1668_v43 }
 0x265   : > { %v1859_v28 = vpop.permute.xlu1 %1858 }
 0x266   : > { %1936 = vst.msk [vmem:[#allocation3 + $0x98] sm:$0xff] %vm1916_vm12, %v1859_v28  ;;  %v1672_v44 = vpop.permute.xlu0 %1671  ;;  %v1967_v26 = vld [vmem:[#allocation3 + $0x90] sm:$0xff] }
 0x267   : > { %1746 = vst.msk [vmem:[#allocation3 + $0xb0] sm:$0xff] %vm1723_vm11, %v1672_v44 }
 0x269   : > { %v1670_v47 = vpop.permute.xlu1 %1669  ;;  %v1966_v27 = vld [vmem:[#allocation3 + $0x88] sm:$0xff] }
 0x26a   : > { %1745 = vst.msk [vmem:[#allocation3 + $0xa8] sm:$0xff] %vm1723_vm11, %v1670_v47  ;;  %v1989_v50 = vpack.c.bf16 %v1966_v27, %v1965_v24  ;;  %v1861_v33 = vpop.permute.xlu0 %1860 }
 0x26b   : > { %1937 = vst.msk [vmem:[#allocation3 + $0xa0] sm:$0xff] %vm1916_vm12, %v1861_v33 }
 0x26c   : > { %4492 = vmatprep.mubr.msk.bf16.mxu0 %vm2018_vm13, %v1989_v50 }
 0x26d   : > { %v1674_v53 = vpop.permute.xlu1 %1673  ;;  %v1968_v56 = vld [vmem:[#allocation3 + $0x98] sm:$0xff] }
 0x26e   : > { %1747 = vst.msk [vmem:[#allocation3 + $0xb8] sm:$0xff] %vm1723_vm11, %v1674_v53  ;;  %v1990_v63 = vpack.c.bf16 %v1968_v56, %v1967_v26  ;;  %v1865_v31 = vpop.permute.xlu0 %1864 }
 0x26f   : > { %1939 = vst.msk [vmem:[#allocation3 + $0xb0] sm:$0xff] %vm1916_vm12, %v1865_v31 }
 0x270   : > { %4493 = vmatmul.mubr.msk.bf16.gmra.mxu0 %vm2018_vm13, %v1990_v63 }
 0x271   : > { %v1863_v10 = vpop.permute.xlu1 %1862 }
 0x272   : > { %1938 = vst.msk [vmem:[#allocation3 + $0xa8] sm:$0xff] %vm1916_vm12, %v1863_v10  ;;  %v1676_v13 = vpop.permute.xlu0 %1675  ;;  %v1969_v17 = vld [vmem:[#allocation3 + $0xa0] sm:$0xff] }
 0x273   : > { %1748 = vst.msk [vmem:[#allocation3 + $0xc0] sm:$0xff] %vm1723_vm11, %v1676_v13 }
 0x275   : > { %v1867_v14 = vpop.permute.xlu1 %1866 }
 0x276   : > { %1940 = vst.msk [vmem:[#allocation3 + $0xb8] sm:$0xff] %vm1916_vm12, %v1867_v14  ;;  %v1680_v18 = vpop.permute.xlu0 %1679  ;;  %v1971_v49 = vld [vmem:[#allocation3 + $0xb0] sm:$0xff] }
 0x277   : > { %1750 = vst.msk [vmem:[#allocation3 + $0xd0] sm:$0xff] %vm1723_vm11, %v1680_v18 }
 0x279   : > { %v1678_v21 = vpop.permute.xlu1 %1677  ;;  %v1970_v48 = vld [vmem:[#allocation3 + $0xa8] sm:$0xff] }
 0x27a   : > { %1749 = vst.msk [vmem:[#allocation3 + $0xc8] sm:$0xff] %vm1723_vm11, %v1678_v21  ;;  %v1991_v22 = vpack.c.bf16 %v1970_v48, %v1969_v17  ;;  %v1869_v45 = vpop.permute.xlu0 %1868 }
 0x27b   : > { %1941 = vst.msk [vmem:[#allocation3 + $0xc0] sm:$0xff] %vm1916_vm12, %v1869_v45 }
 0x27c   : > { %4496 = vmatprep.mubr.msk.bf16.mxu0 %vm2018_vm13, %v1991_v22 }
 0x27d   : > { %v1682_v29 = vpop.permute.xlu1 %1681  ;;  %v1972_v25 = vld [vmem:[#allocation3 + $0xb8] sm:$0xff] }
 0x27e   : > { %1751 = vst.msk [vmem:[#allocation3 + $0xd8] sm:$0xff] %vm1723_vm11, %v1682_v29  ;;  %v1992_v46 = vpack.c.bf16 %v1972_v25, %v1971_v49  ;;  %v1873_v30 = vpop.permute.xlu0 %1872 }
 0x27f   : > { %1943 = vst.msk [vmem:[#allocation3 + $0xd0] sm:$0xff] %vm1916_vm12, %v1873_v30 }
 0x280   : > { %4497 = vmatmul.mubr.msk.bf16.gmra.mxu0 %vm2018_vm13, %v1992_v46 }
 0x281   : > { %v1871_v35 = vpop.permute.xlu1 %1870 }
 0x282   : > { %1942 = vst.msk [vmem:[#allocation3 + $0xc8] sm:$0xff] %vm1916_vm12, %v1871_v35  ;;  %v1684_v38 = vpop.permute.xlu0 %1683  ;;  %v1973_v37 = vld [vmem:[#allocation3 + $0xc0] sm:$0xff] }
 0x283   : > { %1752 = vst.msk [vmem:[#allocation3 + $0xe0] sm:$0xff] %vm1723_vm11, %v1684_v38 }
 0x285   : > { %v1875_v39 = vpop.permute.xlu1 %1874 }
 0x286   : > { %1944 = vst.msk [vmem:[#allocation3 + $0xd8] sm:$0xff] %vm1916_vm12, %v1875_v39  ;;  %v1688_v51 = vpop.permute.xlu0 %1687  ;;  %v1975_v57 = vld [vmem:[#allocation3 + $0xd0] sm:$0xff] }
 0x287   : > { %1754 = vst.msk [vmem:[#allocation3 + $0xf0] sm:$0xff] %vm1723_vm11, %v1688_v51 }
 0x289   : > { %v1686_v40 = vpop.permute.xlu1 %1685  ;;  %v1974_v54 = vld [vmem:[#allocation3 + $0xc8] sm:$0xff] }
 0x28a   : > { %1753 = vst.msk [vmem:[#allocation3 + $0xe8] sm:$0xff] %vm1723_vm11, %v1686_v40  ;;  %v1993_v52 = vpack.c.bf16 %v1974_v54, %v1973_v37  ;;  %v1877_v55 = vpop.permute.xlu0 %1876 }
 0x28b   : > { %1945 = vst.msk [vmem:[#allocation3 + $0xe0] sm:$0xff] %vm1916_vm12, %v1877_v55 }
 0x28c   : > { %4500 = vmatprep.mubr.msk.bf16.mxu0 %vm2018_vm13, %v1993_v52 }
 0x28d   : > { %v1690_v59 = vpop.permute.xlu1 %1689  ;;  %v1976_v58 = vld [vmem:[#allocation3 + $0xd8] sm:$0xff] }
 0x28e   : > { %1755 = vst.msk [vmem:[#allocation3 + $0xf8] sm:$0xff] %vm1723_vm11, %v1690_v59  ;;  %v1994_v61 = vpack.c.bf16 %v1976_v58, %v1975_v57  ;;  %v1881_v60 = vpop.permute.xlu0 %1880 }
 0x28f   : > { %1947 = vst.msk [vmem:[#allocation3 + $0xf0] sm:$0xff] %vm1916_vm12, %v1881_v60 }
 0x290   : > { %4501 = vmatmul.mubr.msk.bf16.gmra.mxu0 %vm2018_vm13, %v1994_v61 }
 0x291   : > { %v1879_v0 = vpop.permute.xlu1 %1878 }
 0x292   : > { %1946 = vst.msk [vmem:[#allocation3 + $0xe8] sm:$0xff] %vm1916_vm12, %v1879_v0  ;;  %v1977_v2 = vld [vmem:[#allocation3 + $0xe0] sm:$0xff] }
 0x295   : > { %v1883_v62 = vpop.permute.xlu1 %1882 }
 0x296   : > { %1948 = vst.msk [vmem:[#allocation3 + $0xf8] sm:$0xff] %vm1916_vm12, %v1883_v62  ;;  %v1979_v3 = vld [vmem:[#allocation3 + $0xf0] sm:$0xff] }
 0x299   : > { %v1978_v1 = vld [vmem:[#allocation3 + $0xe8] sm:$0xff] }
 0x29a   : > { %v1995_v4 = vpack.c.bf16 %v1978_v1, %v1977_v2 }
 0x29c   : > { %4504 = vmatprep.mubr.msk.bf16.mxu0 %vm2018_vm13, %v1995_v4 }
 0x29d   : > { %v1980_v6 = vld [vmem:[#allocation3 + $0xf8] sm:$0xff] }
 0x29e   : > { %v1996_v5 = vpack.c.bf16 %v1980_v6, %v1979_v3 }
 0x2a0   : > { %4505 = vmatmul.mubr.msk.bf16.gmra.mxu0 %vm2018_vm13, %v1996_v5 }
 0x2ad   : > { %v2435_v7 = vpop.permute.xlu0 %2434 }
 0x2ae   : > { %2531 = vst.msk [vmem:[#allocation3] sm:$0xff] %vm2530_vm14, %v2435_v7 }
 0x2b1   : > { %v2437_v19 = vpop.permute.xlu1 %2436 }
 0x2b2   : > { %2532 = vst.msk [vmem:[#allocation3 + $0x8] sm:$0xff] %vm2530_vm14, %v2437_v19 }
 0x2f4   : > { %v4478_v15 = vpop.f32.mrf.mxu0 }
 0x2f5   : > { %v2114_v12 = vadd.f32 %v4478_v15, %v5735_v11 }
 0x2f6   : > { %v2105_v16 = vpop.f32.mrf.mxu0 }
 0x2f7   : > { %v2234_v41 = vmax.f32 %v2114_v12, 0.0  ;;  %v2106_v23 = vadd.f32 %v5735_v11, %v2105_v16 }
 0x2f8   : > { %v4479_v20 = vpop.f32.mrf.mxu0 }
 0x2f9   : > { %2266 = vst.msk [vmem:[#allocation2 + $0x31] sm:$0xff] %vm226_vm0, %v2234_v41  ;;  %v2232_v42 = vmax.f32 %v2106_v23, 0.0  ;;  %v2117_v36 = vadd.f32 %v4479_v20, %v5735_v11 }
 0x2fa   : > { %v2108_v43 = vpop.f32.mrf.mxu0 }
 0x2fb   : > { %2264 = vst.msk [vmem:[#allocation2 + $0x19] sm:$0xff] %vm226_vm0, %v2232_v42  ;;  %v2235_v28 = vmax.f32 %v2117_v36, 0.0  ;;  %v2109_v24 = vadd.f32 %v5735_v11, %v2108_v43 }
 0x2fd   : > { %2267 = vst.msk [vmem:[#allocation2 + $0x39] sm:$0xff] %vm226_vm0, %v2235_v28  ;;  %v2233_v44 = vmax.f32 %v2109_v24, 0.0 }
 0x2ff   : > { %2265 = vst.msk [vmem:[#allocation2 + $0x21] sm:$0xff] %vm226_vm0, %v2233_v44 }
 0x300   : > { %v4482_v47 = vpop.f32.mrf.mxu0  ;;  %v5748_v27 = vld [vmem:[#allocation2 + $0x30] sm:$0xff] }
 0x301   : > { %v2130_v50 = vadd.f32 %v4482_v47, %v5735_v11  ;;  %2342 = vst.msk [vmem:[#allocation3 + $0x20] sm:$0xff] %vm226_vm0, %v5748_v27  ;;  %v5770_v21 = vld [vmem:[#allocation2 + $0x31] sm:$0xff] }
 0x302   : > { %v2121_v26 = vpop.f32.mrf.mxu0  ;;  %v5753_v33 = vld [vmem:[#allocation2 + $0x19] sm:$0xff] }
 0x303   : > { %v5755_v53 = vld [vmem:[#allocation2 + $0x18] sm:$0xff]  ;;  %v2238_v56 = vmax.f32 %v2130_v50, 0.0  ;;  %v2122_v63 = vadd.f32 %v5735_v11, %v2121_v26  ;;  %2438 = vrot.lane.b32.xlu0 %v5753_v33, %s4591_s25 }
 0x304   : > { %2340 = vst.msk [vmem:[#allocation3 + $0x10] sm:$0xff] %vm226_vm0, %v5755_v53  ;;  %v4483_v31 = vpop.f32.mrf.mxu0  ;;  %v5762_v10 = vld [vmem:[#allocation2 + $0x38] sm:$0xff] }
 0x305   : > { %2270 = vst.msk [vmem:[#allocation2 + $0x61] sm:$0xff] %vm226_vm0, %v2238_v56  ;;  %v2236_v13 = vmax.f32 %v2122_v63, 0.0  ;;  %v2133_v14 = vadd.f32 %v4483_v31, %v5735_v11  ;;  %2343 = vst.msk [vmem:[#allocation3 + $0x28] sm:$0xff] %vm226_vm0, %v5762_v10  ;;  %v5783_v29 = vld [vmem:[#allocation2 + $0x39] sm:$0xff] }
 0x306   : > { %v2124_v17 = vpop.f32.mrf.mxu0  ;;  %v5768_v18 = vld [vmem:[#allocation2 + $0x21] sm:$0xff] }
 0x307   : > { %v5772_v48 = vld [vmem:[#allocation2 + $0x20] sm:$0xff]  ;;  %2268 = vst.msk [vmem:[#allocation2 + $0x49] sm:$0xff] %vm226_vm0, %v2236_v13  ;;  %v2239_v22 = vmax.f32 %v2133_v14, 0.0  ;;  %v2125_v49 = vadd.f32 %v5735_v11, %v2124_v17  ;;  %2440 = vrot.lane.b32.xlu1 %v5768_v18, %s4591_s25  ;;  %2442 = vrot.lane.b32.xlu0 %v5770_v21, %s4591_s25 }
 0x308   : > { %2341 = vst.msk [vmem:[#allocation3 + $0x18] sm:$0xff] %vm226_vm0, %v5772_v48 }
 0x309   : > { %2271 = vst.msk [vmem:[#allocation2 + $0x69] sm:$0xff] %vm226_vm0, %v2239_v22  ;;  %v2237_v45 = vmax.f32 %v2125_v49, 0.0 }
 0x30b   : > { %2269 = vst.msk [vmem:[#allocation2 + $0x51] sm:$0xff] %vm226_vm0, %v2237_v45  ;;  %2444 = vrot.lane.b32.xlu1 %v5783_v29, %s4591_s25 }
 0x30c   : > { %v5788_v25 = vld [vmem:[#allocation2 + $0x60] sm:$0xff] }
 0x30d   : > { %2346 = vst.msk [vmem:[#allocation3 + $0x40] sm:$0xff] %vm226_vm0, %v5788_v25  ;;  %v5805_v37 = vld [vmem:[#allocation2 + $0x61] sm:$0xff] }
 0x30e   : > { %v5792_v46 = vld [vmem:[#allocation2 + $0x49] sm:$0xff] }
 0x30f   : > { %v5794_v34 = vld [vmem:[#allocation2 + $0x48] sm:$0xff]  ;;  %2446 = vrot.lane.b32.xlu0 %v5792_v46, %s4591_s25 }
 0x310   : > { %2344 = vst.msk [vmem:[#allocation3 + $0x30] sm:$0xff] %vm226_vm0, %v5794_v34  ;;  %v4486_v30 = vpop.f32.mrf.mxu0  ;;  %v5801_v32 = vld [vmem:[#allocation2 + $0x68] sm:$0xff] }
 0x311   : > { %v2146_v35 = vadd.f32 %v4486_v30, %v5735_v11  ;;  %2347 = vst.msk [vmem:[#allocation3 + $0x48] sm:$0xff] %vm226_vm0, %v5801_v32  ;;  %v5820_v58 = vld [vmem:[#allocation2 + $0x69] sm:$0xff] }
 0x312   : > { %v2137_v38 = vpop.f32.mrf.mxu0  ;;  %v5803_v39 = vld [vmem:[#allocation2 + $0x51] sm:$0xff] }
 0x313   : > { %v2242_v51 = vmax.f32 %v2146_v35, 0.0  ;;  %v2138_v40 = vadd.f32 %v5735_v11, %v2137_v38  ;;  %2448 = vrot.lane.b32.xlu1 %v5803_v39, %s4591_s25  ;;  %2450 = vrot.lane.b32.xlu0 %v5805_v37, %s4591_s25  ;;  %v5814_v54 = vld [vmem:[#allocation2 + $0x50] sm:$0xff] }
 0x314   : > { %v4487_v52 = vpop.f32.mrf.mxu0  ;;  %2345 = vst.msk [vmem:[#allocation3 + $0x38] sm:$0xff] %vm226_vm0, %v5814_v54 }
 0x315   : > { %2274 = vst.msk [vmem:[#allocation2 + $0x91] sm:$0xff] %vm226_vm0, %v2242_v51  ;;  %v2240_v57 = vmax.f32 %v2138_v40, 0.0  ;;  %v2149_v55 = vadd.f32 %v4487_v52, %v5735_v11 }
 0x316   : > { %v2140_v59 = vpop.f32.mrf.mxu0 }
 0x317   : > { %2272 = vst.msk [vmem:[#allocation2 + $0x79] sm:$0xff] %vm226_vm0, %v2240_v57  ;;  %v2243_v61 = vmax.f32 %v2149_v55, 0.0  ;;  %v2141_v60 = vadd.f32 %v5735_v11, %v2140_v59  ;;  %2452 = vrot.lane.b32.xlu1 %v5820_v58, %s4591_s25 }
 0x319   : > { %2275 = vst.msk [vmem:[#allocation2 + $0x99] sm:$0xff] %vm226_vm0, %v2243_v61  ;;  %v2241_v0 = vmax.f32 %v2141_v60, 0.0 }
 0x31b   : > { %2273 = vst.msk [vmem:[#allocation2 + $0x81] sm:$0xff] %vm226_vm0, %v2241_v0 }
 0x31c   : > { %v5828_v62 = vld [vmem:[#allocation2 + $0x90] sm:$0xff] }
 0x31d   : > { %2350 = vst.msk [vmem:[#allocation3 + $0x60] sm:$0xff] %vm226_vm0, %v5828_v62  ;;  %v5845_v7 = vld [vmem:[#allocation2 + $0x91] sm:$0xff] }
 0x31e   : > { %v5832_v2 = vld [vmem:[#allocation2 + $0x79] sm:$0xff] }
 0x31f   : > { %v5834_v1 = vld [vmem:[#allocation2 + $0x78] sm:$0xff]  ;;  %2454 = vrot.lane.b32.xlu0 %v5832_v2, %s4591_s25 }
 0x320   : > { %2348 = vst.msk [vmem:[#allocation3 + $0x50] sm:$0xff] %vm226_vm0, %v5834_v1  ;;  %v4490_v4 = vpop.f32.mrf.mxu0  ;;  %v5841_v6 = vld [vmem:[#allocation2 + $0x98] sm:$0xff] }
 0x321   : > { %v2162_v3 = vadd.f32 %v4490_v4, %v5735_v11  ;;  %2351 = vst.msk [vmem:[#allocation3 + $0x68] sm:$0xff] %vm226_vm0, %v5841_v6  ;;  %v5860_v20 = vld [vmem:[#allocation2 + $0x99] sm:$0xff] }
 0x322   : > { %v2153_v5 = vpop.f32.mrf.mxu0  ;;  %v5843_v8 = vld [vmem:[#allocation2 + $0x81] sm:$0xff] }
 0x323   : > { %v2246_v9 = vmax.f32 %v2162_v3, 0.0  ;;  %v2154_v15 = vadd.f32 %v5735_v11, %v2153_v5  ;;  %2456 = vrot.lane.b32.xlu1 %v5843_v8, %s4591_s25  ;;  %2458 = vrot.lane.b32.xlu0 %v5845_v7, %s4591_s25  ;;  %v5854_v12 = vld [vmem:[#allocation2 + $0x80] sm:$0xff] }
 0x324   : > { %v4491_v19 = vpop.f32.mrf.mxu0  ;;  %2349 = vst.msk [vmem:[#allocation3 + $0x58] sm:$0xff] %vm226_vm0, %v5854_v12 }
 0x325   : > { %2278 = vst.msk [vmem:[#allocation2 + $0xc1] sm:$0xff] %vm226_vm0, %v2246_v9  ;;  %v2244_v16 = vmax.f32 %v2154_v15, 0.0  ;;  %v2165_v41 = vadd.f32 %v4491_v19, %v5735_v11 }
 0x326   : > { %v2156_v23 = vpop.f32.mrf.mxu0 }
 0x327   : > { %2276 = vst.msk [vmem:[#allocation2 + $0xa9] sm:$0xff] %vm226_vm0, %v2244_v16  ;;  %v2247_v42 = vmax.f32 %v2165_v41, 0.0  ;;  %v2157_v36 = vadd.f32 %v5735_v11, %v2156_v23  ;;  %2460 = vrot.lane.b32.xlu1 %v5860_v20, %s4591_s25 }
 0x329   : > { %2279 = vst.msk [vmem:[#allocation2 + $0xc9] sm:$0xff] %vm226_vm0, %v2247_v42  ;;  %v2245_v43 = vmax.f32 %v2157_v36, 0.0 }
 0x32b   : > { %2277 = vst.msk [vmem:[#allocation2 + $0xb1] sm:$0xff] %vm226_vm0, %v2245_v43 }
 0x32c   : > { %v5868_v28 = vld [vmem:[#allocation2 + $0xc0] sm:$0xff] }
 0x32d   : > { %2354 = vst.msk [vmem:[#allocation3 + $0x80] sm:$0xff] %vm226_vm0, %v5868_v28  ;;  %v2386_v31 = vld [vmem:[#allocation2 + $0xc1] sm:$0xff] }
 0x32e   : > { %v2384_v24 = vld [vmem:[#allocation2 + $0xa9] sm:$0xff] }
 0x32f   : > { %v5872_v44 = vld [vmem:[#allocation2 + $0xa8] sm:$0xff]  ;;  %2462 = vrot.lane.b32.xlu0 %v2384_v24, %s4591_s25 }
 0x330   : > { %2352 = vst.msk [vmem:[#allocation3 + $0x70] sm:$0xff] %vm226_vm0, %v5872_v44  ;;  %v4494_v47 = vpop.f32.mrf.mxu0  ;;  %v5878_v26 = vld [vmem:[#allocation2 + $0xc8] sm:$0xff] }
 0x331   : > { %v2178_v50 = vadd.f32 %v4494_v47, %v5735_v11  ;;  %2355 = vst.msk [vmem:[#allocation3 + $0x88] sm:$0xff] %vm226_vm0, %v5878_v26  ;;  %v2387_v35 = vld [vmem:[#allocation2 + $0xc9] sm:$0xff] }
 0x332   : > { %v2169_v56 = vpop.f32.mrf.mxu0  ;;  %v2385_v63 = vld [vmem:[#allocation2 + $0xb1] sm:$0xff] }
 0x333   : > { %v2250_v13 = vmax.f32 %v2178_v50, 0.0  ;;  %v2170_v14 = vadd.f32 %v5735_v11, %v2169_v56  ;;  %2464 = vrot.lane.b32.xlu1 %v2385_v63, %s4591_s25  ;;  %2466 = vrot.lane.b32.xlu0 %v2386_v31, %s4591_s25  ;;  %v5885_v17 = vld [vmem:[#allocation2 + $0xb0] sm:$0xff] }
 0x334   : > { %v4495_v22 = vpop.f32.mrf.mxu0  ;;  %2353 = vst.msk [vmem:[#allocation3 + $0x78] sm:$0xff] %vm226_vm0, %v5885_v17 }
 0x335   : > { %2282 = vst.msk [vmem:[#allocation2 + $0xf1] sm:$0xff] %vm226_vm0, %v2250_v13  ;;  %v2248_v49 = vmax.f32 %v2170_v14, 0.0  ;;  %v2181_v45 = vadd.f32 %v4495_v22, %v5735_v11 }
 0x336   : > { %v2172_v30 = vpop.f32.mrf.mxu0 }
 0x337   : > { %2280 = vst.msk [vmem:[#allocation2 + $0xd9] sm:$0xff] %vm226_vm0, %v2248_v49  ;;  %v2251_v38 = vmax.f32 %v2181_v45, 0.0  ;;  %v2173_v51 = vadd.f32 %v5735_v11, %v2172_v30  ;;  %2468 = vrot.lane.b32.xlu1 %v2387_v35, %s4591_s25 }
 0x339   : > { %2283 = vst.msk [vmem:[#allocation2 + $0xf9] sm:$0xff] %vm226_vm0, %v2251_v38  ;;  %v2249_v40 = vmax.f32 %v2173_v51, 0.0 }
 0x33b   : > { %2281 = vst.msk [vmem:[#allocation2 + $0xe1] sm:$0xff] %vm226_vm0, %v2249_v40 }
 0x33c   : > { %v5896_v52 = vld [vmem:[#allocation2 + $0xf0] sm:$0xff] }
 0x33d   : > { %2358 = vst.msk [vmem:[#allocation3 + $0xa0] sm:$0xff] %vm226_vm0, %v5896_v52  ;;  %v2390_v3 = vld [vmem:[#allocation2 + $0xf1] sm:$0xff] }
 0x33e   : > { %v2388_v57 = vld [vmem:[#allocation2 + $0xd9] sm:$0xff] }
 0x33f   : > { %v5900_v55 = vld [vmem:[#allocation2 + $0xd8] sm:$0xff]  ;;  %2470 = vrot.lane.b32.xlu0 %v2388_v57, %s4591_s25 }
 0x340   : > { %2356 = vst.msk [vmem:[#allocation3 + $0x90] sm:$0xff] %vm226_vm0, %v5900_v55  ;;  %v4498_v59 = vpop.f32.mrf.mxu0  ;;  %v5906_v60 = vld [vmem:[#allocation2 + $0xf8] sm:$0xff] }
 0x341   : > { %v2194_v61 = vadd.f32 %v4498_v59, %v5735_v11  ;;  %2359 = vst.msk [vmem:[#allocation3 + $0xa8] sm:$0xff] %vm226_vm0, %v5906_v60  ;;  %v2391_v42 = vld [vmem:[#allocation2 + $0xf9] sm:$0xff] }
 0x342   : > { %v2185_v0 = vpop.f32.mrf.mxu0  ;;  %v2389_v4 = vld [vmem:[#allocation2 + $0xe1] sm:$0xff] }
 0x343   : > { %v2254_v5 = vmax.f32 %v2194_v61, 0.0  ;;  %v2186_v9 = vadd.f32 %v5735_v11, %v2185_v0  ;;  %2472 = vrot.lane.b32.xlu1 %v2389_v4, %s4591_s25  ;;  %2474 = vrot.lane.b32.xlu0 %v2390_v3, %s4591_s25  ;;  %v5913_v15 = vld [vmem:[#allocation2 + $0xe0] sm:$0xff] }
 0x344   : > { %v4499_v19 = vpop.f32.mrf.mxu0  ;;  %2357 = vst.msk [vmem:[#allocation3 + $0x98] sm:$0xff] %vm226_vm0, %v5913_v15 }
 0x345   : > { %2286 = vst.msk [vmem:[#allocation2 + $0x121] sm:$0xff] %vm226_vm0, %v2254_v5  ;;  %v2252_v16 = vmax.f32 %v2186_v9, 0.0  ;;  %v2197_v41 = vadd.f32 %v4499_v19, %v5735_v11 }
 0x346   : > { %v2188_v23 = vpop.f32.mrf.mxu0 }
 0x347   : > { %2284 = vst.msk [vmem:[#allocation2 + $0x109] sm:$0xff] %vm226_vm0, %v2252_v16  ;;  %v2255_v36 = vmax.f32 %v2197_v41, 0.0  ;;  %v2189_v43 = vadd.f32 %v5735_v11, %v2188_v23  ;;  %2476 = vrot.lane.b32.xlu1 %v2391_v42, %s4591_s25 }
 0x349   : > { %2287 = vst.msk [vmem:[#allocation2 + $0x129] sm:$0xff] %vm226_vm0, %v2255_v36  ;;  %v2253_v24 = vmax.f32 %v2189_v43, 0.0 }
 0x34b   : > { %2285 = vst.msk [vmem:[#allocation2 + $0x111] sm:$0xff] %vm226_vm0, %v2253_v24 }
 0x34c   : > { %v5924_v47 = vld [vmem:[#allocation2 + $0x120] sm:$0xff] }
 0x34d   : > { %2362 = vst.msk [vmem:[#allocation3 + $0xc0] sm:$0xff] %vm226_vm0, %v5924_v47  ;;  %v2394_v49 = vld [vmem:[#allocation2 + $0x121] sm:$0xff] }
 0x34e   : > { %v2392_v50 = vld [vmem:[#allocation2 + $0x109] sm:$0xff] }
 0x34f   : > { %v5928_v56 = vld [vmem:[#allocation2 + $0x108] sm:$0xff]  ;;  %2478 = vrot.lane.b32.xlu0 %v2392_v50, %s4591_s25 }
 0x350   : > { %2360 = vst.msk [vmem:[#allocation3 + $0xb0] sm:$0xff] %vm226_vm0, %v5928_v56  ;;  %v4502_v63 = vpop.f32.mrf.mxu0  ;;  %v5934_v13 = vld [vmem:[#allocation2 + $0x128] sm:$0xff] }
 0x351   : > { %v2210_v31 = vadd.f32 %v4502_v63, %v5735_v11  ;;  %2363 = vst.msk [vmem:[#allocation3 + $0xc8] sm:$0xff] %vm226_vm0, %v5934_v13  ;;  %v2395_v59 = vld [vmem:[#allocation2 + $0x129] sm:$0xff] }
 0x352   : > { %v2201_v14 = vpop.f32.mrf.mxu0  ;;  %v2393_v22 = vld [vmem:[#allocation2 + $0x111] sm:$0xff] }
 0x353   : > { %v2258_v45 = vmax.f32 %v2210_v31, 0.0  ;;  %v2202_v30 = vadd.f32 %v5735_v11, %v2201_v14  ;;  %2480 = vrot.lane.b32.xlu1 %v2393_v22, %s4591_s25  ;;  %2482 = vrot.lane.b32.xlu0 %v2394_v49, %s4591_s25  ;;  %v5941_v35 = vld [vmem:[#allocation2 + $0x110] sm:$0xff] }
 0x354   : > { %v4503_v38 = vpop.f32.mrf.mxu0  ;;  %2361 = vst.msk [vmem:[#allocation3 + $0xb8] sm:$0xff] %vm226_vm0, %v5941_v35 }
 0x355   : > { %2290 = vst.msk [vmem:[#allocation2 + $0x151] sm:$0xff] %vm226_vm0, %v2258_v45  ;;  %v2256_v51 = vmax.f32 %v2202_v30, 0.0  ;;  %v2213_v40 = vadd.f32 %v4503_v38, %v5735_v11 }
 0x356   : > { %v2204_v57 = vpop.f32.mrf.mxu0 }
 0x357   : > { %2288 = vst.msk [vmem:[#allocation2 + $0x139] sm:$0xff] %vm226_vm0, %v2256_v51  ;;  %v2259_v61 = vmax.f32 %v2213_v40, 0.0  ;;  %v2205_v0 = vadd.f32 %v5735_v11, %v2204_v57  ;;  %2484 = vrot.lane.b32.xlu1 %v2395_v59, %s4591_s25  ;;  %v2563_v57 = vld [vmem:[#allocation2 + $0x2] sm:$0xff] }
 0x359   : > { %2291 = vst.msk [vmem:[#allocation2 + $0x159] sm:$0xff] %vm226_vm0, %v2259_v61  ;;  %v2257_v4 = vmax.f32 %v2205_v0, 0.0  ;;  %v2564_v61 = vld [vmem:[#allocation2 + $0xa] sm:$0xff] }
 0x35b   : > { %2289 = vst.msk [vmem:[#allocation2 + $0x141] sm:$0xff] %vm226_vm0, %v2257_v4  ;;  %v5974_v4 = vld [vmem:[#allocation2 + $0x1a] sm:$0xff] }
 0x35c   : > { %v2334_v3 = vld [vmem:[#allocation2 + $0x150] sm:$0xff] }
 0x35d   : > { %2366 = vst.msk [vmem:[#allocation3 + $0xe0] sm:$0xff] %vm226_vm0, %v2334_v3  ;;  %v2398_v36 = vld [vmem:[#allocation2 + $0x151] sm:$0xff] }
 0x35e   : > { %v2396_v5 = vld [vmem:[#allocation2 + $0x139] sm:$0xff] }
 0x35f   : > { %v2332_v9 = vld [vmem:[#allocation2 + $0x138] sm:$0xff]  ;;  %2486 = vrot.lane.b32.xlu0 %v2396_v5, %s4591_s25 }
 0x360   : > { %2364 = vst.msk [vmem:[#allocation3 + $0xd0] sm:$0xff] %vm226_vm0, %v2332_v9  ;;  %v4506_v19 = vpop.f32.mrf.mxu0  ;;  %v2335_v41 = vld [vmem:[#allocation2 + $0x158] sm:$0xff]  ;;  %v5981_v9 = vld [vmem:[#allocation2 + $0x22] sm:$0xff] }
 0x361   : > { %v2226_v16 = vadd.f32 %v4506_v19, %v5735_v11  ;;  %2367 = vst.msk [vmem:[#allocation3 + $0xe8] sm:$0xff] %vm226_vm0, %v2335_v41  ;;  %v2399_v49 = vld [vmem:[#allocation2 + $0x159] sm:$0xff] }
 0x362   : > { %v2217_v23 = vpop.f32.mrf.mxu0  ;;  %v2397_v42 = vld [vmem:[#allocation2 + $0x141] sm:$0xff]  ;;  %v5983_v19 = vld [vmem:[#allocation2 + $0x32] sm:$0xff] }
 0x363   : > { %v2262_v43 = vmax.f32 %v2226_v16, 0.0  ;;  %v2218_v24 = vadd.f32 %v5735_v11, %v2217_v23  ;;  %2488 = vrot.lane.b32.xlu1 %v2397_v42, %s4591_s25  ;;  %2490 = vrot.lane.b32.xlu0 %v2398_v36, %s4591_s25  ;;  %v2333_v50 = vld [vmem:[#allocation2 + $0x140] sm:$0xff]  ;;  %v5992_v23 = vld [vmem:[#allocation2 + $0x4a] sm:$0xff]  ;;  %v5999_v36 = vld [vmem:[#allocation2 + $0x52] sm:$0xff] }
 0x364   : > { %v4507_v63 = vpop.f32.mrf.mxu0  ;;  %2365 = vst.msk [vmem:[#allocation3 + $0xd8] sm:$0xff] %vm226_vm0, %v2333_v50  ;;  %v5990_v41 = vld [vmem:[#allocation2 + $0x3a] sm:$0xff] }
 0x365   : > { %2294 = vst.msk [vmem:[#allocation2 + $0x181] sm:$0xff] %vm226_vm0, %v2262_v43  ;;  %v2260_v31 = vmax.f32 %v2218_v24, 0.0  ;;  %v2229_v14 = vadd.f32 %v4507_v63, %v5735_v11  ;;  %v6001_v43 = vld [vmem:[#allocation2 + $0x62] sm:$0xff]  ;;  %v6009_v63 = vld [vmem:[#allocation2 + $0x6a] sm:$0xff] }
 0x366   : > { %v2220_v22 = vpop.f32.mrf.mxu0 }
 0x367   : > { %2292 = vst.msk [vmem:[#allocation2 + $0x169] sm:$0xff] %vm226_vm0, %v2260_v31  ;;  %v2263_v45 = vmax.f32 %v2229_v14, 0.0  ;;  %v2221_v30 = vadd.f32 %v5735_v11, %v2220_v22  ;;  %2492 = vrot.lane.b32.xlu1 %v2399_v49, %s4591_s25  ;;  %v6011_v31 = vld [vmem:[#allocation2 + $0x7a] sm:$0xff]  ;;  %v6018_v22 = vld [vmem:[#allocation2 + $0x82] sm:$0xff]  ;;  %v6020_v49 = vld [vmem:[#allocation2 + $0x92] sm:$0xff] }
 0x369   : > { %2295 = vst.msk [vmem:[#allocation2 + $0x189] sm:$0xff] %vm226_vm0, %v2263_v45  ;;  %v2261_v38 = vmax.f32 %v2221_v30, 0.0  ;;  %v6026_v45 = vld [vmem:[#allocation2 + $0x9a] sm:$0xff]  ;;  %v6028_v30 = vld [vmem:[#allocation2 + $0xaa] sm:$0xff] }
 0x36b   : > { %2293 = vst.msk [vmem:[#allocation2 + $0x171] sm:$0xff] %vm226_vm0, %v2261_v38 }
 0x36e   : > { %v2400_v51 = vld [vmem:[#allocation2 + $0x169] sm:$0xff] }
 0x36f   : > { %v2336_v40 = vld [vmem:[#allocation2 + $0x168] sm:$0xff]  ;;  %2494 = vrot.lane.b32.xlu0 %v2400_v51, %s4591_s25  ;;  %v6035_v51 = vld [vmem:[#allocation2 + $0xb2] sm:$0xff] }
 0x370   : > { %2368 = vst.msk [vmem:[#allocation3 + $0xf0] sm:$0xff] %vm226_vm0, %v2336_v40  ;;  %v6037_v40 = vld [vmem:[#allocation2 + $0xc2] sm:$0xff] }
 0x372   : > { %v2401_v59 = vld [vmem:[#allocation2 + $0x171] sm:$0xff] }
 0x373   : > { %2496 = vrot.lane.b32.xlu1 %v2401_v59, %s4591_s25  ;;  %2627 = vrot.lane.b32.xlu0 %v2563_v57, %s4593_s27  ;;  %v2337_v11 = vld [vmem:[#allocation2 + $0x170] sm:$0xff] }
 0x374   : > { %2369 = vst.msk [vmem:[#allocation3 + $0xf8] sm:$0xff] %vm226_vm0, %v2337_v11  ;;  %v6045_v11 = vld [vmem:[#allocation2 + $0xca] sm:$0xff] }
 0x375   : > { %v2439_v0 = vpop.permute.xlu0 %2438 }
 0x376   : > { %2533 = vst.msk [vmem:[#allocation3 + $0x10] sm:$0xff] %vm2530_vm14, %v2439_v0 }
 0x377   : > { %2629 = vrot.lane.b32.xlu1 %v2564_v61, %s4593_s27  ;;  %2631 = vrot.lane.b32.xlu0 %v5974_v4, %s4593_s27  ;;  %v6047_v61 = vld [vmem:[#allocation2 + $0xda] sm:$0xff] }
 0x379   : > { %v2441_v3 = vpop.permute.xlu1 %2440  ;;  %v2443_v5 = vpop.permute.xlu0 %2442 }
 0x37a   : > { %2534 = vst.msk [vmem:[#allocation3 + $0x18] sm:$0xff] %vm2530_vm14, %v2441_v3  ;;  %2535 = vst.msk [vmem:[#allocation3 + $0x20] sm:$0xff] %vm2530_vm14, %v2443_v5  ;;  %v6054_v3 = vld [vmem:[#allocation2 + $0xe2] sm:$0xff]  ;;  %v2583_v5 = vld [vmem:[#allocation2 + $0xf2] sm:$0xff] }
 0x37b   : > { %2633 = vrot.lane.b32.xlu1 %v5981_v9, %s4593_s27  ;;  %2635 = vrot.lane.b32.xlu0 %v5983_v19, %s4593_s27 }
 0x37d   : > { %v2445_v16 = vpop.permute.xlu1 %2444 }
 0x37e   : > { %2536 = vst.msk [vmem:[#allocation3 + $0x28] sm:$0xff] %vm2530_vm14, %v2445_v16  ;;  %v2584_v16 = vld [vmem:[#allocation2 + $0xfa] sm:$0xff] }
 0x37f   : > { %2637 = vrot.lane.b32.xlu1 %v5990_v41, %s4593_s27  ;;  %2639 = vrot.lane.b32.xlu0 %v5992_v23, %s4593_s27 }
 0x381   : > { %v2447_v42 = vpop.permute.xlu0 %2446 }
 0x382   : > { %2537 = vst.msk [vmem:[#allocation3 + $0x30] sm:$0xff] %vm2530_vm14, %v2447_v42  ;;  %v2585_v42 = vld [vmem:[#allocation2 + $0x10a] sm:$0xff] }
 0x383   : > { %2641 = vrot.lane.b32.xlu1 %v5999_v36, %s4593_s27  ;;  %2643 = vrot.lane.b32.xlu0 %v6001_v43, %s4593_s27 }
 0x385   : > { %v2449_v24 = vpop.permute.xlu1 %2448  ;;  %v2451_v50 = vpop.permute.xlu0 %2450 }
 0x386   : > { %2538 = vst.msk [vmem:[#allocation3 + $0x38] sm:$0xff] %vm2530_vm14, %v2449_v24  ;;  %2539 = vst.msk [vmem:[#allocation3 + $0x40] sm:$0xff] %vm2530_vm14, %v2451_v50  ;;  %v2586_v50 = vld [vmem:[#allocation2 + $0x112] sm:$0xff] }
 0x387   : > { %2645 = vrot.lane.b32.xlu1 %v6009_v63, %s4593_s27  ;;  %2647 = vrot.lane.b32.xlu0 %v6011_v31, %s4593_s27 }
 0x389   : > { %v2453_v14 = vpop.permute.xlu1 %2452 }
 0x38a   : > { %2540 = vst.msk [vmem:[#allocation3 + $0x48] sm:$0xff] %vm2530_vm14, %v2453_v14  ;;  %v2587_v14 = vld [vmem:[#allocation2 + $0x122] sm:$0xff] }
 0x38b   : > { %2649 = vrot.lane.b32.xlu1 %v6018_v22, %s4593_s27  ;;  %2651 = vrot.lane.b32.xlu0 %v6020_v49, %s4593_s27 }
 0x38f   : > { %2653 = vrot.lane.b32.xlu1 %v6026_v45, %s4593_s27  ;;  %2655 = vrot.lane.b32.xlu0 %v6028_v30, %s4593_s27 }
 0x391   : > { %v2455_v38 = vpop.permute.xlu0 %2454 }
 0x392   : > { %2541 = vst.msk [vmem:[#allocation3 + $0x50] sm:$0xff] %vm2530_vm14, %v2455_v38 }
 0x393   : > { %2657 = vrot.lane.b32.xlu1 %v6035_v51, %s4593_s27  ;;  %2659 = vrot.lane.b32.xlu0 %v6037_v40, %s4593_s27 }
 0x395   : > { %v2457_v57 = vpop.permute.xlu1 %2456  ;;  %v2459_v59 = vpop.permute.xlu0 %2458 }
 0x396   : > { %2542 = vst.msk [vmem:[#allocation3 + $0x58] sm:$0xff] %vm2530_vm14, %v2457_v57  ;;  %2543 = vst.msk [vmem:[#allocation3 + $0x60] sm:$0xff] %vm2530_vm14, %v2459_v59  ;;  %v2588_v59 = vld [vmem:[#allocation2 + $0x12a] sm:$0xff] }
 0x397   : > { %2661 = vrot.lane.b32.xlu1 %v6045_v11, %s4593_s27  ;;  %2663 = vrot.lane.b32.xlu0 %v6047_v61, %s4593_s27 }
 0x399   : > { %v2461_v0 = vpop.permute.xlu1 %2460 }
 0x39a   : > { %2544 = vst.msk [vmem:[#allocation3 + $0x68] sm:$0xff] %vm2530_vm14, %v2461_v0  ;;  %v2589_v0 = vld [vmem:[#allocation2 + $0x13a] sm:$0xff] }
 0x39b   : > { %2665 = vrot.lane.b32.xlu1 %v6054_v3, %s4593_s27  ;;  %2667 = vrot.lane.b32.xlu0 %v2583_v5, %s4593_s27 }
 0x39f   : > { %2669 = vrot.lane.b32.xlu1 %v2584_v16, %s4593_s27  ;;  %2671 = vrot.lane.b32.xlu0 %v2585_v42, %s4593_s27  ;;  %v2590_v16 = vld [vmem:[#allocation2 + $0x142] sm:$0xff]  ;;  %v2591_v42 = vld [vmem:[#allocation2 + $0x152] sm:$0xff] }
 0x3a1   : > { %v2463_v24 = vpop.permute.xlu0 %2462 }
 0x3a2   : > { %2545 = vst.msk [vmem:[#allocation3 + $0x70] sm:$0xff] %vm2530_vm14, %v2463_v24  ;;  %v2592_v24 = vld [vmem:[#allocation2 + $0x15a] sm:$0xff] }
 0x3a3   : > { %2673 = vrot.lane.b32.xlu1 %v2586_v50, %s4593_s27  ;;  %2675 = vrot.lane.b32.xlu0 %v2587_v14, %s4593_s27  ;;  %v2593_v50 = vld [vmem:[#allocation2 + $0x16a] sm:$0xff] }
 0x3a5   : > { %v2465_v38 = vpop.permute.xlu1 %2464  ;;  %v2467_v57 = vpop.permute.xlu0 %2466 }
 0x3a6   : > { %2546 = vst.msk [vmem:[#allocation3 + $0x78] sm:$0xff] %vm2530_vm14, %v2465_v38  ;;  %2547 = vst.msk [vmem:[#allocation3 + $0x80] sm:$0xff] %vm2530_vm14, %v2467_v57  ;;  %v2594_v38 = vld [vmem:[#allocation2 + $0x172] sm:$0xff] }
 0x3a7   : > { %2677 = vrot.lane.b32.xlu1 %v2588_v59, %s4593_s27  ;;  %2679 = vrot.lane.b32.xlu0 %v2589_v0, %s4593_s27 }
 0x3a9   : > { %v2469_v5 = vpop.permute.xlu1 %2468 }
 0x3aa   : > { %2548 = vst.msk [vmem:[#allocation3 + $0x88] sm:$0xff] %vm2530_vm14, %v2469_v5 }
 0x3ab   : > { %2681 = vrot.lane.b32.xlu1 %v2590_v16, %s4593_s27  ;;  %2683 = vrot.lane.b32.xlu0 %v2591_v42, %s4593_s27 }
 0x3af   : > { %2685 = vrot.lane.b32.xlu1 %v2592_v24, %s4593_s27  ;;  %2687 = vrot.lane.b32.xlu0 %v2593_v50, %s4593_s27 }
 0x3b1   : > { %v2471_v14 = vpop.permute.xlu0 %2470 }
 0x3b2   : > { %2549 = vst.msk [vmem:[#allocation3 + $0x90] sm:$0xff] %vm2530_vm14, %v2471_v14 }
 0x3b3   : > { %2689 = vrot.lane.b32.xlu1 %v2594_v38, %s4593_s27  ;;  %2820 = vrot.lane.b32.xlu0 %v5755_v53, %s4595_s29 }
 0x3b5   : > { %v2473_v57 = vpop.permute.xlu1 %2472  ;;  %v2475_v59 = vpop.permute.xlu0 %2474 }
 0x3b6   : > { %2550 = vst.msk [vmem:[#allocation3 + $0x98] sm:$0xff] %vm2530_vm14, %v2473_v57  ;;  %2551 = vst.msk [vmem:[#allocation3 + $0xa0] sm:$0xff] %vm2530_vm14, %v2475_v59 }
 0x3b7   : > { %2822 = vrot.lane.b32.xlu1 %v5772_v48, %s4595_s29  ;;  %2824 = vrot.lane.b32.xlu0 %v5748_v27, %s4595_s29 }
 0x3b9   : > { %v2477_v0 = vpop.permute.xlu1 %2476 }
 0x3ba   : > { %2552 = vst.msk [vmem:[#allocation3 + $0xa8] sm:$0xff] %vm2530_vm14, %v2477_v0 }
 0x3bb   : > { %2826 = vrot.lane.b32.xlu1 %v5762_v10, %s4595_s29  ;;  %2828 = vrot.lane.b32.xlu0 %v5794_v34, %s4595_s29 }
 0x3bf   : > { %2830 = vrot.lane.b32.xlu1 %v5814_v54, %s4595_s29  ;;  %2832 = vrot.lane.b32.xlu0 %v5788_v25, %s4595_s29 }
 0x3c1   : > { %v2479_v53 = vpop.permute.xlu0 %2478 }
 0x3c2   : > { %2553 = vst.msk [vmem:[#allocation3 + $0xb0] sm:$0xff] %vm2530_vm14, %v2479_v53 }
 0x3c3   : > { %2834 = vrot.lane.b32.xlu1 %v5801_v32, %s4595_s29  ;;  %2836 = vrot.lane.b32.xlu0 %v5834_v1, %s4595_s29 }
 0x3c5   : > { %v2481_v48 = vpop.permute.xlu1 %2480  ;;  %v2483_v5 = vpop.permute.xlu0 %2482 }
 0x3c6   : > { %2554 = vst.msk [vmem:[#allocation3 + $0xb8] sm:$0xff] %vm2530_vm14, %v2481_v48  ;;  %2555 = vst.msk [vmem:[#allocation3 + $0xc0] sm:$0xff] %vm2530_vm14, %v2483_v5 }
 0x3c7   : > { %2838 = vrot.lane.b32.xlu1 %v5854_v12, %s4595_s29  ;;  %2840 = vrot.lane.b32.xlu0 %v5828_v62, %s4595_s29 }
 0x3c9   : > { %v2485_v16 = vpop.permute.xlu1 %2484 }
 0x3ca   : > { %2556 = vst.msk [vmem:[#allocation3 + $0xc8] sm:$0xff] %vm2530_vm14, %v2485_v16 }
 0x3cb   : > { %2842 = vrot.lane.b32.xlu1 %v5841_v6, %s4595_s29  ;;  %2844 = vrot.lane.b32.xlu0 %v5872_v44, %s4595_s29 }
 0x3cf   : > { %2846 = vrot.lane.b32.xlu1 %v5885_v17, %s4595_s29  ;;  %2848 = vrot.lane.b32.xlu0 %v5868_v28, %s4595_s29 }
 0x3d1   : > { %v2487_v42 = vpop.permute.xlu0 %2486 }
 0x3d2   : > { %2557 = vst.msk [vmem:[#allocation3 + $0xd0] sm:$0xff] %vm2530_vm14, %v2487_v42 }
 0x3d3   : > { %2850 = vrot.lane.b32.xlu1 %v5878_v26, %s4595_s29  ;;  %2852 = vrot.lane.b32.xlu0 %v5900_v55, %s4595_s29 }
 0x3d5   : > { %v2489_v24 = vpop.permute.xlu1 %2488  ;;  %v2491_v50 = vpop.permute.xlu0 %2490 }
 0x3d6   : > { %2558 = vst.msk [vmem:[#allocation3 + $0xd8] sm:$0xff] %vm2530_vm14, %v2489_v24  ;;  %2559 = vst.msk [vmem:[#allocation3 + $0xe0] sm:$0xff] %vm2530_vm14, %v2491_v50 }
 0x3d7   : > { %2854 = vrot.lane.b32.xlu1 %v5913_v15, %s4595_s29  ;;  %2856 = vrot.lane.b32.xlu0 %v5896_v52, %s4595_s29 }
 0x3d9   : > { %v2493_v14 = vpop.permute.xlu1 %2492 }
 0x3da   : > { %2560 = vst.msk [vmem:[#allocation3 + $0xe8] sm:$0xff] %vm2530_vm14, %v2493_v14 }
 0x3db   : > { %2858 = vrot.lane.b32.xlu1 %v5906_v60, %s4595_s29  ;;  %3013 = vrot.lane.b32.xlu0 %v5753_v33, %s4597_s10 }
 0x3df   : > { %3015 = vrot.lane.b32.xlu1 %v5768_v18, %s4597_s10  ;;  %3017 = vrot.lane.b32.xlu0 %v5770_v21, %s4597_s10 }
 0x3e1   : > { %v2495_v38 = vpop.permute.xlu0 %2494 }
 0x3e2   : > { %2561 = vst.msk [vmem:[#allocation3 + $0xf0] sm:$0xff] %vm2530_vm14, %v2495_v38 }
 0x3e3   : > { %3019 = vrot.lane.b32.xlu1 %v5783_v29, %s4597_s10  ;;  %3206 = vrot.lane.b32.xlu0 %v5974_v4, %s4598_s15  ;;  %v4576_v4 = vld [vmem:[%s6711_s3 + $0x20] ss:$0 sps:$4 sm:$0xff]  }
 0x3e4   : > { %4551 = vmatprep.subr.msk.bf16.mxu1 %vm4044_vm1, %v4576_v4  ;;  %v4046_v53 = vsel %vm4044_vm1, %v4576_v4, 0 }
 0x3e5   : > { %v2497_v57 = vpop.permute.xlu1 %2496  ;;  %v2628_v59 = vpop.permute.xlu0 %2627  ;;  %4509 = vmatpush3.bf16.msra.mxu1 %v4046_v53 }
 0x3e6   : > { %2562 = vst.msk [vmem:[#allocation3 + $0xf8] sm:$0xff] %vm2530_vm14, %v2497_v57 }
 0x3e7   : > { %2724 = vst.msk [vmem:[#allocation3] sm:$0xff] %vm2723_vm15, %v2628_v59  ;;  %3208 = vrot.lane.b32.xlu1 %v5981_v9, %s4598_s15  ;;  %3210 = vrot.lane.b32.xlu0 %v5983_v19, %s4598_s15 }
 0x3e9   : > { %v2630_v33 = vpop.permute.xlu1 %2629  ;;  %v2632_v18 = vpop.permute.xlu0 %2631 }
 0x3ea   : > { %2725 = vst.msk [vmem:[#allocation3 + $0x8] sm:$0xff] %vm2723_vm15, %v2630_v33  ;;  %2726 = vst.msk [vmem:[#allocation3 + $0x10] sm:$0xff] %vm2723_vm15, %v2632_v18 }
 0x3eb   : > { %3212 = vrot.lane.b32.xlu1 %v5990_v41, %s4598_s15  ;;  %3399 = vrot.lane.b32.xlu0 %v5748_v27, %s4599_s16  ;;  %v4577_v27 = vld [vmem:[%s6711_s3 + $0x18] sm:$0xff]  }
 0x3ec   : > { %4510 = vmatprep.subr.bf16.mxu1 %v4577_v27 }
 0x3ed   : > { %v2634_v9 = vpop.permute.xlu1 %2633  ;;  %v2636_v0 = vpop.permute.xlu0 %2635  ;;  %4511 = vmatpush3.bf16.msra.mxu1 %v4577_v27 }
 0x3ee   : > { %2727 = vst.msk [vmem:[#allocation3 + $0x18] sm:$0xff] %vm2723_vm15, %v2634_v9  ;;  %2728 = vst.msk [vmem:[#allocation3 + $0x20] sm:$0xff] %vm2723_vm15, %v2636_v0 }
 0x3ef   : > { %3401 = vrot.lane.b32.xlu1 %v5762_v10, %s4599_s16  ;;  %3403 = vrot.lane.b32.xlu0 %v5794_v34, %s4599_s16  ;;  %v4578_v10 = vld [vmem:[%s6711_s3 + $0x10] sm:$0xff]  }
 0x3f0   : > { %4512 = vmatprep.subr.bf16.mxu1 %v4578_v10 }
 0x3f1   : > { %v2638_v48 = vpop.permute.xlu1 %2637  ;;  %v2640_v5 = vpop.permute.xlu0 %2639  ;;  %4513 = vmatpush3.bf16.msra.mxu1 %v4578_v10 }
 0x3f2   : > { %2729 = vst.msk [vmem:[#allocation3 + $0x28] sm:$0xff] %vm2723_vm15, %v2638_v48  ;;  %2730 = vst.msk [vmem:[#allocation3 + $0x30] sm:$0xff] %vm2723_vm15, %v2640_v5 }
 0x3f3   : > { %3405 = vrot.lane.b32.xlu1 %v5814_v54, %s4599_s16  ;;  %3592 = vrot.lane.b32.xlu0 %v5770_v21, %s4600_s23  ;;  %v4579_v21 = vld [vmem:[%s6711_s3 + $0x8] sm:$0xff]  }
 0x3f4   : > { %4514 = vmatprep.subr.bf16.mxu1 %v4579_v21 }
 0x3f5   : > { %v2642_v34 = vpop.permute.xlu1 %2641  ;;  %v2644_v16 = vpop.permute.xlu0 %2643  ;;  %4515 = vmatpush3.bf16.msra.mxu1 %v4579_v21 }
 0x3f6   : > { %2731 = vst.msk [vmem:[#allocation3 + $0x38] sm:$0xff] %vm2723_vm15, %v2642_v34  ;;  %2732 = vst.msk [vmem:[#allocation3 + $0x40] sm:$0xff] %vm2723_vm15, %v2644_v16  ;;  %v3536_v16 = vld [vmem:[#allocation2 + $0x91] sm:$0xff] }
 0x3f7   : > { %3594 = vrot.lane.b32.xlu1 %v5783_v29, %s4600_s23  ;;  %3596 = vrot.lane.b32.xlu0 %v5792_v46, %s4600_s23  ;;  %v4580_v29 = vld [vmem:[%s6711_s3] sm:$0xff]  }
 0x3f8   : > { %4516 = vmatprep.subr.bf16.mxu1 %v4580_v29 }
 0x3f9   : > { %v2646_v54 = vpop.permute.xlu1 %2645  ;;  %v2648_v42 = vpop.permute.xlu0 %2647  ;;  %4517 = vmatpush3.bf16.msra.mxu1 %v4580_v29 }
 0x3fa   : > { %2733 = vst.msk [vmem:[#allocation3 + $0x48] sm:$0xff] %vm2723_vm15, %v2646_v54  ;;  %2734 = vst.msk [vmem:[#allocation3 + $0x50] sm:$0xff] %vm2723_vm15, %v2648_v42 }
 0x3fb   : > { %3598 = vrot.lane.b32.xlu1 %v5803_v39, %s4600_s23  ;;  %3785 = vrot.lane.b32.xlu0 %v5983_v19, %s4601_s28 }
 0x3fd   : > { %v2650_v24 = vpop.permute.xlu1 %2649  ;;  %v2652_v50 = vpop.permute.xlu0 %2651 }
 0x3fe   : > { %2735 = vst.msk [vmem:[#allocation3 + $0x58] sm:$0xff] %vm2723_vm15, %v2650_v24  ;;  %2736 = vst.msk [vmem:[#allocation3 + $0x60] sm:$0xff] %vm2723_vm15, %v2652_v50 }
 0x3ff   : > { %3787 = vrot.lane.b32.xlu1 %v5990_v41, %s4601_s28  ;;  %3789 = vrot.lane.b32.xlu0 %v5992_v23, %s4601_s28 }
 0x401   : > { %v2654_v14 = vpop.permute.xlu1 %2653  ;;  %v2656_v19 = vpop.permute.xlu0 %2655 }
 0x402   : > { %2737 = vst.msk [vmem:[#allocation3 + $0x68] sm:$0xff] %vm2723_vm15, %v2654_v14  ;;  %2738 = vst.msk [vmem:[#allocation3 + $0x70] sm:$0xff] %vm2723_vm15, %v2656_v19 }
 0x403   : > { %3791 = vrot.lane.b32.xlu1 %v5999_v36, %s4601_s28  ;;  %3021 = vrot.lane.b32.xlu0 %v5792_v46, %s4597_s10 }
 0x405   : > { %v2658_v38 = vpop.permute.xlu1 %2657  ;;  %v2660_v57 = vpop.permute.xlu0 %2659 }
 0x406   : > { %2739 = vst.msk [vmem:[#allocation3 + $0x78] sm:$0xff] %vm2723_vm15, %v2658_v38  ;;  %2740 = vst.msk [vmem:[#allocation3 + $0x80] sm:$0xff] %vm2723_vm15, %v2660_v57 }
 0x407   : > { %3023 = vrot.lane.b32.xlu1 %v5803_v39, %s4597_s10  ;;  %3025 = vrot.lane.b32.xlu0 %v5805_v37, %s4597_s10 }
 0x409   : > { %v2662_v41 = vpop.permute.xlu1 %2661  ;;  %v2664_v59 = vpop.permute.xlu0 %2663 }
 0x40a   : > { %2741 = vst.msk [vmem:[#allocation3 + $0x88] sm:$0xff] %vm2723_vm15, %v2662_v41  ;;  %2742 = vst.msk [vmem:[#allocation3 + $0x90] sm:$0xff] %vm2723_vm15, %v2664_v59  ;;  %v2964_v41 = vld [vmem:[#allocation2 + $0xc9] sm:$0xff] }
 0x40b   : > { %3027 = vrot.lane.b32.xlu1 %v5820_v58, %s4597_s10  ;;  %3214 = vrot.lane.b32.xlu0 %v5992_v23, %s4598_s15 }
 0x40d   : > { %v2666_v46 = vpop.permute.xlu1 %2665  ;;  %v2668_v33 = vpop.permute.xlu0 %2667 }
 0x40e   : > { %2743 = vst.msk [vmem:[#allocation3 + $0x98] sm:$0xff] %vm2723_vm15, %v2666_v46  ;;  %2744 = vst.msk [vmem:[#allocation3 + $0xa0] sm:$0xff] %vm2723_vm15, %v2668_v33 }
 0x40f   : > { %3216 = vrot.lane.b32.xlu1 %v5999_v36, %s4598_s15  ;;  %3218 = vrot.lane.b32.xlu0 %v6001_v43, %s4598_s15 }
 0x411   : > { %v2670_v39 = vpop.permute.xlu1 %2669  ;;  %v2672_v18 = vpop.permute.xlu0 %2671 }
 0x412   : > { %2745 = vst.msk [vmem:[#allocation3 + $0xa8] sm:$0xff] %vm2723_vm15, %v2670_v39  ;;  %2746 = vst.msk [vmem:[#allocation3 + $0xb0] sm:$0xff] %vm2723_vm15, %v2672_v18 }
 0x413   : > { %3220 = vrot.lane.b32.xlu1 %v6009_v63, %s4598_s15  ;;  %3407 = vrot.lane.b32.xlu0 %v5788_v25, %s4599_s16 }
 0x415   : > { %v2674_v23 = vpop.permute.xlu1 %2673  ;;  %v2676_v4 = vpop.permute.xlu0 %2675 }
 0x416   : > { %2747 = vst.msk [vmem:[#allocation3 + $0xb8] sm:$0xff] %vm2723_vm15, %v2674_v23  ;;  %2748 = vst.msk [vmem:[#allocation3 + $0xc0] sm:$0xff] %vm2723_vm15, %v2676_v4 }
 0x417   : > { %3409 = vrot.lane.b32.xlu1 %v5801_v32, %s4599_s16  ;;  %3411 = vrot.lane.b32.xlu0 %v5834_v1, %s4599_s16 }
 0x419   : > { %v2678_v36 = vpop.permute.xlu1 %2677  ;;  %v2680_v9 = vpop.permute.xlu0 %2679 }
 0x41a   : > { %2749 = vst.msk [vmem:[#allocation3 + $0xc8] sm:$0xff] %vm2723_vm15, %v2678_v36  ;;  %2750 = vst.msk [vmem:[#allocation3 + $0xd0] sm:$0xff] %vm2723_vm15, %v2680_v9 }
 0x41b   : > { %3413 = vrot.lane.b32.xlu1 %v5854_v12, %s4599_s16  ;;  %3600 = vrot.lane.b32.xlu0 %v5805_v37, %s4600_s23 }
 0x41d   : > { %v2682_v25 = vpop.permute.xlu1 %2681  ;;  %v2684_v0 = vpop.permute.xlu0 %2683 }
 0x41e   : > { %2751 = vst.msk [vmem:[#allocation3 + $0xd8] sm:$0xff] %vm2723_vm15, %v2682_v25  ;;  %2752 = vst.msk [vmem:[#allocation3 + $0xe0] sm:$0xff] %vm2723_vm15, %v2684_v0 }
 0x41f   : > { %3602 = vrot.lane.b32.xlu1 %v5820_v58, %s4600_s23  ;;  %3604 = vrot.lane.b32.xlu0 %v5832_v2, %s4600_s23 }
 0x421   : > { %v2686_v32 = vpop.permute.xlu1 %2685  ;;  %v2688_v1 = vpop.permute.xlu0 %2687 }
 0x422   : > { %2753 = vst.msk [vmem:[#allocation3 + $0xe8] sm:$0xff] %vm2723_vm15, %v2686_v32  ;;  %2754 = vst.msk [vmem:[#allocation3 + $0xf0] sm:$0xff] %vm2723_vm15, %v2688_v1 }
 0x423   : > { %3606 = vrot.lane.b32.xlu1 %v5843_v8, %s4600_s23  ;;  %3793 = vrot.lane.b32.xlu0 %v6001_v43, %s4601_s28  ;;  %v2957_v43 = vld [vmem:[#allocation2 + $0x79] sm:$0xff] }
 0x425   : > { %v2690_v37 = vpop.permute.xlu1 %2689  ;;  %v2821_v12 = vpop.permute.xlu0 %2820 }
 0x426   : > { %2755 = vst.msk [vmem:[#allocation3 + $0xf8] sm:$0xff] %vm2723_vm15, %v2690_v37 }
 0x427   : > { %2917 = vst.msk [vmem:[#allocation3] sm:$0xff] %vm2916_vm2, %v2821_v12  ;;  %3795 = vrot.lane.b32.xlu1 %v6009_v63, %s4601_s28  ;;  %3797 = vrot.lane.b32.xlu0 %v6011_v31, %s4601_s28 }
 0x429   : > { %v2823_v58 = vpop.permute.xlu1 %2822  ;;  %v2825_v2 = vpop.permute.xlu0 %2824 }
 0x42a   : > { %2918 = vst.msk [vmem:[#allocation3 + $0x8] sm:$0xff] %vm2916_vm2, %v2823_v58  ;;  %2919 = vst.msk [vmem:[#allocation3 + $0x10] sm:$0xff] %vm2916_vm2, %v2825_v2  ;;  %v2967_v2 = vld [vmem:[#allocation2 + $0xf1] sm:$0xff] }
 0x42b   : > { %3799 = vrot.lane.b32.xlu1 %v6018_v22, %s4601_s28  ;;  %3029 = vrot.lane.b32.xlu0 %v2957_v43, %s4597_s10 }
 0x42d   : > { %v2827_v53 = vpop.permute.xlu1 %2826  ;;  %v2829_v27 = vpop.permute.xlu0 %2828 }
 0x42e   : > { %2920 = vst.msk [vmem:[#allocation3 + $0x18] sm:$0xff] %vm2916_vm2, %v2827_v53  ;;  %2921 = vst.msk [vmem:[#allocation3 + $0x20] sm:$0xff] %vm2916_vm2, %v2829_v27  ;;  %v2968_v27 = vld [vmem:[#allocation2 + $0xf9] sm:$0xff] }
 0x42f   : > { %3031 = vrot.lane.b32.xlu1 %v5843_v8, %s4597_s10  ;;  %3033 = vrot.lane.b32.xlu0 %v5845_v7, %s4597_s10 }
 0x431   : > { %v2831_v63 = vpop.permute.xlu1 %2830  ;;  %v2833_v48 = vpop.permute.xlu0 %2832 }
 0x432   : > { %2922 = vst.msk [vmem:[#allocation3 + $0x28] sm:$0xff] %vm2916_vm2, %v2831_v63  ;;  %2923 = vst.msk [vmem:[#allocation3 + $0x30] sm:$0xff] %vm2916_vm2, %v2833_v48  ;;  %v3158_v63 = vld [vmem:[#allocation2 + $0xda] sm:$0xff] }
 0x433   : > { %3035 = vrot.lane.b32.xlu1 %v5860_v20, %s4597_s10  ;;  %3222 = vrot.lane.b32.xlu0 %v6011_v31, %s4598_s15 }
 0x435   : > { %v2835_v5 = vpop.permute.xlu1 %2834  ;;  %v2837_v10 = vpop.permute.xlu0 %2836 }
 0x436   : > { %2924 = vst.msk [vmem:[#allocation3 + $0x38] sm:$0xff] %vm2916_vm2, %v2835_v5  ;;  %2925 = vst.msk [vmem:[#allocation3 + $0x40] sm:$0xff] %vm2916_vm2, %v2837_v10  ;;  %v3159_v10 = vld [vmem:[#allocation2 + $0xe2] sm:$0xff] }
 0x437   : > { %3224 = vrot.lane.b32.xlu1 %v6018_v22, %s4598_s15  ;;  %3226 = vrot.lane.b32.xlu0 %v6020_v49, %s4598_s15 }
 0x439   : > { %v2839_v8 = vpop.permute.xlu1 %2838  ;;  %v2841_v7 = vpop.permute.xlu0 %2840 }
 0x43a   : > { %2926 = vst.msk [vmem:[#allocation3 + $0x48] sm:$0xff] %vm2916_vm2, %v2839_v8  ;;  %2927 = vst.msk [vmem:[#allocation3 + $0x50] sm:$0xff] %vm2916_vm2, %v2841_v7  ;;  %v3160_v8 = vld [vmem:[#allocation2 + $0xf2] sm:$0xff] }
 0x43b   : > { %3228 = vrot.lane.b32.xlu1 %v6026_v45, %s4598_s15  ;;  %3415 = vrot.lane.b32.xlu0 %v5828_v62, %s4599_s16 }
 0x43d   : > { %v2843_v20 = vpop.permute.xlu1 %2842  ;;  %v2845_v31 = vpop.permute.xlu0 %2844 }
 0x43e   : > { %2928 = vst.msk [vmem:[#allocation3 + $0x58] sm:$0xff] %vm2916_vm2, %v2843_v20  ;;  %2929 = vst.msk [vmem:[#allocation3 + $0x60] sm:$0xff] %vm2916_vm2, %v2845_v31  ;;  %v3161_v31 = vld [vmem:[#allocation2 + $0xfa] sm:$0xff] }
 0x43f   : > { %3417 = vrot.lane.b32.xlu1 %v5841_v6, %s4599_s16  ;;  %3419 = vrot.lane.b32.xlu0 %v5872_v44, %s4599_s16  ;;  %v3537_v6 = vld [vmem:[#allocation2 + $0x99] sm:$0xff]  ;;  %v3538_v44 = vld [vmem:[#allocation2 + $0xa9] sm:$0xff] }
 0x441   : > { %v2847_v22 = vpop.permute.xlu1 %2846  ;;  %v2849_v34 = vpop.permute.xlu0 %2848 }
 0x442   : > { %2930 = vst.msk [vmem:[#allocation3 + $0x68] sm:$0xff] %vm2916_vm2, %v2847_v22  ;;  %2931 = vst.msk [vmem:[#allocation3 + $0x70] sm:$0xff] %vm2916_vm2, %v2849_v34 }
 0x443   : > { %3421 = vrot.lane.b32.xlu1 %v5885_v17, %s4599_s16  ;;  %3608 = vrot.lane.b32.xlu0 %v3536_v16, %s4600_s23  ;;  %v3539_v17 = vld [vmem:[#allocation2 + $0xb1] sm:$0xff] }
 0x445   : > { %v2851_v62 = vpop.permute.xlu1 %2850  ;;  %v2853_v21 = vpop.permute.xlu0 %2852 }
 0x446   : > { %2932 = vst.msk [vmem:[#allocation3 + $0x78] sm:$0xff] %vm2916_vm2, %v2851_v62  ;;  %2933 = vst.msk [vmem:[#allocation3 + $0x80] sm:$0xff] %vm2916_vm2, %v2853_v21 }
 0x447   : > { %3610 = vrot.lane.b32.xlu1 %v3537_v6, %s4600_s23  ;;  %3612 = vrot.lane.b32.xlu0 %v3538_v44, %s4600_s23 }
 0x449   : > { %v2855_v54 = vpop.permute.xlu1 %2854  ;;  %v2857_v42 = vpop.permute.xlu0 %2856 }
 0x44a   : > { %2934 = vst.msk [vmem:[#allocation3 + $0x88] sm:$0xff] %vm2916_vm2, %v2855_v54  ;;  %2935 = vst.msk [vmem:[#allocation3 + $0x90] sm:$0xff] %vm2916_vm2, %v2857_v42  ;;  %v3547_v54 = vld [vmem:[#allocation2 + $0x111] sm:$0xff] }
 0x44b   : > { %3614 = vrot.lane.b32.xlu1 %v3539_v17, %s4600_s23  ;;  %3801 = vrot.lane.b32.xlu0 %v6020_v49, %s4601_s28 }
 0x44d   : > { %v2859_v29 = vpop.permute.xlu1 %2858  ;;  %v3014_v24 = vpop.permute.xlu0 %3013 }
 0x44e   : > { %2936 = vst.msk [vmem:[#allocation3 + $0x98] sm:$0xff] %vm2916_vm2, %v2859_v29  ;;  %v3739_v29 = vld [vmem:[#allocation2 + $0x10a] sm:$0xff] }
 0x44f   : > { %3110 = vst.msk [vmem:[#allocation3] sm:$0xff] %vm3109_vm3, %v3014_v24  ;;  %3803 = vrot.lane.b32.xlu1 %v6026_v45, %s4601_s28  ;;  %3805 = vrot.lane.b32.xlu0 %v6028_v30, %s4601_s28  ;;  %v2963_v45 = vld [vmem:[#allocation2 + $0xc1] sm:$0xff] }
 0x451   : > { %v3016_v50 = vpop.permute.xlu1 %3015  ;;  %v3018_v14 = vpop.permute.xlu0 %3017 }
 0x452   : > { %3111 = vst.msk [vmem:[#allocation3 + $0x8] sm:$0xff] %vm3109_vm3, %v3016_v50  ;;  %3112 = vst.msk [vmem:[#allocation3 + $0x10] sm:$0xff] %vm3109_vm3, %v3018_v14 }
 0x453   : > { %3807 = vrot.lane.b32.xlu1 %v6035_v51, %s4601_s28  ;;  %3037 = vrot.lane.b32.xlu0 %v3538_v44, %s4597_s10 }
 0x455   : > { %v3020_v49 = vpop.permute.xlu1 %3019  ;;  %v3207_v19 = vpop.permute.xlu0 %3206 }
 0x456   : > { %3113 = vst.msk [vmem:[#allocation3 + $0x18] sm:$0xff] %vm3109_vm3, %v3020_v49 }
 0x457   : > { %3303 = vst.msk [vmem:[#allocation3] sm:$0xff] %vm3302_vm4, %v3207_v19  ;;  %3039 = vrot.lane.b32.xlu1 %v3539_v17, %s4597_s10  ;;  %3041 = vrot.lane.b32.xlu0 %v2963_v45, %s4597_s10  ;;  %v3740_v19 = vld [vmem:[#allocation2 + $0x112] sm:$0xff] }
 0x459   : > { %v3209_v38 = vpop.permute.xlu1 %3208  ;;  %v3211_v57 = vpop.permute.xlu0 %3210 }
 0x45a   : > { %3304 = vst.msk [vmem:[#allocation3 + $0x8] sm:$0xff] %vm3302_vm4, %v3209_v38  ;;  %3305 = vst.msk [vmem:[#allocation3 + $0x10] sm:$0xff] %vm3302_vm4, %v3211_v57 }
 0x45b   : > { %3043 = vrot.lane.b32.xlu1 %v2964_v41, %s4597_s10  ;;  %3230 = vrot.lane.b32.xlu0 %v6028_v30, %s4598_s15 }
 0x45d   : > { %v3213_v59 = vpop.permute.xlu1 %3212  ;;  %v3400_v46 = vpop.permute.xlu0 %3399 }
 0x45e   : > { %3306 = vst.msk [vmem:[#allocation3 + $0x18] sm:$0xff] %vm3302_vm4, %v3213_v59 }
 0x45f   : > { %3496 = vst.msk [vmem:[#allocation3] sm:$0xff] %vm3495_vm5, %v3400_v46  ;;  %3232 = vrot.lane.b32.xlu1 %v6035_v51, %s4598_s15  ;;  %3234 = vrot.lane.b32.xlu0 %v6037_v40, %s4598_s15 }
 0x461   : > { %v3402_v33 = vpop.permute.xlu1 %3401  ;;  %v3404_v39 = vpop.permute.xlu0 %3403 }
 0x462   : > { %3497 = vst.msk [vmem:[#allocation3 + $0x8] sm:$0xff] %vm3495_vm5, %v3402_v33  ;;  %3498 = vst.msk [vmem:[#allocation3 + $0x10] sm:$0xff] %vm3495_vm5, %v3404_v39 }
 0x463   : > { %3236 = vrot.lane.b32.xlu1 %v6045_v11, %s4598_s15  ;;  %3423 = vrot.lane.b32.xlu0 %v5868_v28, %s4599_s16 }
 0x465   : > { %v3406_v30 = vpop.permute.xlu1 %3405  ;;  %v3593_v18 = vpop.permute.xlu0 %3592 }
 0x466   : > { %3499 = vst.msk [vmem:[#allocation3 + $0x18] sm:$0xff] %vm3495_vm5, %v3406_v30 }
 0x467   : > { %3689 = vst.msk [vmem:[#allocation3] sm:$0xff] %vm3688_vm6, %v3593_v18  ;;  %3425 = vrot.lane.b32.xlu1 %v5878_v26, %s4599_s16  ;;  %3427 = vrot.lane.b32.xlu0 %v5900_v55, %s4599_s16  ;;  %v3542_v26 = vld [vmem:[#allocation2 + $0xd9] sm:$0xff] }
 0x469   : > { %v3595_v51 = vpop.permute.xlu1 %3594  ;;  %v3597_v23 = vpop.permute.xlu0 %3596 }
 0x46a   : > { %3690 = vst.msk [vmem:[#allocation3 + $0x8] sm:$0xff] %vm3688_vm6, %v3595_v51  ;;  %3691 = vst.msk [vmem:[#allocation3 + $0x10] sm:$0xff] %vm3688_vm6, %v3597_v23 }
 0x46b   : > { %3429 = vrot.lane.b32.xlu1 %v5913_v15, %s4599_s16  ;;  %3616 = vrot.lane.b32.xlu0 %v2963_v45, %s4600_s23  ;;  %v3543_v15 = vld [vmem:[#allocation2 + $0xe1] sm:$0xff] }
 0x46d   : > { %v3599_v28 = vpop.permute.xlu1 %3598  ;;  %v3786_v4 = vpop.permute.xlu0 %3785 }
 0x46e   : > { %3692 = vst.msk [vmem:[#allocation3 + $0x18] sm:$0xff] %vm3688_vm6, %v3599_v28  ;;  %v3164_v28 = vld [vmem:[#allocation2 + $0x122] sm:$0xff] }
 0x46f   : > { %3882 = vst.msk [vmem:[#allocation3] sm:$0xff] %vm3881_vm7, %v3786_v4  ;;  %3618 = vrot.lane.b32.xlu1 %v2964_v41, %s4600_s23  ;;  %3620 = vrot.lane.b32.xlu0 %v3542_v26, %s4600_s23 }
 0x471   : > { %v3788_v55 = vpop.permute.xlu1 %3787  ;;  %v3790_v36 = vpop.permute.xlu0 %3789 }
 0x472   : > { %3883 = vst.msk [vmem:[#allocation3 + $0x8] sm:$0xff] %vm3881_vm7, %v3788_v55  ;;  %3884 = vst.msk [vmem:[#allocation3 + $0x10] sm:$0xff] %vm3881_vm7, %v3790_v36  ;;  %v3165_v55 = vld [vmem:[#allocation2 + $0x12a] sm:$0xff]  ;;  %v3355_v36 = vld [vmem:[#allocation2 + $0x120] sm:$0xff] }
 0x473   : > { %3622 = vrot.lane.b32.xlu1 %v3543_v15, %s4600_s23  ;;  %3809 = vrot.lane.b32.xlu0 %v6037_v40, %s4601_s28 }
 0x475   : > { %v3792_v9 = vpop.permute.xlu1 %3791  ;;  %v3022_v25 = vpop.permute.xlu0 %3021 }
 0x476   : > { %3885 = vst.msk [vmem:[#allocation3 + $0x18] sm:$0xff] %vm3881_vm7, %v3792_v9  ;;  %v3914_v1 = vld [vmem:[#allocation3] sm:$0xff] }
 0x477   : > { %3114 = vst.msk [vmem:[#allocation3 + $0x20] sm:$0xff] %vm3109_vm3, %v3022_v25  ;;  %3811 = vrot.lane.b32.xlu1 %v6045_v11, %s4601_s28  ;;  %3813 = vrot.lane.b32.xlu0 %v6047_v61, %s4601_s28  ;;  %v3356_v25 = vld [vmem:[#allocation2 + $0x128] sm:$0xff] }
 0x479   : > { %v3024_v0 = vpop.permute.xlu1 %3023  ;;  %v3026_v32 = vpop.permute.xlu0 %3025  ;;  %v3915_v37 = vld [vmem:[#allocation3 + $0x8] sm:$0xff]  ;;  %v3916_v61 = vld [vmem:[#allocation3 + $0x10] sm:$0xff] }
 0x47a   : > { %3115 = vst.msk [vmem:[#allocation3 + $0x28] sm:$0xff] %vm3109_vm3, %v3024_v0  ;;  %3116 = vst.msk [vmem:[#allocation3 + $0x30] sm:$0xff] %vm3109_vm3, %v3026_v32  ;;  %v3946_v40 = vpack.c.bf16 %v3915_v37, %v3914_v1  ;;  %v3357_v0 = vld [vmem:[#allocation2 + $0x138] sm:$0xff]  ;;  %v3358_v37 = vld [vmem:[#allocation2 + $0x140] sm:$0xff] }
 0x47b   : > { %3815 = vrot.lane.b32.xlu1 %v6054_v3, %s4601_s28  ;;  %3045 = vrot.lane.b32.xlu0 %v3542_v26, %s4597_s10 }
 0x47c   : > { %4518 = vmatprep.mubr.msk.bf16.mxu1 %vm3995_vm8, %v3946_v40 }
 0x47d   : > { %v3028_v11 = vpop.permute.xlu1 %3027  ;;  %v3215_v12 = vpop.permute.xlu0 %3214  ;;  %v3917_v58 = vld [vmem:[#allocation3 + $0x18] sm:$0xff] }
 0x47e   : > { %3117 = vst.msk [vmem:[#allocation3 + $0x38] sm:$0xff] %vm3109_vm3, %v3028_v11  ;;  %v3947_v43 = vpack.c.bf16 %v3917_v58, %v3916_v61 }
 0x47f   : > { %3307 = vst.msk [vmem:[#allocation3 + $0x20] sm:$0xff] %vm3302_vm4, %v3215_v12  ;;  %3047 = vrot.lane.b32.xlu1 %v3543_v15, %s4597_s10  ;;  %3049 = vrot.lane.b32.xlu0 %v2967_v2, %s4597_s10  ;;  %v3550_v12 = vld [vmem:[#allocation2 + $0x139] sm:$0xff] }
 0x480   : > { %4519 = vmatmul.mubr.msk.bf16.vlgmr.msra.gmra.mxu1 %vm3995_vm8, %v3947_v43 }
 0x481   : > { %v3217_v3 = vpop.permute.xlu1 %3216  ;;  %v3219_v53 = vpop.permute.xlu0 %3218 }
 0x482   : > { %3308 = vst.msk [vmem:[#allocation3 + $0x28] sm:$0xff] %vm3302_vm4, %v3217_v3  ;;  %3309 = vst.msk [vmem:[#allocation3 + $0x30] sm:$0xff] %vm3302_vm4, %v3219_v53  ;;  %v3551_v3 = vld [vmem:[#allocation2 + $0x141] sm:$0xff] }
 0x483   : > { %3051 = vrot.lane.b32.xlu1 %v2968_v27, %s4597_s10  ;;  %3238 = vrot.lane.b32.xlu0 %v3158_v63, %s4598_s15 }
 0x485   : > { %v3221_v48 = vpop.permute.xlu1 %3220  ;;  %v3408_v5 = vpop.permute.xlu0 %3407 }
 0x486   : > { %3310 = vst.msk [vmem:[#allocation3 + $0x38] sm:$0xff] %vm3302_vm4, %v3221_v48 }
 0x487   : > { %3500 = vst.msk [vmem:[#allocation3 + $0x20] sm:$0xff] %vm3495_vm5, %v3408_v5  ;;  %3240 = vrot.lane.b32.xlu1 %v3159_v10, %s4598_s15  ;;  %3242 = vrot.lane.b32.xlu0 %v3160_v8, %s4598_s15  ;;  %v3743_v10 = vld [vmem:[#allocation2 + $0x13a] sm:$0xff] }
 0x489   : > { %v3410_v7 = vpop.permute.xlu1 %3409  ;;  %v3412_v20 = vpop.permute.xlu0 %3411 }
 0x48a   : > { %3501 = vst.msk [vmem:[#allocation3 + $0x28] sm:$0xff] %vm3495_vm5, %v3410_v7  ;;  %3502 = vst.msk [vmem:[#allocation3 + $0x30] sm:$0xff] %vm3495_vm5, %v3412_v20 }
 0x48b   : > { %3244 = vrot.lane.b32.xlu1 %v3161_v31, %s4598_s15  ;;  %3431 = vrot.lane.b32.xlu0 %v5896_v52, %s4599_s16 }
 0x48d   : > { %v3414_v22 = vpop.permute.xlu1 %3413  ;;  %v3601_v34 = vpop.permute.xlu0 %3600 }
 0x48e   : > { %3503 = vst.msk [vmem:[#allocation3 + $0x38] sm:$0xff] %vm3495_vm5, %v3414_v22 }
 0x48f   : > { %3693 = vst.msk [vmem:[#allocation3 + $0x20] sm:$0xff] %vm3688_vm6, %v3601_v34  ;;  %3433 = vrot.lane.b32.xlu1 %v5906_v60, %s4599_s16  ;;  %3435 = vrot.lane.b32.xlu0 %v5928_v56, %s4599_s16  ;;  %v3546_v60 = vld [vmem:[#allocation2 + $0x109] sm:$0xff] }
 0x491   : > { %v3603_v16 = vpop.permute.xlu1 %3602  ;;  %v3605_v62 = vpop.permute.xlu0 %3604 }
 0x492   : > { %3694 = vst.msk [vmem:[#allocation3 + $0x28] sm:$0xff] %vm3688_vm6, %v3603_v16  ;;  %3695 = vst.msk [vmem:[#allocation3 + $0x30] sm:$0xff] %vm3688_vm6, %v3605_v62  ;;  %v2782_v16 = vld [vmem:[#allocation2 + $0x150] sm:$0xff] }
 0x493   : > { %3437 = vrot.lane.b32.xlu1 %v5941_v35, %s4599_s16  ;;  %3624 = vrot.lane.b32.xlu0 %v2967_v2, %s4600_s23 }
 0x495   : > { %v3607_v52 = vpop.permute.xlu1 %3606  ;;  %v3794_v21 = vpop.permute.xlu0 %3793 }
 0x496   : > { %3696 = vst.msk [vmem:[#allocation3 + $0x38] sm:$0xff] %vm3688_vm6, %v3607_v52 }
 0x497   : > { %3886 = vst.msk [vmem:[#allocation3 + $0x20] sm:$0xff] %vm3881_vm7, %v3794_v21  ;;  %3626 = vrot.lane.b32.xlu1 %v2968_v27, %s4600_s23  ;;  %3628 = vrot.lane.b32.xlu0 %v3546_v60, %s4600_s23  ;;  %v2783_v21 = vld [vmem:[#allocation2 + $0x158] sm:$0xff] }
 0x499   : > { %v3796_v6 = vpop.permute.xlu1 %3795  ;;  %v3798_v44 = vpop.permute.xlu0 %3797 }
 0x49a   : > { %3887 = vst.msk [vmem:[#allocation3 + $0x28] sm:$0xff] %vm3881_vm7, %v3796_v6  ;;  %3888 = vst.msk [vmem:[#allocation3 + $0x30] sm:$0xff] %vm3881_vm7, %v3798_v44  ;;  %v2975_v44 = vld [vmem:[#allocation2 + $0x151] sm:$0xff] }
 0x49b   : > { %3630 = vrot.lane.b32.xlu1 %v3547_v54, %s4600_s23  ;;  %3817 = vrot.lane.b32.xlu0 %v3160_v8, %s4601_s28 }
 0x49d   : > { %v3800_v42 = vpop.permute.xlu1 %3799  ;;  %v3030_v17 = vpop.permute.xlu0 %3029 }
 0x49e   : > { %3889 = vst.msk [vmem:[#allocation3 + $0x38] sm:$0xff] %vm3881_vm7, %v3800_v42  ;;  %v3918_v14 = vld [vmem:[#allocation3 + $0x20] sm:$0xff] }
 0x49f   : > { %3118 = vst.msk [vmem:[#allocation3 + $0x40] sm:$0xff] %vm3109_vm3, %v3030_v17  ;;  %3819 = vrot.lane.b32.xlu1 %v3161_v31, %s4601_s28  ;;  %3821 = vrot.lane.b32.xlu0 %v3739_v29, %s4601_s28  ;;  %v3744_v31 = vld [vmem:[#allocation2 + $0x142] sm:$0xff]  ;;  %v2976_v17 = vld [vmem:[#allocation2 + $0x159] sm:$0xff] }
 0x4a1   : > { %v3032_v24 = vpop.permute.xlu1 %3031  ;;  %v3034_v50 = vpop.permute.xlu0 %3033  ;;  %v3919_v49 = vld [vmem:[#allocation3 + $0x28] sm:$0xff]  ;;  %v3920_v41 = vld [vmem:[#allocation3 + $0x30] sm:$0xff] }
 0x4a2   : > { %3119 = vst.msk [vmem:[#allocation3 + $0x48] sm:$0xff] %vm3109_vm3, %v3032_v24  ;;  %3120 = vst.msk [vmem:[#allocation3 + $0x50] sm:$0xff] %vm3109_vm3, %v3034_v50  ;;  %v3948_v45 = vpack.c.bf16 %v3919_v49, %v3918_v14  ;;  %v3168_v50 = vld [vmem:[#allocation2 + $0x152] sm:$0xff] }
 0x4a3   : > { %3823 = vrot.lane.b32.xlu1 %v3740_v19, %s4601_s28  ;;  %2860 = vrot.lane.b32.xlu0 %v5928_v56, %s4595_s29 }
 0x4a4   : > { %4522 = vmatprep.mubr.msk.bf16.mxu1 %vm3995_vm8, %v3948_v45 }
 0x4a5   : > { %v3036_v38 = vpop.permute.xlu1 %3035  ;;  %v3223_v57 = vpop.permute.xlu0 %3222  ;;  %v3921_v59 = vld [vmem:[#allocation3 + $0x38] sm:$0xff] }
 0x4a6   : > { %3121 = vst.msk [vmem:[#allocation3 + $0x58] sm:$0xff] %vm3109_vm3, %v3036_v38  ;;  %v3949_v46 = vpack.c.bf16 %v3921_v59, %v3920_v41 }
 0x4a7   : > { %3311 = vst.msk [vmem:[#allocation3 + $0x40] sm:$0xff] %vm3302_vm4, %v3223_v57  ;;  %2862 = vrot.lane.b32.xlu1 %v5941_v35, %s4595_s29  ;;  %2864 = vrot.lane.b32.xlu0 %v5924_v47, %s4595_s29  ;;  %v2971_v47 = vld [vmem:[#allocation2 + $0x121] sm:$0xff] }
 0x4a8   : > { %4523 = vmatmul.mubr.msk.bf16.gmra.mxu1 %vm3995_vm8, %v3949_v46  ;;  %v3361_v57 = vld [vmem:[#allocation2 + $0x168] sm:$0xff] }
 0x4a9   : > { %v3225_v56 = vpop.permute.xlu1 %3224  ;;  %v3227_v33 = vpop.permute.xlu0 %3226 }
 0x4aa   : > { %3312 = vst.msk [vmem:[#allocation3 + $0x48] sm:$0xff] %vm3302_vm4, %v3225_v56  ;;  %3313 = vst.msk [vmem:[#allocation3 + $0x50] sm:$0xff] %vm3302_vm4, %v3227_v33  ;;  %v3362_v33 = vld [vmem:[#allocation2 + $0x170] sm:$0xff] }
 0x4ab   : > { %2866 = vrot.lane.b32.xlu1 %v5934_v13, %s4595_s29  ;;  %3053 = vrot.lane.b32.xlu0 %v3546_v60, %s4597_s10  ;;  %v2972_v13 = vld [vmem:[#allocation2 + $0x129] sm:$0xff] }
 0x4ad   : > { %v3229_v39 = vpop.permute.xlu1 %3228  ;;  %v3416_v30 = vpop.permute.xlu0 %3415 }
 0x4ae   : > { %3314 = vst.msk [vmem:[#allocation3 + $0x58] sm:$0xff] %vm3302_vm4, %v3229_v39 }
 0x4af   : > { %3504 = vst.msk [vmem:[#allocation3 + $0x40] sm:$0xff] %vm3495_vm5, %v3416_v30  ;;  %3055 = vrot.lane.b32.xlu1 %v3547_v54, %s4597_s10  ;;  %3057 = vrot.lane.b32.xlu0 %v2971_v47, %s4597_s10 }
 0x4b1   : > { %v3418_v35 = vpop.permute.xlu1 %3417  ;;  %v3420_v18 = vpop.permute.xlu0 %3419 }
 0x4b2   : > { %3505 = vst.msk [vmem:[#allocation3 + $0x48] sm:$0xff] %vm3495_vm5, %v3418_v35  ;;  %3506 = vst.msk [vmem:[#allocation3 + $0x50] sm:$0xff] %vm3495_vm5, %v3420_v18 }
 0x4b3   : > { %3059 = vrot.lane.b32.xlu1 %v2972_v13, %s4597_s10  ;;  %3246 = vrot.lane.b32.xlu0 %v3739_v29, %s4598_s15 }
 0x4b5   : > { %v3422_v51 = vpop.permute.xlu1 %3421  ;;  %v3609_v23 = vpop.permute.xlu0 %3608 }
 0x4b6   : > { %3507 = vst.msk [vmem:[#allocation3 + $0x58] sm:$0xff] %vm3495_vm5, %v3422_v51 }
 0x4b7   : > { %3697 = vst.msk [vmem:[#allocation3 + $0x40] sm:$0xff] %vm3688_vm6, %v3609_v23  ;;  %3248 = vrot.lane.b32.xlu1 %v3740_v19, %s4598_s15  ;;  %3250 = vrot.lane.b32.xlu0 %v3164_v28, %s4598_s15  ;;  %v3169_v19 = vld [vmem:[#allocation2 + $0x15a] sm:$0xff] }
 0x4b9   : > { %v3611_v4 = vpop.permute.xlu1 %3610  ;;  %v3613_v26 = vpop.permute.xlu0 %3612 }
 0x4ba   : > { %3698 = vst.msk [vmem:[#allocation3 + $0x48] sm:$0xff] %vm3688_vm6, %v3611_v4  ;;  %3699 = vst.msk [vmem:[#allocation3 + $0x50] sm:$0xff] %vm3688_vm6, %v3613_v26  ;;  %v3555_v4 = vld [vmem:[#allocation2 + $0x171] sm:$0xff] }
 0x4bb   : > { %3252 = vrot.lane.b32.xlu1 %v3165_v55, %s4598_s15  ;;  %3439 = vrot.lane.b32.xlu0 %v3355_v36, %s4599_s16  ;;  %v3747_v36 = vld [vmem:[#allocation2 + $0x16a] sm:$0xff] }
 0x4bd   : > { %v3615_v15 = vpop.permute.xlu1 %3614  ;;  %v3802_v9 = vpop.permute.xlu0 %3801 }
 0x4be   : > { %3700 = vst.msk [vmem:[#allocation3 + $0x58] sm:$0xff] %vm3688_vm6, %v3615_v15 }
 0x4bf   : > { %3890 = vst.msk [vmem:[#allocation3 + $0x40] sm:$0xff] %vm3881_vm7, %v3802_v9  ;;  %3441 = vrot.lane.b32.xlu1 %v3356_v25, %s4599_s16  ;;  %3443 = vrot.lane.b32.xlu0 %v3357_v0, %s4599_s16  ;;  %v3748_v25 = vld [vmem:[#allocation2 + $0x172] sm:$0xff] }
 0x4c1   : > { %v3804_v32 = vpop.permute.xlu1 %3803  ;;  %v3806_v1 = vpop.permute.xlu0 %3805 }
 0x4c2   : > { %3891 = vst.msk [vmem:[#allocation3 + $0x48] sm:$0xff] %vm3881_vm7, %v3804_v32  ;;  %3892 = vst.msk [vmem:[#allocation3 + $0x50] sm:$0xff] %vm3881_vm7, %v3806_v1  ;;  %v2786_v1 = vld [vmem:[#allocation2 + $0x180] sm:$0xff] }
 0x4c3   : > { %3445 = vrot.lane.b32.xlu1 %v3358_v37, %s4599_s16  ;;  %3632 = vrot.lane.b32.xlu0 %v2971_v47, %s4600_s23 }
 0x4c5   : > { %v3808_v40 = vpop.permute.xlu1 %3807  ;;  %v3038_v11 = vpop.permute.xlu0 %3037 }
 0x4c6   : > { %3893 = vst.msk [vmem:[#allocation3 + $0x58] sm:$0xff] %vm3881_vm7, %v3808_v40  ;;  %v3922_v2 = vld [vmem:[#allocation3 + $0x40] sm:$0xff] }
 0x4c7   : > { %3122 = vst.msk [vmem:[#allocation3 + $0x60] sm:$0xff] %vm3109_vm3, %v3038_v11  ;;  %3634 = vrot.lane.b32.xlu1 %v2972_v13, %s4600_s23  ;;  %3636 = vrot.lane.b32.xlu0 %v3550_v12, %s4600_s23  ;;  %v3554_v13 = vld [vmem:[#allocation2 + $0x169] sm:$0xff] }
 0x4c8   : > { %v2787_v11 = vld [vmem:[#allocation2 + $0x188] sm:$0xff] }
 0x4c9   : > { %v3040_v61 = vpop.permute.xlu1 %3039  ;;  %v3042_v58 = vpop.permute.xlu0 %3041  ;;  %v3923_v43 = vld [vmem:[#allocation3 + $0x48] sm:$0xff]  ;;  %v3924_v48 = vld [vmem:[#allocation3 + $0x50] sm:$0xff] }
 0x4ca   : > { %3123 = vst.msk [vmem:[#allocation3 + $0x68] sm:$0xff] %vm3109_vm3, %v3040_v61  ;;  %3124 = vst.msk [vmem:[#allocation3 + $0x70] sm:$0xff] %vm3109_vm3, %v3042_v58  ;;  %v3950_v53 = vpack.c.bf16 %v3923_v43, %v3922_v2  ;;  %v2979_v58 = vld [vmem:[#allocation2 + $0x181] sm:$0xff] }
 0x4cb   : > { %3638 = vrot.lane.b32.xlu1 %v3551_v3, %s4600_s23  ;;  %3825 = vrot.lane.b32.xlu0 %v3164_v28, %s4601_s28 }
 0x4cc   : > { %4526 = vmatprep.mubr.msk.bf16.mxu1 %vm3995_vm8, %v3950_v53 }
 0x4cd   : > { %v3044_v27 = vpop.permute.xlu1 %3043  ;;  %v3231_v63 = vpop.permute.xlu0 %3230  ;;  %v3925_v5 = vld [vmem:[#allocation3 + $0x58] sm:$0xff] }
 0x4ce   : > { %3125 = vst.msk [vmem:[#allocation3 + $0x78] sm:$0xff] %vm3109_vm3, %v3044_v27  ;;  %v3951_v8 = vpack.c.bf16 %v3925_v5, %v3924_v48 }
 0x4cf   : > { %3315 = vst.msk [vmem:[#allocation3 + $0x60] sm:$0xff] %vm3302_vm4, %v3231_v63  ;;  %3827 = vrot.lane.b32.xlu1 %v3165_v55, %s4601_s28  ;;  %3829 = vrot.lane.b32.xlu0 %v3743_v10, %s4601_s28  ;;  %v3172_v63 = vld [vmem:[#allocation2 + $0x182] sm:$0xff] }
 0x4d0   : > { %4527 = vmatmul.mubr.msk.bf16.gmra.mxu1 %vm3995_vm8, %v3951_v8 }
 0x4d1   : > { %v3233_v7 = vpop.permute.xlu1 %3232  ;;  %v3235_v20 = vpop.permute.xlu0 %3234 }
 0x4d2   : > { %3316 = vst.msk [vmem:[#allocation3 + $0x68] sm:$0xff] %vm3302_vm4, %v3233_v7  ;;  %3317 = vst.msk [vmem:[#allocation3 + $0x70] sm:$0xff] %vm3302_vm4, %v3235_v20  ;;  %v3173_v7 = vld [vmem:[#allocation2 + $0x18a] sm:$0xff] }
 0x4d3   : > { %3831 = vrot.lane.b32.xlu1 %v3744_v31, %s4601_s28  ;;  %2868 = vrot.lane.b32.xlu0 %v3357_v0, %s4595_s29 }
 0x4d5   : > { %v3237_v22 = vpop.permute.xlu1 %3236  ;;  %v3424_v34 = vpop.permute.xlu0 %3423 }
 0x4d6   : > { %3318 = vst.msk [vmem:[#allocation3 + $0x78] sm:$0xff] %vm3302_vm4, %v3237_v22 }
 0x4d7   : > { %3508 = vst.msk [vmem:[#allocation3 + $0x60] sm:$0xff] %vm3495_vm5, %v3424_v34  ;;  %2870 = vrot.lane.b32.xlu1 %v3358_v37, %s4595_s29  ;;  %2872 = vrot.lane.b32.xlu0 %v2782_v16, %s4595_s29 }
 0x4d9   : > { %v3426_v62 = vpop.permute.xlu1 %3425  ;;  %v3428_v52 = vpop.permute.xlu0 %3427 }
 0x4da   : > { %3509 = vst.msk [vmem:[#allocation3 + $0x68] sm:$0xff] %vm3495_vm5, %v3426_v62  ;;  %3510 = vst.msk [vmem:[#allocation3 + $0x70] sm:$0xff] %vm3495_vm5, %v3428_v52 }
 0x4db   : > { %2874 = vrot.lane.b32.xlu1 %v2783_v21, %s4595_s29  ;;  %3061 = vrot.lane.b32.xlu0 %v3550_v12, %s4597_s10 }
 0x4dd   : > { %v3430_v60 = vpop.permute.xlu1 %3429  ;;  %v3617_v6 = vpop.permute.xlu0 %3616 }
 0x4de   : > { %3511 = vst.msk [vmem:[#allocation3 + $0x78] sm:$0xff] %vm3495_vm5, %v3430_v60 }
 0x4df   : > { %3701 = vst.msk [vmem:[#allocation3 + $0x60] sm:$0xff] %vm3688_vm6, %v3617_v6  ;;  %3063 = vrot.lane.b32.xlu1 %v3551_v3, %s4597_s10  ;;  %3065 = vrot.lane.b32.xlu0 %v2975_v44, %s4597_s10  ;;  %v2980_v3 = vld [vmem:[#allocation2 + $0x189] sm:$0xff] }
 0x4e1   : > { %v3619_v54 = vpop.permute.xlu1 %3618  ;;  %v3621_v42 = vpop.permute.xlu0 %3620 }
 0x4e2   : > { %3702 = vst.msk [vmem:[#allocation3 + $0x68] sm:$0xff] %vm3688_vm6, %v3619_v54  ;;  %3703 = vst.msk [vmem:[#allocation3 + $0x70] sm:$0xff] %vm3688_vm6, %v3621_v42 }
 0x4e3   : > { %3067 = vrot.lane.b32.xlu1 %v2976_v17, %s4597_s10  ;;  %3254 = vrot.lane.b32.xlu0 %v3743_v10, %s4598_s15 }
 0x4e5   : > { %v3623_v29 = vpop.permute.xlu1 %3622  ;;  %v3810_v24 = vpop.permute.xlu0 %3809 }
 0x4e6   : > { %3704 = vst.msk [vmem:[#allocation3 + $0x78] sm:$0xff] %vm3688_vm6, %v3623_v29 }
 0x4e7   : > { %3894 = vst.msk [vmem:[#allocation3 + $0x60] sm:$0xff] %vm3881_vm7, %v3810_v24  ;;  %3256 = vrot.lane.b32.xlu1 %v3744_v31, %s4598_s15  ;;  %3258 = vrot.lane.b32.xlu0 %v3168_v50, %s4598_s15  ;;  %v3365_v31 = vld [vmem:[#allocation2 + $0x198] sm:$0xff] }
 0x4e9   : > { %v3812_v14 = vpop.permute.xlu1 %3811  ;;  %v3814_v49 = vpop.permute.xlu0 %3813 }
 0x4ea   : > { %3895 = vst.msk [vmem:[#allocation3 + $0x68] sm:$0xff] %vm3881_vm7, %v3812_v14  ;;  %3896 = vst.msk [vmem:[#allocation3 + $0x70] sm:$0xff] %vm3881_vm7, %v3814_v49 }
 0x4eb   : > { %3260 = vrot.lane.b32.xlu1 %v3169_v19, %s4598_s15  ;;  %3447 = vrot.lane.b32.xlu0 %v2782_v16, %s4599_s16 }
 0x4ed   : > { %v3816_v45 = vpop.permute.xlu1 %3815  ;;  %v3046_v38 = vpop.permute.xlu0 %3045 }
 0x4ee   : > { %3897 = vst.msk [vmem:[#allocation3 + $0x78] sm:$0xff] %vm3881_vm7, %v3816_v45  ;;  %v3926_v46 = vld [vmem:[#allocation3 + $0x60] sm:$0xff] }
 0x4ef   : > { %3126 = vst.msk [vmem:[#allocation3 + $0x80] sm:$0xff] %vm3109_vm3, %v3046_v38  ;;  %3449 = vrot.lane.b32.xlu1 %v2783_v21, %s4599_s16  ;;  %3451 = vrot.lane.b32.xlu0 %v3361_v57, %s4599_s16  ;;  %v3366_v21 = vld [vmem:[#allocation2 + $0x1a0] sm:$0xff] }
 0x4f1   : > { %v3048_v41 = vpop.permute.xlu1 %3047  ;;  %v3050_v59 = vpop.permute.xlu0 %3049  ;;  %v3927_v56 = vld [vmem:[#allocation3 + $0x68] sm:$0xff]  ;;  %v3928_v35 = vld [vmem:[#allocation3 + $0x70] sm:$0xff] }
 0x4f2   : > { %3127 = vst.msk [vmem:[#allocation3 + $0x88] sm:$0xff] %vm3109_vm3, %v3048_v41  ;;  %3128 = vst.msk [vmem:[#allocation3 + $0x90] sm:$0xff] %vm3109_vm3, %v3050_v59  ;;  %v3952_v39 = vpack.c.bf16 %v3927_v56, %v3926_v46 }
 0x4f3   : > { %3453 = vrot.lane.b32.xlu1 %v3362_v33, %s4599_s16  ;;  %3640 = vrot.lane.b32.xlu0 %v2975_v44, %s4600_s23  ;;  %v3558_v44 = vld [vmem:[#allocation2 + $0x199] sm:$0xff] }
 0x4f4   : > { %4530 = vmatprep.mubr.msk.bf16.mxu1 %vm3995_vm8, %v3952_v39  ;;  %v6576_v39 = vld [vmem:[%s6712_s4] ss:$0 sm:$0xff] }
 0x4f5   : > { %v3052_v30 = vpop.permute.xlu1 %3051  ;;  %v3239_v47 = vpop.permute.xlu0 %3238  ;;  %v3929_v18 = vld [vmem:[#allocation3 + $0x78] sm:$0xff] }
 0x4f6   : > { %3129 = vst.msk [vmem:[#allocation3 + $0x98] sm:$0xff] %vm3109_vm3, %v3052_v30  ;;  %v3953_v51 = vpack.c.bf16 %v3929_v18, %v3928_v35 }
 0x4f7   : > { %3319 = vst.msk [vmem:[#allocation3 + $0x80] sm:$0xff] %vm3302_vm4, %v3239_v47  ;;  %3642 = vrot.lane.b32.xlu1 %v2976_v17, %s4600_s23  ;;  %3644 = vrot.lane.b32.xlu0 %v3554_v13, %s4600_s23  ;;  %v3559_v17 = vld [vmem:[#allocation2 + $0x1a1] sm:$0xff] }
 0x4f8   : > { %4531 = vmatmul.mubr.msk.bf16.gmra.mxu1 %vm3995_vm8, %v3953_v51 }
 0x4f9   : > { %v3241_v23 = vpop.permute.xlu1 %3240  ;;  %v3243_v28 = vpop.permute.xlu0 %3242 }
 0x4fa   : > { %3320 = vst.msk [vmem:[#allocation3 + $0x88] sm:$0xff] %vm3302_vm4, %v3241_v23  ;;  %3321 = vst.msk [vmem:[#allocation3 + $0x90] sm:$0xff] %vm3302_vm4, %v3243_v28 }
 0x4fb   : > { %3646 = vrot.lane.b32.xlu1 %v3555_v4, %s4600_s23  ;;  %3833 = vrot.lane.b32.xlu0 %v3168_v50, %s4601_s28  ;;  %v3751_v50 = vld [vmem:[#allocation2 + $0x19a] sm:$0xff] }
 0x4fd   : > { %v3245_v26 = vpop.permute.xlu1 %3244  ;;  %v3432_v55 = vpop.permute.xlu0 %3431 }
 0x4fe   : > { %3322 = vst.msk [vmem:[#allocation3 + $0x98] sm:$0xff] %vm3302_vm4, %v3245_v26 }
 0x4ff   : > { %3512 = vst.msk [vmem:[#allocation3 + $0x80] sm:$0xff] %vm3495_vm5, %v3432_v55  ;;  %3835 = vrot.lane.b32.xlu1 %v3169_v19, %s4601_s28  ;;  %3837 = vrot.lane.b32.xlu0 %v3747_v36, %s4601_s28  ;;  %v3752_v19 = vld [vmem:[#allocation2 + $0x1a2] sm:$0xff] }
 0x501   : > { %v3434_v15 = vpop.permute.xlu1 %3433  ;;  %v3436_v9 = vpop.permute.xlu0 %3435 }
 0x502   : > { %3513 = vst.msk [vmem:[#allocation3 + $0x88] sm:$0xff] %vm3495_vm5, %v3434_v15  ;;  %3514 = vst.msk [vmem:[#allocation3 + $0x90] sm:$0xff] %vm3495_vm5, %v3436_v9 }
 0x503   : > { %3839 = vrot.lane.b32.xlu1 %v3748_v25, %s4601_s28  ;;  %2876 = vrot.lane.b32.xlu0 %v3361_v57, %s4595_s29 }
 0x505   : > { %v3438_v0 = vpop.permute.xlu1 %3437  ;;  %v3625_v32 = vpop.permute.xlu0 %3624 }
 0x506   : > { %3515 = vst.msk [vmem:[#allocation3 + $0x98] sm:$0xff] %vm3495_vm5, %v3438_v0 }
 0x507   : > { %3705 = vst.msk [vmem:[#allocation3 + $0x80] sm:$0xff] %vm3688_vm6, %v3625_v32  ;;  %2878 = vrot.lane.b32.xlu1 %v3362_v33, %s4595_s29  ;;  %2880 = vrot.lane.b32.xlu0 %v2786_v1, %s4595_s29 }
 0x509   : > { %v3627_v37 = vpop.permute.xlu1 %3626  ;;  %v3629_v40 = vpop.permute.xlu0 %3628 }
 0x50a   : > { %3706 = vst.msk [vmem:[#allocation3 + $0x88] sm:$0xff] %vm3688_vm6, %v3627_v37  ;;  %3707 = vst.msk [vmem:[#allocation3 + $0x90] sm:$0xff] %vm3688_vm6, %v3629_v40 }
 0x50b   : > { %2882 = vrot.lane.b32.xlu1 %v2787_v11, %s4595_s29  ;;  %3069 = vrot.lane.b32.xlu0 %v3554_v13, %s4597_s10 }
 0x50d   : > { %v3631_v12 = vpop.permute.xlu1 %3630  ;;  %v3818_v61 = vpop.permute.xlu0 %3817 }
 0x50e   : > { %3708 = vst.msk [vmem:[#allocation3 + $0x98] sm:$0xff] %vm3688_vm6, %v3631_v12 }
 0x50f   : > { %3898 = vst.msk [vmem:[#allocation3 + $0x80] sm:$0xff] %vm3881_vm7, %v3818_v61  ;;  %3071 = vrot.lane.b32.xlu1 %v3555_v4, %s4597_s10  ;;  %3073 = vrot.lane.b32.xlu0 %v2979_v58, %s4597_s10 }
 0x511   : > { %v3820_v2 = vpop.permute.xlu1 %3819  ;;  %v3822_v43 = vpop.permute.xlu0 %3821 }
 0x512   : > { %3899 = vst.msk [vmem:[#allocation3 + $0x88] sm:$0xff] %vm3881_vm7, %v3820_v2  ;;  %3900 = vst.msk [vmem:[#allocation3 + $0x90] sm:$0xff] %vm3881_vm7, %v3822_v43 }
 0x513   : > { %3075 = vrot.lane.b32.xlu1 %v2980_v3, %s4597_s10  ;;  %3262 = vrot.lane.b32.xlu0 %v3747_v36, %s4598_s15 }
 0x515   : > { %v3824_v53 = vpop.permute.xlu1 %3823  ;;  %v2861_v27 = vpop.permute.xlu0 %2860 }
 0x516   : > { %3901 = vst.msk [vmem:[#allocation3 + $0x98] sm:$0xff] %vm3881_vm7, %v3824_v53  ;;  %v3930_v10 = vld [vmem:[#allocation3 + $0x80] sm:$0xff] }
 0x517   : > { %2937 = vst.msk [vmem:[#allocation3 + $0xa0] sm:$0xff] %vm2916_vm2, %v2861_v27  ;;  %3264 = vrot.lane.b32.xlu1 %v3748_v25, %s4598_s15  ;;  %3266 = vrot.lane.b32.xlu0 %v3172_v63, %s4598_s15 }
 0x519   : > { %v2863_v48 = vpop.permute.xlu1 %2862  ;;  %v2865_v5 = vpop.permute.xlu0 %2864  ;;  %v3931_v8 = vld [vmem:[#allocation3 + $0x88] sm:$0xff]  ;;  %v3932_v16 = vld [vmem:[#allocation3 + $0x90] sm:$0xff] }
 0x51a   : > { %2938 = vst.msk [vmem:[#allocation3 + $0xa8] sm:$0xff] %vm2916_vm2, %v2863_v48  ;;  %2939 = vst.msk [vmem:[#allocation3 + $0xb0] sm:$0xff] %vm2916_vm2, %v2865_v5  ;;  %v3954_v20 = vpack.c.bf16 %v3931_v8, %v3930_v10 }
 0x51b   : > { %3268 = vrot.lane.b32.xlu1 %v3173_v7, %s4598_s15  ;;  %3455 = vrot.lane.b32.xlu0 %v2786_v1, %s4599_s16 }
 0x51c   : > { %4534 = vmatprep.mubr.msk.bf16.mxu1 %vm3995_vm8, %v3954_v20 }
 0x51d   : > { %v2867_v22 = vpop.permute.xlu1 %2866  ;;  %v3054_v34 = vpop.permute.xlu0 %3053  ;;  %v3933_v62 = vld [vmem:[#allocation3 + $0x98] sm:$0xff] }
 0x51e   : > { %2940 = vst.msk [vmem:[#allocation3 + $0xb8] sm:$0xff] %vm2916_vm2, %v2867_v22  ;;  %v3955_v52 = vpack.c.bf16 %v3933_v62, %v3932_v16 }
 0x51f   : > { %3130 = vst.msk [vmem:[#allocation3 + $0xa0] sm:$0xff] %vm3109_vm3, %v3054_v34  ;;  %3457 = vrot.lane.b32.xlu1 %v2787_v11, %s4599_s16  ;;  %3459 = vrot.lane.b32.xlu0 %v3365_v31, %s4599_s16 }
 0x520   : > { %4535 = vmatmul.mubr.msk.bf16.gmra.mxu1 %vm3995_vm8, %v3955_v52 }
 0x521   : > { %v3056_v60 = vpop.permute.xlu1 %3055  ;;  %v3058_v6 = vpop.permute.xlu0 %3057 }
 0x522   : > { %3131 = vst.msk [vmem:[#allocation3 + $0xa8] sm:$0xff] %vm3109_vm3, %v3056_v60  ;;  %3132 = vst.msk [vmem:[#allocation3 + $0xb0] sm:$0xff] %vm3109_vm3, %v3058_v6 }
 0x523   : > { %3461 = vrot.lane.b32.xlu1 %v3366_v21, %s4599_s16  ;;  %3648 = vrot.lane.b32.xlu0 %v2979_v58, %s4600_s23 }
 0x525   : > { %v3060_v54 = vpop.permute.xlu1 %3059  ;;  %v3247_v42 = vpop.permute.xlu0 %3246 }
 0x526   : > { %3133 = vst.msk [vmem:[#allocation3 + $0xb8] sm:$0xff] %vm3109_vm3, %v3060_v54 }
 0x527   : > { %3323 = vst.msk [vmem:[#allocation3 + $0xa0] sm:$0xff] %vm3302_vm4, %v3247_v42  ;;  %3650 = vrot.lane.b32.xlu1 %v2980_v3, %s4600_s23  ;;  %3652 = vrot.lane.b32.xlu0 %v3558_v44, %s4600_s23 }
 0x529   : > { %v3249_v29 = vpop.permute.xlu1 %3248  ;;  %v3251_v24 = vpop.permute.xlu0 %3250 }
 0x52a   : > { %3324 = vst.msk [vmem:[#allocation3 + $0xa8] sm:$0xff] %vm3302_vm4, %v3249_v29  ;;  %3325 = vst.msk [vmem:[#allocation3 + $0xb0] sm:$0xff] %vm3302_vm4, %v3251_v24 }
 0x52b   : > { %3654 = vrot.lane.b32.xlu1 %v3559_v17, %s4600_s23  ;;  %3841 = vrot.lane.b32.xlu0 %v3172_v63, %s4601_s28 }
 0x52d   : > { %v3253_v14 = vpop.permute.xlu1 %3252  ;;  %v3440_v49 = vpop.permute.xlu0 %3439 }
 0x52e   : > { %3326 = vst.msk [vmem:[#allocation3 + $0xb8] sm:$0xff] %vm3302_vm4, %v3253_v14 }
 0x52f   : > { %3516 = vst.msk [vmem:[#allocation3 + $0xa0] sm:$0xff] %vm3495_vm5, %v3440_v49  ;;  %3843 = vrot.lane.b32.xlu1 %v3173_v7, %s4601_s28  ;;  %3845 = vrot.lane.b32.xlu0 %v3751_v50, %s4601_s28 }
 0x531   : > { %v3442_v45 = vpop.permute.xlu1 %3441  ;;  %v3444_v38 = vpop.permute.xlu0 %3443 }
 0x532   : > { %3517 = vst.msk [vmem:[#allocation3 + $0xa8] sm:$0xff] %vm3495_vm5, %v3442_v45  ;;  %3518 = vst.msk [vmem:[#allocation3 + $0xb0] sm:$0xff] %vm3495_vm5, %v3444_v38 }
 0x533   : > { %3847 = vrot.lane.b32.xlu1 %v3752_v19, %s4601_s28 }
 0x535   : > { %v3446_v57 = vpop.permute.xlu1 %3445  ;;  %v3633_v41 = vpop.permute.xlu0 %3632 }
 0x536   : > { %3519 = vst.msk [vmem:[#allocation3 + $0xb8] sm:$0xff] %vm3495_vm5, %v3446_v57 }
 0x537   : > { %3709 = vst.msk [vmem:[#allocation3 + $0xa0] sm:$0xff] %vm3688_vm6, %v3633_v41 }
 0x539   : > { %v3635_v59 = vpop.permute.xlu1 %3634  ;;  %v3637_v46 = vpop.permute.xlu0 %3636 }
 0x53a   : > { %3710 = vst.msk [vmem:[#allocation3 + $0xa8] sm:$0xff] %vm3688_vm6, %v3635_v59  ;;  %3711 = vst.msk [vmem:[#allocation3 + $0xb0] sm:$0xff] %vm3688_vm6, %v3637_v46 }
 0x53d   : > { %v3639_v56 = vpop.permute.xlu1 %3638  ;;  %v3826_v33 = vpop.permute.xlu0 %3825 }
 0x53e   : > { %3712 = vst.msk [vmem:[#allocation3 + $0xb8] sm:$0xff] %vm3688_vm6, %v3639_v56 }
 0x53f   : > { %3902 = vst.msk [vmem:[#allocation3 + $0xa0] sm:$0xff] %vm3881_vm7, %v3826_v33 }
 0x540   : > { %v4520_v30 = vpop.f32.mrf.mxu1 }
 0x541   : > { %v4091_v47 = vadd.f32 %v4520_v30, %v6576_v39  ;;  %v3828_v35 = vpop.permute.xlu1 %3827  ;;  %v3830_v18 = vpop.permute.xlu0 %3829 }
 0x542   : > { %3903 = vst.msk [vmem:[#allocation3 + $0xa8] sm:$0xff] %vm3881_vm7, %v3828_v35  ;;  %3904 = vst.msk [vmem:[#allocation3 + $0xb0] sm:$0xff] %vm3881_vm7, %v3830_v18  ;;  %v4082_v13 = vpop.f32.mrf.mxu1 }
 0x543   : > { %v4083_v51 = vadd.f32 %v6576_v39, %v4082_v13  ;;  %v4211_v28 = vmax.f32 %v4091_v47, 0.0 }
 0x544   : > { %v4521_v23 = vpop.f32.mrf.mxu1 }
 0x545   : > { %v4209_v4 = vmax.f32 %v4083_v51, 0.0  ;;  %v4094_v26 = vadd.f32 %v4521_v23, %v6576_v39  ;;  %v3832_v55 = vpop.permute.xlu1 %3831  ;;  %v2869_v36 = vpop.permute.xlu0 %2868 }
 0x546   : > { %3905 = vst.msk [vmem:[#allocation3 + $0xb8] sm:$0xff] %vm3881_vm7, %v3832_v55  ;;  %v4085_v15 = vpop.f32.mrf.mxu1  ;;  %v3934_v40 = vld [vmem:[#allocation3 + $0xa0] sm:$0xff] }
 0x547   : > { %2941 = vst.msk [vmem:[#allocation3 + $0xc0] sm:$0xff] %vm2916_vm2, %v2869_v36  ;;  %v4241_v9 = vmax.f32 %v4209_v4, %v4211_v28  ;;  %v4086_v25 = vadd.f32 %v6576_v39, %v4085_v15  ;;  %v4212_v0 = vmax.f32 %v4094_v26, 0.0 }
 0x549   : > { %4257 = vst.msk [vmem:[#allocation4] sm:$0xff] %vm226_vm0, %v4241_v9  ;;  %v4210_v32 = vmax.f32 %v4086_v25, 0.0  ;;  %v2871_v1 = vpop.permute.xlu1 %2870  ;;  %v2873_v37 = vpop.permute.xlu0 %2872  ;;  %v3935_v11 = vld [vmem:[#allocation3 + $0xa8] sm:$0xff]  ;;  %v3936_v43 = vld [vmem:[#allocation3 + $0xb0] sm:$0xff] }
 0x54a   : > { %2942 = vst.msk [vmem:[#allocation3 + $0xc8] sm:$0xff] %vm2916_vm2, %v2871_v1  ;;  %2943 = vst.msk [vmem:[#allocation3 + $0xd0] sm:$0xff] %vm2916_vm2, %v2873_v37  ;;  %v3956_v12 = vpack.c.bf16 %v3935_v11, %v3934_v40 }
 0x54b   : > { %v4242_v61 = vmax.f32 %v4210_v32, %v4212_v0 }
 0x54c   : > { %4538 = vmatprep.mubr.msk.bf16.mxu1 %vm3995_vm8, %v3956_v12 }
 0x54d   : > { %4258 = vst.msk [vmem:[#allocation4 + $0x8] sm:$0xff] %vm226_vm0, %v4242_v61  ;;  %v2875_v58 = vpop.permute.xlu1 %2874  ;;  %v3062_v2 = vpop.permute.xlu0 %3061  ;;  %v3937_v3 = vld [vmem:[#allocation3 + $0xb8] sm:$0xff] }
 0x54e   : > { %2944 = vst.msk [vmem:[#allocation3 + $0xd8] sm:$0xff] %vm2916_vm2, %v2875_v58  ;;  %v3957_v53 = vpack.c.bf16 %v3937_v3, %v3936_v43 }
 0x54f   : > { %3134 = vst.msk [vmem:[#allocation3 + $0xc0] sm:$0xff] %vm3109_vm3, %v3062_v2 }
 0x550   : > { %4539 = vmatmul.mubr.msk.bf16.gmra.mxu1 %vm3995_vm8, %v3957_v53 }
 0x551   : > { %v3064_v27 = vpop.permute.xlu1 %3063  ;;  %v3066_v63 = vpop.permute.xlu0 %3065 }
 0x552   : > { %3135 = vst.msk [vmem:[#allocation3 + $0xc8] sm:$0xff] %vm3109_vm3, %v3064_v27  ;;  %3136 = vst.msk [vmem:[#allocation3 + $0xd0] sm:$0xff] %vm3109_vm3, %v3066_v63 }
 0x554   : > { %v4273_v48 = vld [vmem:[#allocation4] ss:$2 sm:$0xff]  ;;  %v4289_v5 = vld [vmem:[#allocation4 + $0x1] ss:$2 sm:$0xff] }
 0x555   : > { %v4304_v10 = vmax.f32 %v4273_v48, %v4289_v5  ;;  %v3068_v8 = vpop.permute.xlu1 %3067  ;;  %v3255_v7 = vpop.permute.xlu0 %3254 }
 0x556   : > { %3137 = vst.msk [vmem:[#allocation3 + $0xd8] sm:$0xff] %vm3109_vm3, %v3068_v8 }
 0x557   : > { %3327 = vst.msk [vmem:[#allocation3 + $0xc0] sm:$0xff] %vm3302_vm4, %v3255_v7 }
 0x558   : > { %4312 = vst.msk [vmem:[%s6600_s11] sm:$0xff] %vm226_vm0, %v4304_v10 }
 0x559   : > { %v3257_v20 = vpop.permute.xlu1 %3256  ;;  %v3259_v31 = vpop.permute.xlu0 %3258 }
 0x55a   : > { %3328 = vst.msk [vmem:[#allocation3 + $0xc8] sm:$0xff] %vm3302_vm4, %v3257_v20  ;;  %3329 = vst.msk [vmem:[#allocation3 + $0xd0] sm:$0xff] %vm3302_vm4, %v3259_v31 }
 0x55d   : > { %v3261_v22 = vpop.permute.xlu1 %3260  ;;  %v3448_v34 = vpop.permute.xlu0 %3447 }
 0x55e   : > { %3330 = vst.msk [vmem:[#allocation3 + $0xd8] sm:$0xff] %vm3302_vm4, %v3261_v22 }
 0x55f   : > { %3520 = vst.msk [vmem:[#allocation3 + $0xc0] sm:$0xff] %vm3495_vm5, %v3448_v34 }
 0x561   : > { %v3450_v16 = vpop.permute.xlu1 %3449  ;;  %v3452_v62 = vpop.permute.xlu0 %3451 }
 0x562   : > { %3521 = vst.msk [vmem:[#allocation3 + $0xc8] sm:$0xff] %vm3495_vm5, %v3450_v16  ;;  %3522 = vst.msk [vmem:[#allocation3 + $0xd0] sm:$0xff] %vm3495_vm5, %v3452_v62 }
 0x565   : > { %v3454_v52 = vpop.permute.xlu1 %3453  ;;  %v3641_v21 = vpop.permute.xlu0 %3640 }
 0x566   : > { %3523 = vst.msk [vmem:[#allocation3 + $0xd8] sm:$0xff] %vm3495_vm5, %v3454_v52 }
 0x567   : > { %3713 = vst.msk [vmem:[#allocation3 + $0xc0] sm:$0xff] %vm3688_vm6, %v3641_v21 }
 0x568   : > { %v4524_v60 = vpop.f32.mrf.mxu1 }
 0x569   : > { %v4107_v6 = vadd.f32 %v4524_v60, %v6576_v39  ;;  %v3643_v44 = vpop.permute.xlu1 %3642  ;;  %v3645_v54 = vpop.permute.xlu0 %3644 }
 0x56a   : > { %3714 = vst.msk [vmem:[#allocation3 + $0xc8] sm:$0xff] %vm3688_vm6, %v3643_v44  ;;  %3715 = vst.msk [vmem:[#allocation3 + $0xd0] sm:$0xff] %vm3688_vm6, %v3645_v54  ;;  %v4098_v42 = vpop.f32.mrf.mxu1 }
 0x56b   : > { %v4099_v17 = vadd.f32 %v6576_v39, %v4098_v42  ;;  %v4215_v24 = vmax.f32 %v4107_v6, 0.0 }
 0x56c   : > { %v4525_v29 = vpop.f32.mrf.mxu1 }
 0x56d   : > { %v4213_v50 = vmax.f32 %v4099_v17, 0.0  ;;  %v4110_v14 = vadd.f32 %v4525_v29, %v6576_v39  ;;  %v3647_v49 = vpop.permute.xlu1 %3646  ;;  %v3834_v19 = vpop.permute.xlu0 %3833 }
 0x56e   : > { %3716 = vst.msk [vmem:[#allocation3 + $0xd8] sm:$0xff] %vm3688_vm6, %v3647_v49  ;;  %v4101_v45 = vpop.f32.mrf.mxu1 }
 0x56f   : > { %3906 = vst.msk [vmem:[#allocation3 + $0xc0] sm:$0xff] %vm3881_vm7, %v3834_v19  ;;  %v4243_v38 = vmax.f32 %v4213_v50, %v4215_v24  ;;  %v4102_v57 = vadd.f32 %v6576_v39, %v4101_v45  ;;  %v4216_v41 = vmax.f32 %v4110_v14, 0.0 }
 0x571   : > { %4259 = vst.msk [vmem:[#allocation4 + $0x10] sm:$0xff] %vm226_vm0, %v4243_v38  ;;  %v4214_v59 = vmax.f32 %v4102_v57, 0.0  ;;  %v3836_v46 = vpop.permute.xlu1 %3835  ;;  %v3838_v56 = vpop.permute.xlu0 %3837 }
 0x572   : > { %3907 = vst.msk [vmem:[#allocation3 + $0xc8] sm:$0xff] %vm3881_vm7, %v3836_v46  ;;  %3908 = vst.msk [vmem:[#allocation3 + $0xd0] sm:$0xff] %vm3881_vm7, %v3838_v56 }
 0x573   : > { %v4244_v33 = vmax.f32 %v4214_v59, %v4216_v41 }
 0x575   : > { %4260 = vst.msk [vmem:[#allocation4 + $0x18] sm:$0xff] %vm226_vm0, %v4244_v33  ;;  %v3840_v30 = vpop.permute.xlu1 %3839  ;;  %v2877_v47 = vpop.permute.xlu0 %2876 }
 0x576   : > { %3909 = vst.msk [vmem:[#allocation3 + $0xd8] sm:$0xff] %vm3881_vm7, %v3840_v30  ;;  %v3938_v13 = vld [vmem:[#allocation3 + $0xc0] sm:$0xff] }
 0x577   : > { %2945 = vst.msk [vmem:[#allocation3 + $0xe0] sm:$0xff] %vm2916_vm2, %v2877_v47 }
 0x579   : > { %v2879_v35 = vpop.permute.xlu1 %2878  ;;  %v2881_v18 = vpop.permute.xlu0 %2880  ;;  %v3939_v51 = vld [vmem:[#allocation3 + $0xc8] sm:$0xff]  ;;  %v3940_v15 = vld [vmem:[#allocation3 + $0xd0] sm:$0xff] }
 0x57a   : > { %2946 = vst.msk [vmem:[#allocation3 + $0xe8] sm:$0xff] %vm2916_vm2, %v2879_v35  ;;  %2947 = vst.msk [vmem:[#allocation3 + $0xf0] sm:$0xff] %vm2916_vm2, %v2881_v18  ;;  %v3958_v23 = vpack.c.bf16 %v3939_v51, %v3938_v13 }
 0x57c   : > { %v4275_v28 = vld [vmem:[#allocation4 + $0x10] ss:$2 sm:$0xff]  ;;  %v4291_v4 = vld [vmem:[#allocation4 + $0x11] ss:$2 sm:$0xff]  ;;  %4542 = vmatprep.mubr.msk.bf16.mxu1 %vm3995_vm8, %v3958_v23 }
 0x57d   : > { %v4305_v26 = vmax.f32 %v4275_v28, %v4291_v4  ;;  %v2883_v55 = vpop.permute.xlu1 %2882  ;;  %v3070_v36 = vpop.permute.xlu0 %3069  ;;  %v3941_v9 = vld [vmem:[#allocation3 + $0xd8] sm:$0xff] }
 0x57e   : > { %2948 = vst.msk [vmem:[#allocation3 + $0xf8] sm:$0xff] %vm2916_vm2, %v2883_v55  ;;  %v3959_v25 = vpack.c.bf16 %v3941_v9, %v3940_v15 }
 0x57f   : > { %3138 = vst.msk [vmem:[#allocation3 + $0xe0] sm:$0xff] %vm3109_vm3, %v3070_v36 }
 0x580   : > { %4313 = vst.msk [vmem:[%s6600_s11 + $0x8] sm:$0xff] %vm226_vm0, %v4305_v26  ;;  %4543 = vmatmul.mubr.msk.bf16.gmra.mxu1 %vm3995_vm8, %v3959_v25 }
 0x581   : > { %v3072_v0 = vpop.permute.xlu1 %3071  ;;  %v3074_v32 = vpop.permute.xlu0 %3073 }
 0x582   : > { %3139 = vst.msk [vmem:[#allocation3 + $0xe8] sm:$0xff] %vm3109_vm3, %v3072_v0  ;;  %3140 = vst.msk [vmem:[#allocation3 + $0xf0] sm:$0xff] %vm3109_vm3, %v3074_v32 }
 0x585   : > { %v3076_v1 = vpop.permute.xlu1 %3075  ;;  %v3263_v37 = vpop.permute.xlu0 %3262 }
 0x586   : > { %3141 = vst.msk [vmem:[#allocation3 + $0xf8] sm:$0xff] %vm3109_vm3, %v3076_v1 }
 0x587   : > { %3331 = vst.msk [vmem:[#allocation3 + $0xe0] sm:$0xff] %vm3302_vm4, %v3263_v37 }
 0x589   : > { %v3265_v40 = vpop.permute.xlu1 %3264  ;;  %v3267_v11 = vpop.permute.xlu0 %3266 }
 0x58a   : > { %3332 = vst.msk [vmem:[#allocation3 + $0xe8] sm:$0xff] %vm3302_vm4, %v3265_v40  ;;  %3333 = vst.msk [vmem:[#allocation3 + $0xf0] sm:$0xff] %vm3302_vm4, %v3267_v11 }
 0x58d   : > { %v3269_v12 = vpop.permute.xlu1 %3268  ;;  %v3456_v61 = vpop.permute.xlu0 %3455 }
 0x58e   : > { %3334 = vst.msk [vmem:[#allocation3 + $0xf8] sm:$0xff] %vm3302_vm4, %v3269_v12 }
 0x58f   : > { %3524 = vst.msk [vmem:[#allocation3 + $0xe0] sm:$0xff] %vm3495_vm5, %v3456_v61 }
 0x590   : > { %v4528_v58 = vpop.f32.mrf.mxu1 }
 0x591   : > { %v4123_v2 = vadd.f32 %v4528_v58, %v6576_v39  ;;  %v3458_v43 = vpop.permute.xlu1 %3457  ;;  %v3460_v3 = vpop.permute.xlu0 %3459 }
 0x592   : > { %3525 = vst.msk [vmem:[#allocation3 + $0xe8] sm:$0xff] %vm3495_vm5, %v3458_v43  ;;  %3526 = vst.msk [vmem:[#allocation3 + $0xf0] sm:$0xff] %vm3495_vm5, %v3460_v3  ;;  %v4114_v53 = vpop.f32.mrf.mxu1 }
 0x593   : > { %v4115_v27 = vadd.f32 %v6576_v39, %v4114_v53  ;;  %v4219_v48 = vmax.f32 %v4123_v2, 0.0 }
 0x594   : > { %v4529_v63 = vpop.f32.mrf.mxu1 }
 0x595   : > { %v4217_v5 = vmax.f32 %v4115_v27, 0.0  ;;  %v4126_v10 = vadd.f32 %v4529_v63, %v6576_v39  ;;  %v3462_v8 = vpop.permute.xlu1 %3461  ;;  %v3649_v7 = vpop.permute.xlu0 %3648 }
 0x596   : > { %3527 = vst.msk [vmem:[#allocation3 + $0xf8] sm:$0xff] %vm3495_vm5, %v3462_v8  ;;  %v4117_v20 = vpop.f32.mrf.mxu1 }
 0x597   : > { %3717 = vst.msk [vmem:[#allocation3 + $0xe0] sm:$0xff] %vm3688_vm6, %v3649_v7  ;;  %v4245_v31 = vmax.f32 %v4217_v5, %v4219_v48  ;;  %v4118_v22 = vadd.f32 %v6576_v39, %v4117_v20  ;;  %v4220_v34 = vmax.f32 %v4126_v10, 0.0 }
 0x599   : > { %4261 = vst.msk [vmem:[#allocation4 + $0x20] sm:$0xff] %vm226_vm0, %v4245_v31  ;;  %v4218_v16 = vmax.f32 %v4118_v22, 0.0  ;;  %v3651_v62 = vpop.permute.xlu1 %3650  ;;  %v3653_v52 = vpop.permute.xlu0 %3652 }
 0x59a   : > { %3718 = vst.msk [vmem:[#allocation3 + $0xe8] sm:$0xff] %vm3688_vm6, %v3651_v62  ;;  %3719 = vst.msk [vmem:[#allocation3 + $0xf0] sm:$0xff] %vm3688_vm6, %v3653_v52 }
 0x59b   : > { %v4246_v21 = vmax.f32 %v4218_v16, %v4220_v34 }
 0x59d   : > { %4262 = vst.msk [vmem:[#allocation4 + $0x28] sm:$0xff] %vm226_vm0, %v4246_v21  ;;  %v3655_v60 = vpop.permute.xlu1 %3654  ;;  %v3842_v6 = vpop.permute.xlu0 %3841 }
 0x59e   : > { %3720 = vst.msk [vmem:[#allocation3 + $0xf8] sm:$0xff] %vm3688_vm6, %v3655_v60 }
 0x59f   : > { %3910 = vst.msk [vmem:[#allocation3 + $0xe0] sm:$0xff] %vm3881_vm7, %v3842_v6 }
 0x5a1   : > { %v3844_v44 = vpop.permute.xlu1 %3843  ;;  %v3846_v54 = vpop.permute.xlu0 %3845 }
 0x5a2   : > { %3911 = vst.msk [vmem:[#allocation3 + $0xe8] sm:$0xff] %vm3881_vm7, %v3844_v44  ;;  %3912 = vst.msk [vmem:[#allocation3 + $0xf0] sm:$0xff] %vm3881_vm7, %v3846_v54 }
 0x5a4   : > { %v4277_v42 = vld [vmem:[#allocation4 + $0x20] ss:$2 sm:$0xff]  ;;  %v4293_v17 = vld [vmem:[#allocation4 + $0x21] ss:$2 sm:$0xff] }
 0x5a5   : > { %v4306_v29 = vmax.f32 %v4277_v42, %v4293_v17  ;;  %v3848_v24 = vpop.permute.xlu1 %3847 }
 0x5a6   : > { %3913 = vst.msk [vmem:[#allocation3 + $0xf8] sm:$0xff] %vm3881_vm7, %v3848_v24  ;;  %v3942_v50 = vld [vmem:[#allocation3 + $0xe0] sm:$0xff] }
 0x5a7   : > { %4314 = vst.msk [vmem:[%s6600_s11 + $0x10] sm:$0xff] %vm226_vm0, %v4306_v29 }
 0x5a9   : > { %v3943_v14 = vld [vmem:[#allocation3 + $0xe8] sm:$0xff]  ;;  %v3944_v19 = vld [vmem:[#allocation3 + $0xf0] sm:$0xff] }
 0x5aa   : > { %v3960_v49 = vpack.c.bf16 %v3943_v14, %v3942_v50 }
 0x5ac   : > { %4546 = vmatprep.mubr.msk.bf16.mxu1 %vm3995_vm8, %v3960_v49 }
 0x5ad   : > { %v3945_v45 = vld [vmem:[#allocation3 + $0xf8] sm:$0xff] }
 0x5ae   : > { %v3961_v38 = vpack.c.bf16 %v3945_v45, %v3944_v19 }
 0x5b0   : > { %4547 = vmatmul.mubr.msk.bf16.gmra.mxu1 %vm3995_vm8, %v3961_v38 }
 0x5b8   : > { %v4532_v57 = vpop.f32.mrf.mxu1 }
 0x5b9   : > { %v4139_v41 = vadd.f32 %v4532_v57, %v6576_v39 }
 0x5ba   : > { %v4130_v59 = vpop.f32.mrf.mxu1 }
 0x5bb   : > { %v4131_v46 = vadd.f32 %v6576_v39, %v4130_v59  ;;  %v4223_v33 = vmax.f32 %v4139_v41, 0.0 }
 0x5bc   : > { %v4533_v56 = vpop.f32.mrf.mxu1 }
 0x5bd   : > { %v4221_v30 = vmax.f32 %v4131_v46, 0.0  ;;  %v4142_v47 = vadd.f32 %v4533_v56, %v6576_v39 }
 0x5be   : > { %v4133_v35 = vpop.f32.mrf.mxu1 }
 0x5bf   : > { %v4247_v18 = vmax.f32 %v4221_v30, %v4223_v33  ;;  %v4134_v13 = vadd.f32 %v6576_v39, %v4133_v35  ;;  %v4224_v51 = vmax.f32 %v4142_v47, 0.0 }
 0x5c1   : > { %4263 = vst.msk [vmem:[#allocation4 + $0x30] sm:$0xff] %vm226_vm0, %v4247_v18  ;;  %v4222_v23 = vmax.f32 %v4134_v13, 0.0 }
 0x5c3   : > { %v4248_v28 = vmax.f32 %v4222_v23, %v4224_v51 }
 0x5c5   : > { %4264 = vst.msk [vmem:[#allocation4 + $0x38] sm:$0xff] %vm226_vm0, %v4248_v28 }
 0x5cc   : > { %v4279_v4 = vld [vmem:[#allocation4 + $0x30] ss:$2 sm:$0xff]  ;;  %v4295_v26 = vld [vmem:[#allocation4 + $0x31] ss:$2 sm:$0xff] }
 0x5cd   : > { %v4307_v55 = vmax.f32 %v4279_v4, %v4295_v26 }
 0x5cf   : > { %4315 = vst.msk [vmem:[%s6600_s11 + $0x18] sm:$0xff] %vm226_vm0, %v4307_v55 }
 0x5e0   : > { %v4536_v36 = vpop.f32.mrf.mxu1 }
 0x5e1   : > { %v4155_v15 = vadd.f32 %v4536_v36, %v6576_v39 }
 0x5e2   : > { %v4146_v9 = vpop.f32.mrf.mxu1 }
 0x5e3   : > { %v4147_v25 = vadd.f32 %v6576_v39, %v4146_v9  ;;  %v4227_v32 = vmax.f32 %v4155_v15, 0.0 }
 0x5e4   : > { %v4537_v0 = vpop.f32.mrf.mxu1 }
 0x5e5   : > { %v4225_v1 = vmax.f32 %v4147_v25, 0.0  ;;  %v4158_v37 = vadd.f32 %v4537_v0, %v6576_v39 }
 0x5e6   : > { %v4149_v40 = vpop.f32.mrf.mxu1 }
 0x5e7   : > { %v4249_v11 = vmax.f32 %v4225_v1, %v4227_v32  ;;  %v4150_v12 = vadd.f32 %v6576_v39, %v4149_v40  ;;  %v4228_v61 = vmax.f32 %v4158_v37, 0.0 }
 0x5e9   : > { %4265 = vst.msk [vmem:[#allocation4 + $0x40] sm:$0xff] %vm226_vm0, %v4249_v11  ;;  %v4226_v58 = vmax.f32 %v4150_v12, 0.0 }
 0x5eb   : > { %v4250_v2 = vmax.f32 %v4226_v58, %v4228_v61 }
 0x5ed   : > { %4266 = vst.msk [vmem:[#allocation4 + $0x48] sm:$0xff] %vm226_vm0, %v4250_v2 }
 0x5f4   : > { %v4281_v43 = vld [vmem:[#allocation4 + $0x40] ss:$2 sm:$0xff]  ;;  %v4297_v3 = vld [vmem:[#allocation4 + $0x41] ss:$2 sm:$0xff] }
 0x5f5   : > { %v4308_v53 = vmax.f32 %v4281_v43, %v4297_v3 }
 0x5f7   : > { %4316 = vst.msk [vmem:[%s6600_s11 + $0x20] sm:$0xff] %vm226_vm0, %v4308_v53 }
 0x610   : > { %v4540_v27 = vpop.f32.mrf.mxu1 }
 0x611   : > { %v4171_v63 = vadd.f32 %v4540_v27, %v6576_v39 }
 0x612   : > { %v4162_v48 = vpop.f32.mrf.mxu1 }
 0x613   : > { %v4163_v5 = vadd.f32 %v6576_v39, %v4162_v48  ;;  %v4231_v8 = vmax.f32 %v4171_v63, 0.0 }
 0x614   : > { %v4541_v10 = vpop.f32.mrf.mxu1 }
 0x615   : > { %v4229_v7 = vmax.f32 %v4163_v5, 0.0  ;;  %v4174_v20 = vadd.f32 %v4541_v10, %v6576_v39 }
 0x616   : > { %v4165_v31 = vpop.f32.mrf.mxu1 }
 0x617   : > { %v4251_v22 = vmax.f32 %v4229_v7, %v4231_v8  ;;  %v4166_v34 = vadd.f32 %v6576_v39, %v4165_v31  ;;  %v4232_v16 = vmax.f32 %v4174_v20, 0.0 }
 0x619   : > { %4267 = vst.msk [vmem:[#allocation4 + $0x50] sm:$0xff] %vm226_vm0, %v4251_v22  ;;  %v4230_v62 = vmax.f32 %v4166_v34, 0.0 }
 0x61b   : > { %v4252_v52 = vmax.f32 %v4230_v62, %v4232_v16 }
 0x61d   : > { %4268 = vst.msk [vmem:[#allocation4 + $0x58] sm:$0xff] %vm226_vm0, %v4252_v52 }
 0x624   : > { %v4283_v21 = vld [vmem:[#allocation4 + $0x50] ss:$2 sm:$0xff]  ;;  %v4299_v60 = vld [vmem:[#allocation4 + $0x51] ss:$2 sm:$0xff] }
 0x625   : > { %v4309_v6 = vmax.f32 %v4283_v21, %v4299_v60 }
 0x627   : > { %4317 = vst.msk [vmem:[%s6600_s11 + $0x28] sm:$0xff] %vm226_vm0, %v4309_v6 }
 0x640   : > { %v4544_v44 = vpop.f32.mrf.mxu1 }
 0x641   : > { %v4187_v54 = vadd.f32 %v4544_v44, %v6576_v39 }
 0x642   : > { %v4178_v42 = vpop.f32.mrf.mxu1 }
 0x643   : > { %v4179_v17 = vadd.f32 %v6576_v39, %v4178_v42  ;;  %v4235_v24 = vmax.f32 %v4187_v54, 0.0 }
 0x644   : > { %v4545_v29 = vpop.f32.mrf.mxu1 }
 0x645   : > { %v4233_v50 = vmax.f32 %v4179_v17, 0.0  ;;  %v4190_v14 = vadd.f32 %v4545_v29, %v6576_v39 }
 0x646   : > { %v4181_v49 = vpop.f32.mrf.mxu1 }
 0x647   : > { %v4253_v19 = vmax.f32 %v4233_v50, %v4235_v24  ;;  %v4182_v45 = vadd.f32 %v6576_v39, %v4181_v49  ;;  %v4236_v38 = vmax.f32 %v4190_v14, 0.0 }
 0x649   : > { %4269 = vst.msk [vmem:[#allocation4 + $0x60] sm:$0xff] %vm226_vm0, %v4253_v19  ;;  %v4234_v57 = vmax.f32 %v4182_v45, 0.0 }
 0x64b   : > { %v4254_v41 = vmax.f32 %v4234_v57, %v4236_v38 }
 0x64d   : > { %4270 = vst.msk [vmem:[#allocation4 + $0x68] sm:$0xff] %vm226_vm0, %v4254_v41 }
 0x654   : > { %v4285_v59 = vld [vmem:[#allocation4 + $0x60] ss:$2 sm:$0xff]  ;;  %v4301_v46 = vld [vmem:[#allocation4 + $0x61] ss:$2 sm:$0xff] }
 0x655   : > { %v4310_v56 = vmax.f32 %v4285_v59, %v4301_v46 }
 0x657   : > { %4318 = vst.msk [vmem:[%s6600_s11 + $0x30] sm:$0xff] %vm226_vm0, %v4310_v56 }
 0x670   : > { %v4548_v33 = vpop.f32.mrf.mxu1 }
 0x671   : > { %v4203_v30 = vadd.f32 %v4548_v33, %v6576_v39 }
 0x672   : > { %v4194_v47 = vpop.f32.mrf.mxu1 }
 0x673   : > { %v4195_v35 = vadd.f32 %v6576_v39, %v4194_v47  ;;  %v4239_v13 = vmax.f32 %v4203_v30, 0.0 }
 0x674   : > { %v4549_v18 = vpop.f32.mrf.mxu1 }
 0x675   : > { %v4237_v51 = vmax.f32 %v4195_v35, 0.0  ;;  %v4206_v23 = vadd.f32 %v4549_v18, %v6576_v39 }
 0x676   : > { %v4197_v28 = vpop.f32.mrf.mxu1 }
 0x677   : > { %v4255_v4 = vmax.f32 %v4237_v51, %v4239_v13  ;;  %v4198_v26 = vadd.f32 %v6576_v39, %v4197_v28  ;;  %v4240_v55 = vmax.f32 %v4206_v23, 0.0 }
 0x679   : > { %4271 = vst.msk [vmem:[#allocation4 + $0x70] sm:$0xff] %vm226_vm0, %v4255_v4  ;;  %v4238_v36 = vmax.f32 %v4198_v26, 0.0 }
 0x67b   : > { %v4256_v15 = vmax.f32 %v4238_v36, %v4240_v55 }
 0x67d   : > { %4272 = vst.msk [vmem:[#allocation4 + $0x78] sm:$0xff] %vm226_vm0, %v4256_v15 }
 0x684   : > { %v4287_v9 = vld [vmem:[#allocation4 + $0x70] ss:$2 sm:$0xff]  ;;  %v4303_v25 = vld [vmem:[#allocation4 + $0x71] ss:$2 sm:$0xff] }
 0x685   : > { %v4311_v0 = vmax.f32 %v4287_v9, %v4303_v25 }
 0x687   : > { %4319 = vst.msk [vmem:[%s6600_s11 + $0x38] sm:$0xff] %vm226_vm0, %v4311_v0 }
 0x688 PF: > { %s15_s18 = sadd.s32 1, %s4587_s18  }
 0x689   : > { %p12_p4 = scmp.ge.s32.totalorder %s15_s18, 4  }
 0x68b   :  { %14 = sbr.rel (!%p12_p4) target bundleno = 1 (0x1), region = 88 }

</bundles_post_ra>
